<compile_context>
chip_gen: v5e
topology: v5e:2x2
jax: 0.10.0
libtpu: 0.0.40
codegen_flags: <defaults>
</compile_context>

<pallas_src>
import math

import jax
import jax.numpy as jnp
from jax.experimental import pallas as pl
from jax.experimental.pallas import tpu as pltpu

# ---- hyper-parameters (from the PyTorch module / nn defaults) --------------
EMBED_DIM = 64
NUM_HEADS = 8
HEAD_DIM = EMBED_DIM // NUM_HEADS
NUM_LAYERS = 6
FFN_DIM = 2048            # nn.TransformerEncoderLayer default dim_feedforward
LN_EPS = 1e-5
FEAT_DIM = 3              # data.shape[1]
REL_DIM = 2


# ---------------------------------------------------------------------------
# Pallas kernel: all 6 encoder layers, activation resident in VMEM
# ---------------------------------------------------------------------------
def _layernorm(x, w, b):
    mu = jnp.mean(x, axis=-1, keepdims=True)
    xc = x - mu
    var = jnp.mean(xc * xc, axis=-1, keepdims=True)
    return xc * jax.lax.rsqrt(var + LN_EPS) * w + b


def encoder_stack_kernel(x_ref,
                         wqkv_ref, bqkv_ref, wo_ref, bo_ref,
                         ln1w_ref, ln1b_ref,
                         w1_ref, b1_ref, w2_ref, b2_ref,
                         ln2w_ref, ln2b_ref,
                         o_ref, act_ref):
    """Grid = (T_tiles, NUM_LAYERS); one invocation = one encoder layer on one
    T-tile.  act_ref (VMEM scratch) carries the activation across layers."""
    layer = pl.program_id(1)

    # Load the input tile into the resident activation buffer on layer 0.
    @pl.when(layer == 0)
    def _():
        act_ref[...] = x_ref[...]

    tile_t, S, E = act_ref.shape
    rows = tile_t * S

    x = act_ref[...].reshape(rows, E)              # f32 activation
    xb = x.astype(jnp.bfloat16)                    # bf16 only at matmul inputs

    # ---- fused QKV projection: one (rows,64) x (64,192) matmul --------------
    qkv = jnp.dot(xb, wqkv_ref[...],
                  preferred_element_type=jnp.float32) + bqkv_ref[...]
    scale = 1.0 / math.sqrt(HEAD_DIM)
    q = (qkv[:, 0:E] * scale).reshape(tile_t, S, E)
    k = qkv[:, E:2 * E].reshape(tile_t, S, E)
    v = qkv[:, 2 * E:3 * E].reshape(tile_t, S, E)

    # ---- multi-head self-attention over S, batched over the T tile ----------
    # TODO(synk): head contractions stay as an unrolled loop with a single
    # batch dim ('tqd,tkd->tqk'); a (T,H)-batched dot_general / 4-D transpose
    # is avoided for Mosaic-lowering safety at head_dim=8.
    head_outs = []
    for h in range(NUM_HEADS):
        sl = slice(h * HEAD_DIM, (h + 1) * HEAD_DIM)
        s = jnp.einsum('tqd,tkd->tqk', q[:, :, sl], k[:, :, sl],
                       preferred_element_type=jnp.float32)
        s = s - jnp.max(s, axis=-1, keepdims=True)
        p = jnp.exp(s)
        # divide -> EUP approx reciprocal (VALU slot stays free)
        p = p * pl.reciprocal(jnp.sum(p, axis=-1, keepdims=True), approx=True)
        head_outs.append(
            jnp.einsum('tqk,tkd->tqd', p, v[:, :, sl],
                       preferred_element_type=jnp.float32))
    attn = jnp.concatenate(head_outs, axis=-1).reshape(rows, E)
    attn = jnp.dot(attn.astype(jnp.bfloat16), wo_ref[...],
                   preferred_element_type=jnp.float32) + bo_ref[...]

    # ---- post-LN + ReLU FFN (f32 elementwise, bf16 matmul operands) ---------
    y = _layernorm(x + attn, ln1w_ref[...], ln1b_ref[...])

    h1 = jnp.dot(y.astype(jnp.bfloat16), w1_ref[...],
                 preferred_element_type=jnp.float32) + b1_ref[...]
    h1 = jnp.maximum(h1, 0.0)
    ff = jnp.dot(h1.astype(jnp.bfloat16), w2_ref[...],
                 preferred_element_type=jnp.float32) + b2_ref[...]

    z = _layernorm(y + ff, ln2w_ref[...], ln2b_ref[...])
    act_ref[...] = z.reshape(tile_t, S, E)

    # Write the tile to HBM only after the last layer.
    @pl.when(layer == pl.num_programs(1) - 1)
    def _():
        o_ref[...] = z.reshape(tile_t, S, E)


# ---------------------------------------------------------------------------
# pallas_call wrapper
# ---------------------------------------------------------------------------
def _pick_tile_t(T, S, max_rows=1024):
    """Largest divisor of T keeping the per-tile FFN intermediate bounded;
    prefer >=2 tiles so the 'parallel' axis can use both v7x TensorCores."""
    divisors = [d for d in range(1, T + 1) if T % d == 0]
    fitting = [d for d in divisors if d * S <= max_rows] or [1]
    tile = max(fitting)
    if tile == T and T > 1 and len(fitting) > 1:
        tile = max(d for d in fitting if d < T)
    return tile


def encoder_stack(x, stacked_weights):
    T, S, E = x.shape
    tile_t = _pick_tile_t(T, S)
    grid = (T // tile_t, NUM_LAYERS)

    x_spec = pl.BlockSpec((tile_t, S, E), lambda t, l: (t, 0, 0))
    w_specs = [
        pl.BlockSpec((None,) + tuple(w.shape[1:]), lambda t, l: (l, 0, 0))
        for w in stacked_weights
    ]

    return pl.pallas_call(
        encoder_stack_kernel,
        grid=grid,
        in_specs=[x_spec] + w_specs,
        out_specs=pl.BlockSpec((tile_t, S, E), lambda t, l: (t, 0, 0)),
        out_shape=jax.ShapeDtypeStruct((T, S, E), jnp.float32),
        scratch_shapes=[pltpu.VMEM((tile_t, S, E), jnp.float32)],
        compiler_params=pltpu.CompilerParams(
            dimension_semantics=("parallel", "arbitrary"),
            vmem_limit_bytes=32 * 1024 * 1024,
        ),
    )(x, *stacked_weights)


# ---------------------------------------------------------------------------
# Parameters (deterministic synthetic init, same shapes as the nn.Module)
# ---------------------------------------------------------------------------
def init_params(key, num_patches):
    def dense(k, out_dim, in_dim, scale=0.05):
        kw, kb = jax.random.split(k)
        w = jax.random.normal(kw, (out_dim, in_dim), jnp.float32) * scale
        b = jax.random.normal(kb, (out_dim,), jnp.float32) * scale
        return w, b

    keys = jax.random.split(key, 5 + NUM_LAYERS)
    proj_w, proj_b = dense(keys[0], EMBED_DIM, FEAT_DIM)       # projection
    rel_w, rel_b = dense(keys[1], EMBED_DIM, REL_DIM)          # relative_pos_embed
    patch_pos = (jax.random.normal(keys[2], (1, num_patches, EMBED_DIM),
                                   jnp.float32) * 0.05)        # patch_pos_embed
    geo_w, geo_b = dense(keys[3], 2, EMBED_DIM)                # geo_head
    precip_w, precip_b = dense(keys[4], 1, EMBED_DIM)          # precip_head
    # TODO(synk): mask_token / shuffle_head / max_patch_size exist in __init__
    # but are unused by forward(), so they are not materialized here.

    lists = {n: [] for n in ('wqkv', 'bqkv', 'wo', 'bo', 'ln1w', 'ln1b',
                             'w1', 'b1', 'w2', 'b2', 'ln2w', 'ln2b')}
    for l in range(NUM_LAYERS):
        lk = jax.random.split(keys[5 + l], 6)
        wq, bq = dense(lk[0], EMBED_DIM, EMBED_DIM)            # in_proj (Q)
        wk, bk = dense(lk[1], EMBED_DIM, EMBED_DIM)            # in_proj (K)
        wv, bv = dense(lk[2], EMBED_DIM, EMBED_DIM)            # in_proj (V)
        wo, bo = dense(lk[3], EMBED_DIM, EMBED_DIM)            # out_proj
        w1, b1 = dense(lk[4], FFN_DIM, EMBED_DIM)              # linear1
        w2, b2 = dense(lk[5], EMBED_DIM, FFN_DIM)              # linear2
        lists['wqkv'].append(jnp.concatenate([wq.T, wk.T, wv.T], axis=1))
        lists['bqkv'].append(jnp.concatenate([bq, bk, bv])[None, :])
        lists['wo'].append(wo.T)
        lists['bo'].append(bo[None, :])
        lists['ln1w'].append(jnp.ones((1, EMBED_DIM), jnp.float32))
        lists['ln1b'].append(jnp.zeros((1, EMBED_DIM), jnp.float32))
        lists['w1'].append(w1.T)
        lists['b1'].append(b1[None, :])
        lists['w2'].append(w2.T)
        lists['b2'].append(b2[None, :])
        lists['ln2w'].append(jnp.ones((1, EMBED_DIM), jnp.float32))
        lists['ln2b'].append(jnp.zeros((1, EMBED_DIM), jnp.float32))

    def stack(name, dtype=jnp.float32):
        return jnp.stack(lists[name]).astype(dtype)

    stacked = (
        stack('wqkv', jnp.bfloat16), stack('bqkv'),
        stack('wo', jnp.bfloat16), stack('bo'),
        stack('ln1w'), stack('ln1b'),
        stack('w1', jnp.bfloat16), stack('b1'),
        stack('w2', jnp.bfloat16), stack('b2'),
        stack('ln2w'), stack('ln2b'),
    )

    return {
        'proj_w': proj_w, 'proj_b': proj_b,
        'rel_w': rel_w, 'rel_b': rel_b,
        'patch_pos': patch_pos,
        'geo_w': geo_w, 'geo_b': geo_b,
        'precip_w': precip_w, 'precip_b': precip_b,
        'stacked': stacked,
    }


# ---------------------------------------------------------------------------
# Forward pass (matches DualTaskTransformer.forward semantics, eval mode)
# ---------------------------------------------------------------------------
def forward(params, x, patch_centers, relative_positions):
    # patch_centers is accepted but unused, exactly like the PyTorch forward.
    del patch_centers
    B, N, T, _ = x.shape
    S = B * N

    # ---- plain-JAX glue (tiny K=3 / K=2 projections + positional add) ------
    xf = x.reshape(S, T, FEAT_DIM)
    xe = xf @ params['proj_w'].T + params['proj_b']                     # (S,T,E)
    rel = (relative_positions.reshape(S, T, REL_DIM)
           @ params['rel_w'].T + params['rel_b'])                       # (S,T,E)
    pos = jnp.broadcast_to(params['patch_pos'],
                           (B, N, EMBED_DIM)).reshape(S, 1, EMBED_DIM)
    h = xe + pos + rel           # PyTorch layout: (seq=B*N, batch=T, E)

    # kernel layout: (T, S, E)
    h = jnp.transpose(h, (1, 0, 2)).astype(jnp.float32)

    # ---- hot path: all 6 encoder layers in ONE Pallas call ------------------
    h = encoder_stack(h, params['stacked'])

    # ---- mean over T (== x.mean(dim=1) in PyTorch) + tiny heads in JAX ------
    pooled = jnp.mean(h, axis=0)                                        # (S,E)
    geo = pooled @ params['geo_w'].T + params['geo_b']                  # (S,2)
    val = pooled @ params['precip_w'].T + params['precip_b']            # (S,1)
    return geo, val


# ---------------------------------------------------------------------------
if __name__ == "__main__":
    key = jax.random.PRNGKey(0)
    B, N, T = 2, 4, 8           # batch, num_patches, time steps
    num_patches = N

    kp, kx, kc, kr = jax.random.split(key, 4)
    params = init_params(kp, num_patches)
    x = jax.random.normal(kx, (B, N, T, FEAT_DIM), jnp.float32)
    patch_centers = jax.random.normal(kc, (B, N, 2), jnp.float32)
    relative_positions = jax.random.normal(kr, (B, N, T, REL_DIM), jnp.float32)

    geo, val = jax.jit(forward)(params, x, patch_centers, relative_positions)
    jax.block_until_ready((geo, val))

    assert geo.shape == (B * N, 2), geo.shape
    assert val.shape == (B * N, 1), val.shape
    assert bool(jnp.isfinite(geo).all()) and bool(jnp.isfinite(val).all())
    print("KERNEL_OK")
</pallas_src>

<mosaic_0001>
module attributes {stable_mosaic.version = 11 : i64} {
  func.func @encoder_stack_kernel(%arg0: i32, %arg1: i32, %arg2: memref<4x8x64xf32, #tpu.memory_space<vmem>>, %arg3: memref<1x64x192xbf16, #tpu.memory_space<vmem>>, %arg4: memref<1x1x192xf32, #tpu.memory_space<vmem>>, %arg5: memref<1x64x64xbf16, #tpu.memory_space<vmem>>, %arg6: memref<1x1x64xf32, #tpu.memory_space<vmem>>, %arg7: memref<1x1x64xf32, #tpu.memory_space<vmem>>, %arg8: memref<1x1x64xf32, #tpu.memory_space<vmem>>, %arg9: memref<1x64x2048xbf16, #tpu.memory_space<vmem>>, %arg10: memref<1x1x2048xf32, #tpu.memory_space<vmem>>, %arg11: memref<1x2048x64xbf16, #tpu.memory_space<vmem>>, %arg12: memref<1x1x64xf32, #tpu.memory_space<vmem>>, %arg13: memref<1x1x64xf32, #tpu.memory_space<vmem>>, %arg14: memref<1x1x64xf32, #tpu.memory_space<vmem>>, %arg15: memref<4x8x64xf32, #tpu.memory_space<vmem>>, %arg16: memref<4x8x64xf32, #tpu.memory_space<vmem>>) attributes {dimension_semantics = [#tpu.dimension_semantics<parallel>, #tpu.dimension_semantics<arbitrary>], iteration_bounds = array<i64: 2, 6>, scalar_prefetch = 0 : i64, scratch_operands = 1 : i64, tpu.core_type = #tpu.core_type<tc>, window_params = [{transform_indices = @transform_0, window_bounds = array<i64: 4, 8, 64>}, {transform_indices = @transform_1, window_bounds = array<i64: 1, 64, 192>}, {transform_indices = @transform_2, window_bounds = array<i64: 1, 1, 192>}, {transform_indices = @transform_3, window_bounds = array<i64: 1, 64, 64>}, {transform_indices = @transform_4, window_bounds = array<i64: 1, 1, 64>}, {transform_indices = @transform_5, window_bounds = array<i64: 1, 1, 64>}, {transform_indices = @transform_6, window_bounds = array<i64: 1, 1, 64>}, {transform_indices = @transform_7, window_bounds = array<i64: 1, 64, 2048>}, {transform_indices = @transform_8, window_bounds = array<i64: 1, 1, 2048>}, {transform_indices = @transform_9, window_bounds = array<i64: 1, 2048, 64>}, {transform_indices = @transform_10, window_bounds = array<i64: 1, 1, 64>}, {transform_indices = @transform_11, window_bounds = array<i64: 1, 1, 64>}, {transform_indices = @transform_12, window_bounds = array<i64: 1, 1, 64>}, {transform_indices = @transform_13, window_bounds = array<i64: 4, 8, 64>}]} {
    %c0_i32 = arith.constant 0 : i32
    %0 = arith.cmpi eq, %arg1, %c0_i32 : i32
    %1 = arith.extui %0 : i1 to i32
    %c0_i32_0 = arith.constant 0 : i32
    %2 = arith.cmpi ne, %1, %c0_i32_0 : i32
    scf.if %2 {
      %c0_90 = arith.constant 0 : index
      %c0_91 = arith.constant 0 : index
      %c0_92 = arith.constant 0 : index
      %224 = vector.load %arg2[%c0_90, %c0_91, %c0_92] : memref<4x8x64xf32, #tpu.memory_space<vmem>>, vector<4x8x64xf32>
      %c0_93 = arith.constant 0 : index
      %c0_94 = arith.constant 0 : index
      %c0_95 = arith.constant 0 : index
      %225 = vector.load %arg16[%c0_93, %c0_94, %c0_95] : memref<4x8x64xf32, #tpu.memory_space<vmem>>, vector<4x8x64xf32>
      tpu.vector_store %arg16[%c0_93, %c0_94, %c0_95], %224 {strides = array<i32>} : memref<4x8x64xf32, #tpu.memory_space<vmem>>, vector<4x8x64xf32>,
    } else {
    }
    %c0 = arith.constant 0 : index
    %c0_1 = arith.constant 0 : index
    %c0_2 = arith.constant 0 : index
    %3 = vector.load %arg16[%c0, %c0_1, %c0_2] : memref<4x8x64xf32, #tpu.memory_space<vmem>>, vector<4x8x64xf32>
    %4 = vector.shape_cast %3 : vector<4x8x64xf32> to vector<32x64xf32>
    %5 = arith.truncf %4 : vector<32x64xf32> to vector<32x64xbf16>
    %c0_3 = arith.constant 0 : index
    %c0_4 = arith.constant 0 : index
    %c0_5 = arith.constant 0 : index
    %6 = vector.load %arg3[%c0_3, %c0_4, %c0_5] : memref<1x64x192xbf16, #tpu.memory_space<vmem>>, vector<1x64x192xbf16>
    %7 = vector.shape_cast %6 : vector<1x64x192xbf16> to vector<64x192xbf16>
    %cst = arith.constant dense<0.000000e+00> : vector<32x192xf32>
    %8 = tpu.matmul %5, %7, %cst {dimension_numbers = #tpu.dot_dimension_numbers<[1], [0], [0], [1], [0, 0, 1, 1], [], []>} : vector<32x64xbf16>, vector<64x192xbf16>, vector<32x192xf32> -> vector<32x192xf32>
    %c0_6 = arith.constant 0 : index
    %c0_7 = arith.constant 0 : index
    %c0_8 = arith.constant 0 : index
    %9 = vector.load %arg4[%c0_6, %c0_7, %c0_8] : memref<1x1x192xf32, #tpu.memory_space<vmem>>, vector<1x1x192xf32>
    %10 = vector.shape_cast %9 : vector<1x1x192xf32> to vector<1x192xf32>
    %11 = vector.broadcast %10 : vector<1x192xf32> to vector<32x192xf32>
    %12 = arith.addf %8, %11 : vector<32x192xf32>
    %13 = vector.extract_strided_slice %12 {offsets = [0, 0], sizes = [32, 64], strides = [1, 1]} : vector<32x192xf32> to vector<32x64xf32>
    %cst_9 = arith.constant 0.353553385 : f32
    %14 = vector.broadcast %cst_9 : f32 to vector<32x64xf32>
    %15 = arith.mulf %13, %14 : vector<32x64xf32>
    %16 = vector.shape_cast %15 : vector<32x64xf32> to vector<4x8x64xf32>
    %17 = vector.extract_strided_slice %12 {offsets = [0, 64], sizes = [32, 64], strides = [1, 1]} : vector<32x192xf32> to vector<32x64xf32>
    %18 = vector.shape_cast %17 : vector<32x64xf32> to vector<4x8x64xf32>
    %19 = vector.extract_strided_slice %12 {offsets = [0, 128], sizes = [32, 64], strides = [1, 1]} : vector<32x192xf32> to vector<32x64xf32>
    %20 = vector.shape_cast %19 : vector<32x64xf32> to vector<4x8x64xf32>
    %21 = vector.extract_strided_slice %16 {offsets = [0, 0, 0], sizes = [4, 8, 8], strides = [1, 1, 1]} : vector<4x8x64xf32> to vector<4x8x8xf32>
    %22 = vector.extract_strided_slice %18 {offsets = [0, 0, 0], sizes = [4, 8, 8], strides = [1, 1, 1]} : vector<4x8x64xf32> to vector<4x8x8xf32>
    "tpu.trace_start"() <{level = 10 : i32, message = "tqd,tkd->tqk"}> : () -> ()
    %cst_10 = arith.constant dense<0.000000e+00> : vector<4x8x8xf32>
    %23 = tpu.matmul %21, %22, %cst_10 {dimension_numbers = #tpu.dot_dimension_numbers<[2], [2], [1], [1], [0, 0, 0, 1, 1, 1], [0], [0]>} : vector<4x8x8xf32>, vector<4x8x8xf32>, vector<4x8x8xf32> -> vector<4x8x8xf32>
    "tpu.trace_stop"() : () -> ()
    %cst_11 = arith.constant dense<0xFF800000> : vector<4x8xf32>
    %24 = vector.multi_reduction <maximumf>, %23, %cst_11 [2] : vector<4x8x8xf32> to vector<4x8xf32>
    %25 = vector.shape_cast %24 : vector<4x8xf32> to vector<4x8x1xf32>
    %26 = vector.broadcast %25 : vector<4x8x1xf32> to vector<4x8x8xf32>
    %27 = arith.subf %23, %26 : vector<4x8x8xf32>
    %28 = math.exp %27 : vector<4x8x8xf32>
    %cst_12 = arith.constant dense<0.000000e+00> : vector<4x8xf32>
    %29 = vector.multi_reduction <add>, %28, %cst_12 [2] : vector<4x8x8xf32> to vector<4x8xf32>
    %30 = vector.shape_cast %29 : vector<4x8xf32> to vector<4x8x1xf32>
    %31 = tpu.reciprocal %30 {approx = true} : vector<4x8x1xf32> -> vector<4x8x1xf32>
    %32 = vector.broadcast %31 : vector<4x8x1xf32> to vector<4x8x8xf32>
    %33 = arith.mulf %28, %32 : vector<4x8x8xf32>
    %34 = vector.extract_strided_slice %20 {offsets = [0, 0, 0], sizes = [4, 8, 8], strides = [1, 1, 1]} : vector<4x8x64xf32> to vector<4x8x8xf32>
    "tpu.trace_start"() <{level = 10 : i32, message = "tqk,tkd->tqd"}> : () -> ()
    %cst_13 = arith.constant dense<0.000000e+00> : vector<4x8x8xf32>
    %35 = tpu.matmul %33, %34, %cst_13 {dimension_numbers = #tpu.dot_dimension_numbers<[2], [1], [1], [2], [0, 0, 0, 1, 1, 2], [0], [0]>} : vector<4x8x8xf32>, vector<4x8x8xf32>, vector<4x8x8xf32> -> vector<4x8x8xf32>
    "tpu.trace_stop"() : () -> ()
    %36 = vector.extract_strided_slice %16 {offsets = [0, 0, 8], sizes = [4, 8, 8], strides = [1, 1, 1]} : vector<4x8x64xf32> to vector<4x8x8xf32>
    %37 = vector.extract_strided_slice %18 {offsets = [0, 0, 8], sizes = [4, 8, 8], strides = [1, 1, 1]} : vector<4x8x64xf32> to vector<4x8x8xf32>
    "tpu.trace_start"() <{level = 10 : i32, message = "tqd,tkd->tqk"}> : () -> ()
    %cst_14 = arith.constant dense<0.000000e+00> : vector<4x8x8xf32>
    %38 = tpu.matmul %36, %37, %cst_14 {dimension_numbers = #tpu.dot_dimension_numbers<[2], [2], [1], [1], [0, 0, 0, 1, 1, 1], [0], [0]>} : vector<4x8x8xf32>, vector<4x8x8xf32>, vector<4x8x8xf32> -> vector<4x8x8xf32>
    "tpu.trace_stop"() : () -> ()
    %cst_15 = arith.constant dense<0xFF800000> : vector<4x8xf32>
    %39 = vector.multi_reduction <maximumf>, %38, %cst_15 [2] : vector<4x8x8xf32> to vector<4x8xf32>
    %40 = vector.shape_cast %39 : vector<4x8xf32> to vector<4x8x1xf32>
    %41 = vector.broadcast %40 : vector<4x8x1xf32> to vector<4x8x8xf32>
    %42 = arith.subf %38, %41 : vector<4x8x8xf32>
    %43 = math.exp %42 : vector<4x8x8xf32>
    %cst_16 = arith.constant dense<0.000000e+00> : vector<4x8xf32>
    %44 = vector.multi_reduction <add>, %43, %cst_16 [2] : vector<4x8x8xf32> to vector<4x8xf32>
    %45 = vector.shape_cast %44 : vector<4x8xf32> to vector<4x8x1xf32>
    %46 = tpu.reciprocal %45 {approx = true} : vector<4x8x1xf32> -> vector<4x8x1xf32>
    %47 = vector.broadcast %46 : vector<4x8x1xf32> to vector<4x8x8xf32>
    %48 = arith.mulf %43, %47 : vector<4x8x8xf32>
    %49 = vector.extract_strided_slice %20 {offsets = [0, 0, 8], sizes = [4, 8, 8], strides = [1, 1, 1]} : vector<4x8x64xf32> to vector<4x8x8xf32>
    "tpu.trace_start"() <{level = 10 : i32, message = "tqk,tkd->tqd"}> : () -> ()
    %cst_17 = arith.constant dense<0.000000e+00> : vector<4x8x8xf32>
    %50 = tpu.matmul %48, %49, %cst_17 {dimension_numbers = #tpu.dot_dimension_numbers<[2], [1], [1], [2], [0, 0, 0, 1, 1, 2], [0], [0]>} : vector<4x8x8xf32>, vector<4x8x8xf32>, vector<4x8x8xf32> -> vector<4x8x8xf32>
    "tpu.trace_stop"() : () -> ()
    %51 = vector.extract_strided_slice %16 {offsets = [0, 0, 16], sizes = [4, 8, 8], strides = [1, 1, 1]} : vector<4x8x64xf32> to vector<4x8x8xf32>
    %52 = vector.extract_strided_slice %18 {offsets = [0, 0, 16], sizes = [4, 8, 8], strides = [1, 1, 1]} : vector<4x8x64xf32> to vector<4x8x8xf32>
    "tpu.trace_start"() <{level = 10 : i32, message = "tqd,tkd->tqk"}> : () -> ()
    %cst_18 = arith.constant dense<0.000000e+00> : vector<4x8x8xf32>
    %53 = tpu.matmul %51, %52, %cst_18 {dimension_numbers = #tpu.dot_dimension_numbers<[2], [2], [1], [1], [0, 0, 0, 1, 1, 1], [0], [0]>} : vector<4x8x8xf32>, vector<4x8x8xf32>, vector<4x8x8xf32> -> vector<4x8x8xf32>
    "tpu.trace_stop"() : () -> ()
    %cst_19 = arith.constant dense<0xFF800000> : vector<4x8xf32>
    %54 = vector.multi_reduction <maximumf>, %53, %cst_19 [2] : vector<4x8x8xf32> to vector<4x8xf32>
    %55 = vector.shape_cast %54 : vector<4x8xf32> to vector<4x8x1xf32>
    %56 = vector.broadcast %55 : vector<4x8x1xf32> to vector<4x8x8xf32>
    %57 = arith.subf %53, %56 : vector<4x8x8xf32>
    %58 = math.exp %57 : vector<4x8x8xf32>
    %cst_20 = arith.constant dense<0.000000e+00> : vector<4x8xf32>
    %59 = vector.multi_reduction <add>, %58, %cst_20 [2] : vector<4x8x8xf32> to vector<4x8xf32>
    %60 = vector.shape_cast %59 : vector<4x8xf32> to vector<4x8x1xf32>
    %61 = tpu.reciprocal %60 {approx = true} : vector<4x8x1xf32> -> vector<4x8x1xf32>
    %62 = vector.broadcast %61 : vector<4x8x1xf32> to vector<4x8x8xf32>
    %63 = arith.mulf %58, %62 : vector<4x8x8xf32>
    %64 = vector.extract_strided_slice %20 {offsets = [0, 0, 16], sizes = [4, 8, 8], strides = [1, 1, 1]} : vector<4x8x64xf32> to vector<4x8x8xf32>
    "tpu.trace_start"() <{level = 10 : i32, message = "tqk,tkd->tqd"}> : () -> ()
    %cst_21 = arith.constant dense<0.000000e+00> : vector<4x8x8xf32>
    %65 = tpu.matmul %63, %64, %cst_21 {dimension_numbers = #tpu.dot_dimension_numbers<[2], [1], [1], [2], [0, 0, 0, 1, 1, 2], [0], [0]>} : vector<4x8x8xf32>, vector<4x8x8xf32>, vector<4x8x8xf32> -> vector<4x8x8xf32>
    "tpu.trace_stop"() : () -> ()
    %66 = vector.extract_strided_slice %16 {offsets = [0, 0, 24], sizes = [4, 8, 8], strides = [1, 1, 1]} : vector<4x8x64xf32> to vector<4x8x8xf32>
    %67 = vector.extract_strided_slice %18 {offsets = [0, 0, 24], sizes = [4, 8, 8], strides = [1, 1, 1]} : vector<4x8x64xf32> to vector<4x8x8xf32>
    "tpu.trace_start"() <{level = 10 : i32, message = "tqd,tkd->tqk"}> : () -> ()
    %cst_22 = arith.constant dense<0.000000e+00> : vector<4x8x8xf32>
    %68 = tpu.matmul %66, %67, %cst_22 {dimension_numbers = #tpu.dot_dimension_numbers<[2], [2], [1], [1], [0, 0, 0, 1, 1, 1], [0], [0]>} : vector<4x8x8xf32>, vector<4x8x8xf32>, vector<4x8x8xf32> -> vector<4x8x8xf32>
    "tpu.trace_stop"() : () -> ()
    %cst_23 = arith.constant dense<0xFF800000> : vector<4x8xf32>
    %69 = vector.multi_reduction <maximumf>, %68, %cst_23 [2] : vector<4x8x8xf32> to vector<4x8xf32>
    %70 = vector.shape_cast %69 : vector<4x8xf32> to vector<4x8x1xf32>
    %71 = vector.broadcast %70 : vector<4x8x1xf32> to vector<4x8x8xf32>
    %72 = arith.subf %68, %71 : vector<4x8x8xf32>
    %73 = math.exp %72 : vector<4x8x8xf32>
    %cst_24 = arith.constant dense<0.000000e+00> : vector<4x8xf32>
    %74 = vector.multi_reduction <add>, %73, %cst_24 [2] : vector<4x8x8xf32> to vector<4x8xf32>
    %75 = vector.shape_cast %74 : vector<4x8xf32> to vector<4x8x1xf32>
    %76 = tpu.reciprocal %75 {approx = true} : vector<4x8x1xf32> -> vector<4x8x1xf32>
    %77 = vector.broadcast %76 : vector<4x8x1xf32> to vector<4x8x8xf32>
    %78 = arith.mulf %73, %77 : vector<4x8x8xf32>
    %79 = vector.extract_strided_slice %20 {offsets = [0, 0, 24], sizes = [4, 8, 8], strides = [1, 1, 1]} : vector<4x8x64xf32> to vector<4x8x8xf32>
    "tpu.trace_start"() <{level = 10 : i32, message = "tqk,tkd->tqd"}> : () -> ()
    %cst_25 = arith.constant dense<0.000000e+00> : vector<4x8x8xf32>
    %80 = tpu.matmul %78, %79, %cst_25 {dimension_numbers = #tpu.dot_dimension_numbers<[2], [1], [1], [2], [0, 0, 0, 1, 1, 2], [0], [0]>} : vector<4x8x8xf32>, vector<4x8x8xf32>, vector<4x8x8xf32> -> vector<4x8x8xf32>
    "tpu.trace_stop"() : () -> ()
    %81 = vector.extract_strided_slice %16 {offsets = [0, 0, 32], sizes = [4, 8, 8], strides = [1, 1, 1]} : vector<4x8x64xf32> to vector<4x8x8xf32>
    %82 = vector.extract_strided_slice %18 {offsets = [0, 0, 32], sizes = [4, 8, 8], strides = [1, 1, 1]} : vector<4x8x64xf32> to vector<4x8x8xf32>
    "tpu.trace_start"() <{level = 10 : i32, message = "tqd,tkd->tqk"}> : () -> ()
    %cst_26 = arith.constant dense<0.000000e+00> : vector<4x8x8xf32>
    %83 = tpu.matmul %81, %82, %cst_26 {dimension_numbers = #tpu.dot_dimension_numbers<[2], [2], [1], [1], [0, 0, 0, 1, 1, 1], [0], [0]>} : vector<4x8x8xf32>, vector<4x8x8xf32>, vector<4x8x8xf32> -> vector<4x8x8xf32>
    "tpu.trace_stop"() : () -> ()
    %cst_27 = arith.constant dense<0xFF800000> : vector<4x8xf32>
    %84 = vector.multi_reduction <maximumf>, %83, %cst_27 [2] : vector<4x8x8xf32> to vector<4x8xf32>
    %85 = vector.shape_cast %84 : vector<4x8xf32> to vector<4x8x1xf32>
    %86 = vector.broadcast %85 : vector<4x8x1xf32> to vector<4x8x8xf32>
    %87 = arith.subf %83, %86 : vector<4x8x8xf32>
    %88 = math.exp %87 : vector<4x8x8xf32>
    %cst_28 = arith.constant dense<0.000000e+00> : vector<4x8xf32>
    %89 = vector.multi_reduction <add>, %88, %cst_28 [2] : vector<4x8x8xf32> to vector<4x8xf32>
    %90 = vector.shape_cast %89 : vector<4x8xf32> to vector<4x8x1xf32>
    %91 = tpu.reciprocal %90 {approx = true} : vector<4x8x1xf32> -> vector<4x8x1xf32>
    %92 = vector.broadcast %91 : vector<4x8x1xf32> to vector<4x8x8xf32>
    %93 = arith.mulf %88, %92 : vector<4x8x8xf32>
    %94 = vector.extract_strided_slice %20 {offsets = [0, 0, 32], sizes = [4, 8, 8], strides = [1, 1, 1]} : vector<4x8x64xf32> to vector<4x8x8xf32>
    "tpu.trace_start"() <{level = 10 : i32, message = "tqk,tkd->tqd"}> : () -> ()
    %cst_29 = arith.constant dense<0.000000e+00> : vector<4x8x8xf32>
    %95 = tpu.matmul %93, %94, %cst_29 {dimension_numbers = #tpu.dot_dimension_numbers<[2], [1], [1], [2], [0, 0, 0, 1, 1, 2], [0], [0]>} : vector<4x8x8xf32>, vector<4x8x8xf32>, vector<4x8x8xf32> -> vector<4x8x8xf32>
    "tpu.trace_stop"() : () -> ()
    %96 = vector.extract_strided_slice %16 {offsets = [0, 0, 40], sizes = [4, 8, 8], strides = [1, 1, 1]} : vector<4x8x64xf32> to vector<4x8x8xf32>
    %97 = vector.extract_strided_slice %18 {offsets = [0, 0, 40], sizes = [4, 8, 8], strides = [1, 1, 1]} : vector<4x8x64xf32> to vector<4x8x8xf32>
    "tpu.trace_start"() <{level = 10 : i32, message = "tqd,tkd->tqk"}> : () -> ()
    %cst_30 = arith.constant dense<0.000000e+00> : vector<4x8x8xf32>
    %98 = tpu.matmul %96, %97, %cst_30 {dimension_numbers = #tpu.dot_dimension_numbers<[2], [2], [1], [1], [0, 0, 0, 1, 1, 1], [0], [0]>} : vector<4x8x8xf32>, vector<4x8x8xf32>, vector<4x8x8xf32> -> vector<4x8x8xf32>
    "tpu.trace_stop"() : () -> ()
    %cst_31 = arith.constant dense<0xFF800000> : vector<4x8xf32>
    %99 = vector.multi_reduction <maximumf>, %98, %cst_31 [2] : vector<4x8x8xf32> to vector<4x8xf32>
    %100 = vector.shape_cast %99 : vector<4x8xf32> to vector<4x8x1xf32>
    %101 = vector.broadcast %100 : vector<4x8x1xf32> to vector<4x8x8xf32>
    %102 = arith.subf %98, %101 : vector<4x8x8xf32>
    %103 = math.exp %102 : vector<4x8x8xf32>
    %cst_32 = arith.constant dense<0.000000e+00> : vector<4x8xf32>
    %104 = vector.multi_reduction <add>, %103, %cst_32 [2] : vector<4x8x8xf32> to vector<4x8xf32>
    %105 = vector.shape_cast %104 : vector<4x8xf32> to vector<4x8x1xf32>
    %106 = tpu.reciprocal %105 {approx = true} : vector<4x8x1xf32> -> vector<4x8x1xf32>
    %107 = vector.broadcast %106 : vector<4x8x1xf32> to vector<4x8x8xf32>
    %108 = arith.mulf %103, %107 : vector<4x8x8xf32>
    %109 = vector.extract_strided_slice %20 {offsets = [0, 0, 40], sizes = [4, 8, 8], strides = [1, 1, 1]} : vector<4x8x64xf32> to vector<4x8x8xf32>
    "tpu.trace_start"() <{level = 10 : i32, message = "tqk,tkd->tqd"}> : () -> ()
    %cst_33 = arith.constant dense<0.000000e+00> : vector<4x8x8xf32>
    %110 = tpu.matmul %108, %109, %cst_33 {dimension_numbers = #tpu.dot_dimension_numbers<[2], [1], [1], [2], [0, 0, 0, 1, 1, 2], [0], [0]>} : vector<4x8x8xf32>, vector<4x8x8xf32>, vector<4x8x8xf32> -> vector<4x8x8xf32>
    "tpu.trace_stop"() : () -> ()
    %111 = vector.extract_strided_slice %16 {offsets = [0, 0, 48], sizes = [4, 8, 8], strides = [1, 1, 1]} : vector<4x8x64xf32> to vector<4x8x8xf32>
    %112 = vector.extract_strided_slice %18 {offsets = [0, 0, 48], sizes = [4, 8, 8], strides = [1, 1, 1]} : vector<4x8x64xf32> to vector<4x8x8xf32>
    "tpu.trace_start"() <{level = 10 : i32, message = "tqd,tkd->tqk"}> : () -> ()
    %cst_34 = arith.constant dense<0.000000e+00> : vector<4x8x8xf32>
    %113 = tpu.matmul %111, %112, %cst_34 {dimension_numbers = #tpu.dot_dimension_numbers<[2], [2], [1], [1], [0, 0, 0, 1, 1, 1], [0], [0]>} : vector<4x8x8xf32>, vector<4x8x8xf32>, vector<4x8x8xf32> -> vector<4x8x8xf32>
    "tpu.trace_stop"() : () -> ()
    %cst_35 = arith.constant dense<0xFF800000> : vector<4x8xf32>
    %114 = vector.multi_reduction <maximumf>, %113, %cst_35 [2] : vector<4x8x8xf32> to vector<4x8xf32>
    %115 = vector.shape_cast %114 : vector<4x8xf32> to vector<4x8x1xf32>
    %116 = vector.broadcast %115 : vector<4x8x1xf32> to vector<4x8x8xf32>
    %117 = arith.subf %113, %116 : vector<4x8x8xf32>
    %118 = math.exp %117 : vector<4x8x8xf32>
    %cst_36 = arith.constant dense<0.000000e+00> : vector<4x8xf32>
    %119 = vector.multi_reduction <add>, %118, %cst_36 [2] : vector<4x8x8xf32> to vector<4x8xf32>
    %120 = vector.shape_cast %119 : vector<4x8xf32> to vector<4x8x1xf32>
    %121 = tpu.reciprocal %120 {approx = true} : vector<4x8x1xf32> -> vector<4x8x1xf32>
    %122 = vector.broadcast %121 : vector<4x8x1xf32> to vector<4x8x8xf32>
    %123 = arith.mulf %118, %122 : vector<4x8x8xf32>
    %124 = vector.extract_strided_slice %20 {offsets = [0, 0, 48], sizes = [4, 8, 8], strides = [1, 1, 1]} : vector<4x8x64xf32> to vector<4x8x8xf32>
    "tpu.trace_start"() <{level = 10 : i32, message = "tqk,tkd->tqd"}> : () -> ()
    %cst_37 = arith.constant dense<0.000000e+00> : vector<4x8x8xf32>
    %125 = tpu.matmul %123, %124, %cst_37 {dimension_numbers = #tpu.dot_dimension_numbers<[2], [1], [1], [2], [0, 0, 0, 1, 1, 2], [0], [0]>} : vector<4x8x8xf32>, vector<4x8x8xf32>, vector<4x8x8xf32> -> vector<4x8x8xf32>
    "tpu.trace_stop"() : () -> ()
    %126 = vector.extract_strided_slice %16 {offsets = [0, 0, 56], sizes = [4, 8, 8], strides = [1, 1, 1]} : vector<4x8x64xf32> to vector<4x8x8xf32>
    %127 = vector.extract_strided_slice %18 {offsets = [0, 0, 56], sizes = [4, 8, 8], strides = [1, 1, 1]} : vector<4x8x64xf32> to vector<4x8x8xf32>
    "tpu.trace_start"() <{level = 10 : i32, message = "tqd,tkd->tqk"}> : () -> ()
    %cst_38 = arith.constant dense<0.000000e+00> : vector<4x8x8xf32>
    %128 = tpu.matmul %126, %127, %cst_38 {dimension_numbers = #tpu.dot_dimension_numbers<[2], [2], [1], [1], [0, 0, 0, 1, 1, 1], [0], [0]>} : vector<4x8x8xf32>, vector<4x8x8xf32>, vector<4x8x8xf32> -> vector<4x8x8xf32>
    "tpu.trace_stop"() : () -> ()
    %cst_39 = arith.constant dense<0xFF800000> : vector<4x8xf32>
    %129 = vector.multi_reduction <maximumf>, %128, %cst_39 [2] : vector<4x8x8xf32> to vector<4x8xf32>
    %130 = vector.shape_cast %129 : vector<4x8xf32> to vector<4x8x1xf32>
    %131 = vector.broadcast %130 : vector<4x8x1xf32> to vector<4x8x8xf32>
    %132 = arith.subf %128, %131 : vector<4x8x8xf32>
    %133 = math.exp %132 : vector<4x8x8xf32>
    %cst_40 = arith.constant dense<0.000000e+00> : vector<4x8xf32>
    %134 = vector.multi_reduction <add>, %133, %cst_40 [2] : vector<4x8x8xf32> to vector<4x8xf32>
    %135 = vector.shape_cast %134 : vector<4x8xf32> to vector<4x8x1xf32>
    %136 = tpu.reciprocal %135 {approx = true} : vector<4x8x1xf32> -> vector<4x8x1xf32>
    %137 = vector.broadcast %136 : vector<4x8x1xf32> to vector<4x8x8xf32>
    %138 = arith.mulf %133, %137 : vector<4x8x8xf32>
    %139 = vector.extract_strided_slice %20 {offsets = [0, 0, 56], sizes = [4, 8, 8], strides = [1, 1, 1]} : vector<4x8x64xf32> to vector<4x8x8xf32>
    "tpu.trace_start"() <{level = 10 : i32, message = "tqk,tkd->tqd"}> : () -> ()
    %cst_41 = arith.constant dense<0.000000e+00> : vector<4x8x8xf32>
    %140 = tpu.matmul %138, %139, %cst_41 {dimension_numbers = #tpu.dot_dimension_numbers<[2], [1], [1], [2], [0, 0, 0, 1, 1, 2], [0], [0]>} : vector<4x8x8xf32>, vector<4x8x8xf32>, vector<4x8x8xf32> -> vector<4x8x8xf32>
    "tpu.trace_stop"() : () -> ()
    %141 = tpu.concatenate %35, %50, %65, %80, %95, %110, %125, %140 in 2 : vector<4x8x8xf32>, vector<4x8x8xf32>, vector<4x8x8xf32>, vector<4x8x8xf32>, vector<4x8x8xf32>, vector<4x8x8xf32>, vector<4x8x8xf32>, vector<4x8x8xf32> -> vector<4x8x64xf32>
    %142 = vector.shape_cast %141 : vector<4x8x64xf32> to vector<32x64xf32>
    %143 = arith.truncf %142 : vector<32x64xf32> to vector<32x64xbf16>
    %c0_42 = arith.constant 0 : index
    %c0_43 = arith.constant 0 : index
    %c0_44 = arith.constant 0 : index
    %144 = vector.load %arg5[%c0_42, %c0_43, %c0_44] : memref<1x64x64xbf16, #tpu.memory_space<vmem>>, vector<1x64x64xbf16>
    %145 = vector.shape_cast %144 : vector<1x64x64xbf16> to vector<64x64xbf16>
    %cst_45 = arith.constant dense<0.000000e+00> : vector<32x64xf32>
    %146 = tpu.matmul %143, %145, %cst_45 {dimension_numbers = #tpu.dot_dimension_numbers<[1], [0], [0], [1], [0, 0, 1, 1], [], []>} : vector<32x64xbf16>, vector<64x64xbf16>, vector<32x64xf32> -> vector<32x64xf32>
    %c0_46 = arith.constant 0 : index
    %c0_47 = arith.constant 0 : index
    %c0_48 = arith.constant 0 : index
    %147 = vector.load %arg6[%c0_46, %c0_47, %c0_48] : memref<1x1x64xf32, #tpu.memory_space<vmem>>, vector<1x1x64xf32>
    %148 = vector.shape_cast %147 : vector<1x1x64xf32> to vector<1x64xf32>
    %149 = vector.broadcast %148 : vector<1x64xf32> to vector<32x64xf32>
    %150 = arith.addf %146, %149 : vector<32x64xf32>
    %151 = arith.addf %4, %150 : vector<32x64xf32>
    %c0_49 = arith.constant 0 : index
    %c0_50 = arith.constant 0 : index
    %c0_51 = arith.constant 0 : index
    %152 = vector.load %arg7[%c0_49, %c0_50, %c0_51] : memref<1x1x64xf32, #tpu.memory_space<vmem>>, vector<1x1x64xf32>
    %153 = vector.shape_cast %152 : vector<1x1x64xf32> to vector<1x64xf32>
    %c0_52 = arith.constant 0 : index
    %c0_53 = arith.constant 0 : index
    %c0_54 = arith.constant 0 : index
    %154 = vector.load %arg8[%c0_52, %c0_53, %c0_54] : memref<1x1x64xf32, #tpu.memory_space<vmem>>, vector<1x1x64xf32>
    %155 = vector.shape_cast %154 : vector<1x1x64xf32> to vector<1x64xf32>
    %cst_55 = arith.constant dense<0.000000e+00> : vector<32xf32>
    %156 = vector.multi_reduction <add>, %151, %cst_55 [1] : vector<32x64xf32> to vector<32xf32>
    %157 = vector.shape_cast %156 : vector<32xf32> to vector<32x1xf32>
    %cst_56 = arith.constant 6.400000e+01 : f32
    %158 = vector.broadcast %cst_56 : f32 to vector<32x1xf32>
    %159 = arith.divf %157, %158 : vector<32x1xf32>
    %160 = vector.broadcast %159 : vector<32x1xf32> to vector<32x64xf32>
    %161 = arith.subf %151, %160 : vector<32x64xf32>
    %162 = arith.mulf %161, %161 : vector<32x64xf32>
    %cst_57 = arith.constant dense<0.000000e+00> : vector<32xf32>
    %163 = vector.multi_reduction <add>, %162, %cst_57 [1] : vector<32x64xf32> to vector<32xf32>
    %164 = vector.shape_cast %163 : vector<32xf32> to vector<32x1xf32>
    %cst_58 = arith.constant 6.400000e+01 : f32
    %165 = vector.broadcast %cst_58 : f32 to vector<32x1xf32>
    %166 = arith.divf %164, %165 : vector<32x1xf32>
    %cst_59 = arith.constant 9.99999974E-6 : f32
    %167 = vector.broadcast %cst_59 : f32 to vector<32x1xf32>
    %168 = arith.addf %166, %167 : vector<32x1xf32>
    %169 = math.rsqrt %168 : vector<32x1xf32>
    %170 = vector.broadcast %169 : vector<32x1xf32> to vector<32x64xf32>
    %171 = arith.mulf %161, %170 : vector<32x64xf32>
    %172 = vector.broadcast %153 : vector<1x64xf32> to vector<32x64xf32>
    %173 = arith.mulf %171, %172 : vector<32x64xf32>
    %174 = vector.broadcast %155 : vector<1x64xf32> to vector<32x64xf32>
    %175 = arith.addf %173, %174 : vector<32x64xf32>
    %176 = arith.truncf %175 : vector<32x64xf32> to vector<32x64xbf16>
    %c0_60 = arith.constant 0 : index
    %c0_61 = arith.constant 0 : index
    %c0_62 = arith.constant 0 : index
    %177 = vector.load %arg9[%c0_60, %c0_61, %c0_62] : memref<1x64x2048xbf16, #tpu.memory_space<vmem>>, vector<1x64x2048xbf16>
    %178 = vector.shape_cast %177 : vector<1x64x2048xbf16> to vector<64x2048xbf16>
    %cst_63 = arith.constant dense<0.000000e+00> : vector<32x2048xf32>
    %179 = tpu.matmul %176, %178, %cst_63 {dimension_numbers = #tpu.dot_dimension_numbers<[1], [0], [0], [1], [0, 0, 1, 1], [], []>} : vector<32x64xbf16>, vector<64x2048xbf16>, vector<32x2048xf32> -> vector<32x2048xf32>
    %c0_64 = arith.constant 0 : index
    %c0_65 = arith.constant 0 : index
    %c0_66 = arith.constant 0 : index
    %180 = vector.load %arg10[%c0_64, %c0_65, %c0_66] : memref<1x1x2048xf32, #tpu.memory_space<vmem>>, vector<1x1x2048xf32>
    %181 = vector.shape_cast %180 : vector<1x1x2048xf32> to vector<1x2048xf32>
    %182 = vector.broadcast %181 : vector<1x2048xf32> to vector<32x2048xf32>
    %183 = arith.addf %179, %182 : vector<32x2048xf32>
    %cst_67 = arith.constant 0.000000e+00 : f32
    %184 = vector.broadcast %cst_67 : f32 to vector<32x2048xf32>
    %185 = arith.maximumf %183, %184 : vector<32x2048xf32>
    %186 = arith.truncf %185 : vector<32x2048xf32> to vector<32x2048xbf16>
    %c0_68 = arith.constant 0 : index
    %c0_69 = arith.constant 0 : index
    %c0_70 = arith.constant 0 : index
    %187 = vector.load %arg11[%c0_68, %c0_69, %c0_70] : memref<1x2048x64xbf16, #tpu.memory_space<vmem>>, vector<1x2048x64xbf16>
    %188 = vector.shape_cast %187 : vector<1x2048x64xbf16> to vector<2048x64xbf16>
    %cst_71 = arith.constant dense<0.000000e+00> : vector<32x64xf32>
    %189 = tpu.matmul %186, %188, %cst_71 {dimension_numbers = #tpu.dot_dimension_numbers<[1], [0], [0], [1], [0, 0, 1, 1], [], []>} : vector<32x2048xbf16>, vector<2048x64xbf16>, vector<32x64xf32> -> vector<32x64xf32>
    %c0_72 = arith.constant 0 : index
    %c0_73 = arith.constant 0 : index
    %c0_74 = arith.constant 0 : index
    %190 = vector.load %arg12[%c0_72, %c0_73, %c0_74] : memref<1x1x64xf32, #tpu.memory_space<vmem>>, vector<1x1x64xf32>
    %191 = vector.shape_cast %190 : vector<1x1x64xf32> to vector<1x64xf32>
    %192 = vector.broadcast %191 : vector<1x64xf32> to vector<32x64xf32>
    %193 = arith.addf %189, %192 : vector<32x64xf32>
    %194 = arith.addf %175, %193 : vector<32x64xf32>
    %c0_75 = arith.constant 0 : index
    %c0_76 = arith.constant 0 : index
    %c0_77 = arith.constant 0 : index
    %195 = vector.load %arg13[%c0_75, %c0_76, %c0_77] : memref<1x1x64xf32, #tpu.memory_space<vmem>>, vector<1x1x64xf32>
    %196 = vector.shape_cast %195 : vector<1x1x64xf32> to vector<1x64xf32>
    %c0_78 = arith.constant 0 : index
    %c0_79 = arith.constant 0 : index
    %c0_80 = arith.constant 0 : index
    %197 = vector.load %arg14[%c0_78, %c0_79, %c0_80] : memref<1x1x64xf32, #tpu.memory_space<vmem>>, vector<1x1x64xf32>
    %198 = vector.shape_cast %197 : vector<1x1x64xf32> to vector<1x64xf32>
    %cst_81 = arith.constant dense<0.000000e+00> : vector<32xf32>
    %199 = vector.multi_reduction <add>, %194, %cst_81 [1] : vector<32x64xf32> to vector<32xf32>
    %200 = vector.shape_cast %199 : vector<32xf32> to vector<32x1xf32>
    %cst_82 = arith.constant 6.400000e+01 : f32
    %201 = vector.broadcast %cst_82 : f32 to vector<32x1xf32>
    %202 = arith.divf %200, %201 : vector<32x1xf32>
    %203 = vector.broadcast %202 : vector<32x1xf32> to vector<32x64xf32>
    %204 = arith.subf %194, %203 : vector<32x64xf32>
    %205 = arith.mulf %204, %204 : vector<32x64xf32>
    %cst_83 = arith.constant dense<0.000000e+00> : vector<32xf32>
    %206 = vector.multi_reduction <add>, %205, %cst_83 [1] : vector<32x64xf32> to vector<32xf32>
    %207 = vector.shape_cast %206 : vector<32xf32> to vector<32x1xf32>
    %cst_84 = arith.constant 6.400000e+01 : f32
    %208 = vector.broadcast %cst_84 : f32 to vector<32x1xf32>
    %209 = arith.divf %207, %208 : vector<32x1xf32>
    %cst_85 = arith.constant 9.99999974E-6 : f32
    %210 = vector.broadcast %cst_85 : f32 to vector<32x1xf32>
    %211 = arith.addf %209, %210 : vector<32x1xf32>
    %212 = math.rsqrt %211 : vector<32x1xf32>
    %213 = vector.broadcast %212 : vector<32x1xf32> to vector<32x64xf32>
    %214 = arith.mulf %204, %213 : vector<32x64xf32>
    %215 = vector.broadcast %196 : vector<1x64xf32> to vector<32x64xf32>
    %216 = arith.mulf %214, %215 : vector<32x64xf32>
    %217 = vector.broadcast %198 : vector<1x64xf32> to vector<32x64xf32>
    %218 = arith.addf %216, %217 : vector<32x64xf32>
    %219 = vector.shape_cast %218 : vector<32x64xf32> to vector<4x8x64xf32>
    %c0_86 = arith.constant 0 : index
    %c0_87 = arith.constant 0 : index
    %c0_88 = arith.constant 0 : index
    %220 = vector.load %arg16[%c0_86, %c0_87, %c0_88] : memref<4x8x64xf32, #tpu.memory_space<vmem>>, vector<4x8x64xf32>
    tpu.vector_store %arg16[%c0_86, %c0_87, %c0_88], %219 {strides = array<i32>} : memref<4x8x64xf32, #tpu.memory_space<vmem>>, vector<4x8x64xf32>,
    %c5_i32 = arith.constant 5 : i32
    %221 = arith.cmpi eq, %arg1, %c5_i32 : i32
    %222 = arith.extui %221 : i1 to i32
    %c0_i32_89 = arith.constant 0 : i32
    %223 = arith.cmpi ne, %222, %c0_i32_89 : i32
    scf.if %223 {
      %224 = vector.shape_cast %218 : vector<32x64xf32> to vector<4x8x64xf32>
      %c0_90 = arith.constant 0 : index
      %c0_91 = arith.constant 0 : index
      %c0_92 = arith.constant 0 : index
      %225 = vector.load %arg15[%c0_90, %c0_91, %c0_92] : memref<4x8x64xf32, #tpu.memory_space<vmem>>, vector<4x8x64xf32>
      tpu.vector_store %arg15[%c0_90, %c0_91, %c0_92], %224 {strides = array<i32>} : memref<4x8x64xf32, #tpu.memory_space<vmem>>, vector<4x8x64xf32>,
    } else {
    }
    return
  }
  func.func @transform_0(%arg0: i32, %arg1: i32) -> (i32, i32, i32) {
    %c0_i32 = arith.constant 0 : i32
    %c0_i32_0 = arith.constant 0 : i32
    %c0_i32_1 = arith.constant 0 : i32
    return %arg0, %c0_i32, %c0_i32_0 : i32, i32, i32
  }
  func.func @transform_1(%arg0: i32, %arg1: i32) -> (i32, i32, i32) {
    %c0_i32 = arith.constant 0 : i32
    %c0_i32_0 = arith.constant 0 : i32
    %c0_i32_1 = arith.constant 0 : i32
    return %arg1, %c0_i32, %c0_i32_0 : i32, i32, i32
  }
  func.func @transform_2(%arg0: i32, %arg1: i32) -> (i32, i32, i32) {
    %c0_i32 = arith.constant 0 : i32
    %c0_i32_0 = arith.constant 0 : i32
    %c0_i32_1 = arith.constant 0 : i32
    return %arg1, %c0_i32, %c0_i32_0 : i32, i32, i32
  }
  func.func @transform_3(%arg0: i32, %arg1: i32) -> (i32, i32, i32) {
    %c0_i32 = arith.constant 0 : i32
    %c0_i32_0 = arith.constant 0 : i32
    %c0_i32_1 = arith.constant 0 : i32
    return %arg1, %c0_i32, %c0_i32_0 : i32, i32, i32
  }
  func.func @transform_4(%arg0: i32, %arg1: i32) -> (i32, i32, i32) {
    %c0_i32 = arith.constant 0 : i32
    %c0_i32_0 = arith.constant 0 : i32
    %c0_i32_1 = arith.constant 0 : i32
    return %arg1, %c0_i32, %c0_i32_0 : i32, i32, i32
  }
  func.func @transform_5(%arg0: i32, %arg1: i32) -> (i32, i32, i32) {
    %c0_i32 = arith.constant 0 : i32
    %c0_i32_0 = arith.constant 0 : i32
    %c0_i32_1 = arith.constant 0 : i32
    return %arg1, %c0_i32, %c0_i32_0 : i32, i32, i32
  }
  func.func @transform_6(%arg0: i32, %arg1: i32) -> (i32, i32, i32) {
    %c0_i32 = arith.constant 0 : i32
    %c0_i32_0 = arith.constant 0 : i32
    %c0_i32_1 = arith.constant 0 : i32
    return %arg1, %c0_i32, %c0_i32_0 : i32, i32, i32
  }
  func.func @transform_7(%arg0: i32, %arg1: i32) -> (i32, i32, i32) {
    %c0_i32 = arith.constant 0 : i32
    %c0_i32_0 = arith.constant 0 : i32
    %c0_i32_1 = arith.constant 0 : i32
    return %arg1, %c0_i32, %c0_i32_0 : i32, i32, i32
  }
  func.func @transform_8(%arg0: i32, %arg1: i32) -> (i32, i32, i32) {
    %c0_i32 = arith.constant 0 : i32
    %c0_i32_0 = arith.constant 0 : i32
    %c0_i32_1 = arith.constant 0 : i32
    return %arg1, %c0_i32, %c0_i32_0 : i32, i32, i32
  }
  func.func @transform_9(%arg0: i32, %arg1: i32) -> (i32, i32, i32) {
    %c0_i32 = arith.constant 0 : i32
    %c0_i32_0 = arith.constant 0 : i32
    %c0_i32_1 = arith.constant 0 : i32
    return %arg1, %c0_i32, %c0_i32_0 : i32, i32, i32
  }
  func.func @transform_10(%arg0: i32, %arg1: i32) -> (i32, i32, i32) {
    %c0_i32 = arith.constant 0 : i32
    %c0_i32_0 = arith.constant 0 : i32
    %c0_i32_1 = arith.constant 0 : i32
    return %arg1, %c0_i32, %c0_i32_0 : i32, i32, i32
  }
  func.func @transform_11(%arg0: i32, %arg1: i32) -> (i32, i32, i32) {
    %c0_i32 = arith.constant 0 : i32
    %c0_i32_0 = arith.constant 0 : i32
    %c0_i32_1 = arith.constant 0 : i32
    return %arg1, %c0_i32, %c0_i32_0 : i32, i32, i32
  }
  func.func @transform_12(%arg0: i32, %arg1: i32) -> (i32, i32, i32) {
    %c0_i32 = arith.constant 0 : i32
    %c0_i32_0 = arith.constant 0 : i32
    %c0_i32_1 = arith.constant 0 : i32
    return %arg1, %c0_i32, %c0_i32_0 : i32, i32, i32
  }
  func.func @transform_13(%arg0: i32, %arg1: i32) -> (i32, i32, i32) {
    %c0_i32 = arith.constant 0 : i32
    %c0_i32_0 = arith.constant 0 : i32
    %c0_i32_1 = arith.constant 0 : i32
    return %arg0, %c0_i32, %c0_i32_0 : i32, i32, i32
  }
}

</mosaic_0001>

<bundles_post_ra>
// kernel: forward.1
= control target key start
LH: loop header
LB: loop body
LE: loop exit
PB: predicated region body
PF: predicated region fallthrough
CT: control target
= control target key end

     0   :  { %s7311_s25 = smov 0   ;;  %s7313_s26 = smov 0   ;;  %s8512_s0 = inlined_call_operand.vmem [shape: f32[8,8,64], index: 0, kind: input, shape index: {}]   ;;  %s8513_s1 = inlined_call_operand.vmem [shape: bf16[6,64,192], index: 1, kind: input, shape index: {}]   ;;  %s8514_s2 = inlined_call_operand.vmem [shape: f32[6,1,192], index: 2, kind: input, shape index: {}]   ;;  %s8515_s3 = inlined_call_operand.vmem [shape: bf16[6,64,64], index: 3, kind: input, shape index: {}]   ;;  %s8516_s4 = inlined_call_operand.vmem [shape: f32[6,1,64], index: 4, kind: input, shape index: {}]   ;;  %s8517_s5 = inlined_call_operand.vmem [shape: f32[6,1,64], index: 5, kind: input, shape index: {}]   ;;  %s8518_s6 = inlined_call_operand.vmem [shape: f32[6,1,64], index: 6, kind: input, shape index: {}]   ;;  %s8519_s7 = inlined_call_operand.vmem [shape: bf16[6,64,2048], index: 7, kind: input, shape index: {}]   ;;  %s8520_s8 = inlined_call_operand.vmem [shape: f32[6,1,2048], index: 8, kind: input, shape index: {}]   ;;  %s8521_s9 = inlined_call_operand.vmem [shape: bf16[6,2048,64], index: 9, kind: input, shape index: {}]   ;;  %s8522_s10 = inlined_call_operand.vmem [shape: f32[6,1,64], index: 10, kind: input, shape index: {}]   ;;  %s8523_s11 = inlined_call_operand.vmem [shape: f32[6,1,64], index: 11, kind: input, shape index: {}]   ;;  %s8524_s12 = inlined_call_operand.vmem [shape: f32[6,1,64], index: 12, kind: input, shape index: {}]   ;;  %s8525_s13 = inlined_call_operand.vmem [shape: f32[8,8,64], index: 13, kind: output, shape index: {}]  }
   0x1   :  { %8530 = sst [smem:[#allocation10_spill]] %s8512_s0  ;;  %s7315_s27 = smov 0  }
   0x2   :  { %8531 = sst [smem:[#allocation11_spill]] %s8513_s1  ;;  %s7317_s28 = smov 0  }
   0x3   :  { %8532 = sst [smem:[#allocation12_spill]] %s8514_s2  ;;  %s7319_s29 = smov 0  }
   0x4   :  { %8533 = sst [smem:[#allocation13_spill]] %s8515_s3 }
   0x5   :  { %8534 = sst [smem:[#allocation14_spill]] %s8519_s7 }
   0x6   :  { %8535 = sst [smem:[#allocation15_spill]] %s8520_s8 }
   0x7   :  { %8536 = sst [smem:[#allocation16_spill]] %s8525_s13 }
   0x8 LB: > { %8537 = sst [smem:[#allocation3_spill]] %s7207_s25  ;;  %s32_s30 = sadd.s32 1, %s7215_s27  ;;  %s7223_s29 = sphi %s7319_s29, %s23_s29   ;;  %s7219_s28 = sphi %s7317_s28, %s8565_s28   ;;  %s7215_s27 = sphi %s7315_s27, %s8564_s27   ;;  %s7211_s26 = sphi %s7313_s26, %s8563_s26   ;;  %s7207_s25 = sphi %s7311_s25, %s8562_s25  }
   0x9   : > { %8538 = sst [smem:[#allocation4_spill]] %s7215_s27  ;;  %s35_s14 = sadd.s32 1, %s7219_s28 }
   0xa   : > { %8539 = sst [smem:[#allocation5_spill]] %s7219_s28  ;;  %p33_p0 = scmp.ge.s32.totalorder %s32_s30, 6 }
   0xb   : > { %8540 = sst [smem:[#allocation6_spill]] %s7223_s29  ;;  %p5652_p1 = scmp.ge.s32.totalorder %s7223_s29, 1 }
   0xc   : > { %p506_p2 = scmp.lt.s32.totalorder %s7223_s29, 13  ;;  %s8567_s30 = smov (%p33_p0, %s32_s30), 0 }
   0xd   : > { %8541 = sst [smem:[#allocation7_spill]] %s8567_s30  ;;  %s8569_s14 = smov (!%p33_p0, %s35_s14), %s7219_s28 }
   0xe   : > { %p507_p3 = pnand %p5652_p1, %p506_p2  ;;  %p37_p4 = scmp.ge.s32.totalorder %s8569_s14, 2 }
  0x10   : > { %s8571_s14 = smov (%p37_p4, %s8569_s14), 0  ;;  %510 = sbr.rel (%p507_p3) target bundleno = 5245 (0x147d), region = 72 }
  0x11   : > { %8542 = sst [smem:[#allocation8_spill]] %s8571_s14 }
  0x15   : > { %s5653_s15 = sshll.u32 %s7211_s26, 2  ;;  %p602_p5 = scmp.lt.s32.totalorder %s7207_s25, 5 }
  0x16   : > { %p597_p6 = scmp.lt.s32.totalorder %s5653_s15, 7  ;;  %s8543_s1 = sld [smem:[#allocation11_spill]] }
  0x17   : > { %s7345_s16 = scalar_select %p602_p5, %s7207_s25, 5 }
  0x18   : > { %s8573_s15 = smov (!%p597_p6, %s5653_s15), 7  ;;  %s8544_s0 = sld [smem:[#allocation10_spill]] }
  0x19   : > { %s6621_s17 = sshll.u32 %s7345_s16, 6  ;;  %s5657_s18 = sshll.u32 %s7345_s16, 1 }
  0x1a   : > { %s5654_s19 = sshll.u32 %s8573_s15, 3  ;;  %s8545_s2 = sld [smem:[#allocation12_spill]] }
  0x1b   : > { %s6622_s27 = sshll.u32 %s7345_s16, 5  ;;  %s8547_s3 = sld [smem:[#allocation13_spill]] }
  0x1c   : > { %s7352_s22 = scalar_lea.vmem %s8543_s1, %s6621_s17  ;;  %s6623_s14 = sshll.u32 %s7345_s16, 9 }
  0x1d   : > { %s8548_s7 = sld [smem:[#allocation14_spill]]  ;;  %s5662_s25 = sshll.u32 %s7345_s16, 4 }
  0x1e   : > { %s600_s26 = scalar_lea.vmem %s8544_s0, %s5654_s19  ;;  %s8549_s8 = sld [smem:[#allocation15_spill]] }
  0x1f   : > { %s641_s30 = scalar_lea.vmem %s8522_s10, %s7345_s16  ;;  %s647_s15 = scalar_lea.vmem %s8524_s12, %s7345_s16 }
  0x20   : > { %s7360_s28 = scalar_lea.vmem %s8545_s2, %s5657_s18  ;;  %s8551_s20 = sld [smem:[#allocation3_spill]] }
  0x21   : > { %8546 = sst [smem:[#allocation9_spill]] %s7360_s28  ;;  %s7370_s17 = scalar_lea.vmem %s8547_s3, %s6622_s27 }
  0x22   : > { %s6624_s27 = sshll.u32 %s7345_s16, 10 }
  0x23   : > { %s7384_s28 = scalar_lea.vmem %s8548_s7, %s6623_s14  ;;  %s7396_s21 = scalar_lea.vmem %s8521_s9, %s6624_s27 }
  0x24   : > { %s7390_s13 = scalar_lea.vmem %s8549_s8, %s5662_s25  ;;  %s644_s14 = scalar_lea.vmem %s8523_s11, %s7345_s16 }
  0x25   : > { %s8550_s7 = sld [smem:[#allocation16_spill]] }
  0x26   : > { %p5667_p7 = scmp.ne.s32.totalorder %s8551_s20, 0 }
  0x28   : > { %658 = sbr.rel (%p5667_p7) target bundleno = 50 (0x32), region = 76 }
  0x2b   : > { %s7413_s8 = scalar_lea.vmem %s8550_s7, %s5654_s19 }
  0x2d   : > { %v659_v0 = vld [vmem:[%s600_s26] sm:$0xff]  ;;  %vm663_vm0 = vcmask 523264   ;;  %v660_v1 = vld [vmem:[%s600_s26 + $0x8] sm:$0xff]  ;;  %v661_v2 = vld [vmem:[%s600_s26 + $0x10] sm:$0xff] }
  0x2e   : > { %664 = vst.msk [vmem:[#allocation2] sm:$0xff] %vm663_vm0, %v659_v0  ;;  %v662_v3 = vld [vmem:[%s600_s26 + $0x18] sm:$0xff] }
  0x2f   : > { %665 = vst.msk [vmem:[#allocation2 + $0x8] sm:$0xff] %vm663_vm0, %v660_v1 }
  0x30   : > { %666 = vst.msk [vmem:[#allocation2 + $0x10] sm:$0xff] %vm663_vm0, %v661_v2 }
  0x31   : > { %667 = vst.msk [vmem:[#allocation2 + $0x18] sm:$0xff] %vm663_vm0, %v662_v3 }
  0x32 PF: > { %v5694_v4 = vld [vmem:[%s7352_s22 + $0x30] sm:$0xf]  ;;  %v6632_v5 = vld [vmem:[%s7352_s22 + $0x34] sm:$0xf0]  ;;  %v5686_v6 = vld [vmem:[%s7352_s22 + $0x20] sm:$0xf] }
  0x33   : > { %v5695_v7 = vor.u32 %v6632_v5, %v5694_v4  ;;  %v6630_v8 = vld [vmem:[%s7352_s22 + $0x24] sm:$0xf0]  ;;  %v5678_v10 = vld [vmem:[%s7352_s22 + $0x10] sm:$0xf]  ;;  %v6628_v11 = vld [vmem:[%s7352_s22 + $0x14] sm:$0xf0] }
  0x34   : > { %v5687_v9 = vor.u32 %v6630_v8, %v5686_v6  ;;  %v5679_v12 = vor.u32 %v6628_v11, %v5678_v10  ;;  %v5670_v13 = vld [vmem:[%s7352_s22] sm:$0xf]  ;;  %s8552_s3 = sld [smem:[#allocation9_spill]]  ;;  %v6626_v14 = vld [vmem:[%s7352_s22 + $0x4] sm:$0xf0]  ;;  %vm728_vm1 = vcmask 523264  }
  0x35   : > { %739 = vmatpush.bf16.msra.mxu0 %v5695_v7  ;;  %6829 = vmatpush.bf16.msra.mxu1 %v5695_v7  ;;  %v668_v15 = vld [vmem:[#allocation2] sm:$0xff]  ;;  %v5671_v16 = vor.u32 %v6626_v14, %v5670_v13  ;;  %s7225_s7 = smov 64   ;;  %vm780_vm2 = vcmask 64512   ;;  %v6631_v48 = vld [vmem:[%s7352_s22 + $0x34] sm:$0xf]  ;;  %s7226_s19 = smov 56  }
  0x36   : > { %v669_v17 = vld [vmem:[#allocation2 + $0x8] sm:$0xff]  ;;  %v5696_v49 = vld [vmem:[%s7352_s22 + $0x38] sm:$0xf0]  ;;  %v6629_v50 = vld [vmem:[%s7352_s22 + $0x24] sm:$0xf]  ;;  %s7227_s26 = smov 120  }
  0x37   : > { %v670_v18 = vld [vmem:[#allocation2 + $0x10] sm:$0xff]  ;;  %v7424_v20 = vpack.c.bf16 %v669_v17, %v668_v15  ;;  %v5699_v51 = vor.u32 %v6631_v48, %v5696_v49  ;;  %v5688_v52 = vld [vmem:[%s7352_s22 + $0x28] sm:$0xf0]  ;;  %v5680_v55 = vld [vmem:[%s7352_s22 + $0x18] sm:$0xf0]  ;;  %s7229_s23 = smov 112  }
  0x38   : > { %v671_v19 = vld [vmem:[#allocation2 + $0x18] sm:$0xff]  ;;  %v5691_v53 = vor.u32 %v6629_v50, %v5688_v52  ;;  %v6627_v54 = vld [vmem:[%s7352_s22 + $0x14] sm:$0xf]  ;;  %v6625_v57 = vld [vmem:[%s7352_s22 + $0x4] sm:$0xf]  ;;  %s7230_s27 = smov 40  }
  0x39   : > { %740 = vmatpush.bf16.msra.mxu0 %v5687_v9  ;;  %6830 = vmatpush.bf16.msra.mxu1 %v5687_v9  ;;  %v7426_v21 = vpack.c.bf16 %v671_v19, %v670_v18  ;;  %v5683_v56 = vor.u32 %v6627_v54, %v5680_v55  ;;  %v5672_v58 = vld [vmem:[%s7352_s22 + $0x8] sm:$0xf0]  ;;  %s7228_s22 = smov 48   ;;  %s7231_s1 = smov 104   ;;  %vm2966_vm3 = vcmask 130048   ;;  %vm2971_vm4 = vcmask 195584  }
  0x3a   : > { %v7433_v22 = vld [vmem:[%s8552_s3] sm:$0x3]  ;;  %v5675_v59 = vor.u32 %v6625_v57, %v5672_v58  ;;  %s7232_s0 = smov 96   ;;  %s7233_s24 = smov 32   ;;  %vm2976_vm5 = vcmask 261120   ;;  %vm2981_vm6 = vcmask 326656  }
  0x3b   : > { %v684_v23 = vperm.slane %v7433_v22, 0  ;;  %s7234_s2 = smov 24   ;;  %s7235_s18 = smov 88   ;;  %vm2986_vm7 = vcmask 392192   ;;  %vm2991_vm8 = vcmask 457728  }
  0x3c   : > { %s7236_s25 = smov 16   ;;  %s7237_s29 = smov 80  }
  0x3d   : > { %741 = vmatpush.bf16.msra.mxu0 %v5679_v12  ;;  %6831 = vmatpush.bf16.msra.mxu1 %v5679_v12  ;;  %s7238_s20 = smov 8   ;;  %s7239_s3 = smov 72  }
  0x41   : > { %742 = vmatpush.bf16.msra.mxu0 %v5671_v16  ;;  %6832 = vmatpush.bf16.msra.mxu1 %v5671_v16  ;;  %v685_v16 = vperm.slane %v7433_v22, 1 }
  0x44   : > { %5700 = vmatmul.msk.bf16.vlgmr.msra.gmra.mxu0 %vm728_vm1, %v7424_v20  ;;  %5701 = vmatmul.msk.bf16.vlgmr.msra.gmra.mxu1 %vm728_vm1, %v7426_v21 }
  0x45   : > { %758 = vmatpush.bf16.msrb.mxu1 %v5699_v51 }
  0x49   : > { %759 = vmatpush.bf16.msrb.mxu1 %v5691_v53 }
  0x4d   : > { %760 = vmatpush.bf16.msrb.mxu1 %v5683_v56 }
  0x51   : > { %761 = vmatpush.bf16.msrb.mxu1 %v5675_v59 }
  0x54   : > { %5702 = vmatmul.msk.bf16.vlgmr.msrb.gmra.mxu1 %vm728_vm1, %v7424_v20 }
  0x64   : > { %5703 = vmatmul.msk.bf16.gmra.mxu1 %vm728_vm1, %v7426_v21 }
  0xc1   : > { %v744_v24 = vpop.f32.mrf.mxu0  ;;  %v749_v25 = vpop.f32.mrf.mxu1 }
  0xc2   : > { %v7436_v26 = vadd.f32 %v744_v24, %v684_v23  ;;  %v7438_v27 = vadd.f32 %v749_v25, %v684_v23 }
  0xc4   : > { %778 = vrot.lane.b32.xlu0 %v7436_v26, %s7225_s7  ;;  %835 = vrot.lane.b32.xlu1 %v7438_v27, %s7225_s7  ;;  %v7450_v34 = vmul.f32 0.35355338, %v7436_v26  ;;  %v7460_v38 = vmul.f32 0.35355338, %v7438_v27 }
  0xc9   : > { %v746_v28 = vpop.f32.mrf.mxu0  ;;  %v751_v29 = vpop.f32.mrf.mxu1 }
  0xca   : > { %v7442_v30 = vadd.f32 %v746_v28, %v684_v23  ;;  %v7444_v31 = vadd.f32 %v751_v29, %v684_v23 }
  0xcc   : > { %807 = vrot.lane.b32.xlu0 %v7442_v30, %s7225_s7  ;;  %863 = vrot.lane.b32.xlu1 %v7444_v31, %s7225_s7  ;;  %v7457_v37 = vmul.f32 0.35355338, %v7442_v30  ;;  %v7468_v39 = vmul.f32 0.35355338, %v7444_v31 }
  0xd1   : > { %v763_v17 = vpop.f32.mrf.mxu1 }
  0xd2   : > { %v764_v18 = vadd.f32 %v763_v17, %v685_v16 }
  0xd9   : > { %v765_v19 = vpop.f32.mrf.mxu1 }
  0xda   : > { %v766_v20 = vadd.f32 %v765_v19, %v685_v16 }
  0xdc   : > { %v7509_v21 = vpack.i.bf16 %v766_v20, %v764_v18 }
  0xe1   : > { %v768_v23 = vpop.f32.mrf.mxu1 }
  0xe2   : > { %v769_v24 = vadd.f32 %v768_v23, %v685_v16 }
  0xe9   : > { %v770_v28 = vpop.f32.mrf.mxu1 }
  0xea   : > { %v771_v22 = vadd.f32 %v770_v28, %v685_v16 }
 0x136   : > { %v779_v32 = vpop.permute.xlu0 %778  ;;  %v836_v33 = vpop.permute.xlu1 %835 }
 0x137   : > { %5704 = vmatpush.xpose.msk.msra.mxu2 %vm780_vm2, %v779_v32  ;;  %v7513_v32 = vpack.i.bf16 %v771_v22, %v769_v24 }
 0x13a   : > { %5705 = vmatmul.msk.f32.vlgmr.msra.gmra.mxu2 %vm780_vm2, %v7450_v34 }
 0x13b   : > { %5708 = vmatpush.xpose.msk.msrb.mxu2 %vm780_vm2, %v836_v33 }
 0x13e   : > { %v808_v35 = vpop.permute.xlu0 %807  ;;  %v864_v36 = vpop.permute.xlu1 %863 }
 0x13f   : > { %5706 = vmatpush.xpose.msk.msra.mxu3 %vm780_vm2, %v808_v35  ;;  %952 = vmatpush.msra.mxu2 %v764_v18 }
 0x142   : > { %5707 = vmatmul.msk.f32.vlgmr.msra.gmra.mxu3 %vm780_vm2, %v7457_v37  ;;  %5709 = vmatmul.msk.f32.vlgmr.msrb.gmra.mxu2 %vm780_vm2, %v7460_v38 }
 0x143   : > { %5710 = vmatpush.xpose.msk.msrb.mxu3 %vm780_vm2, %v864_v36  ;;  %998 = vmatpush.msrb.mxu2 %v769_v24 }
 0x147   : > { %975 = vmatpush.msra.mxu3 %v766_v20 }
 0x14a   : > { %5711 = vmatmul.msk.f32.vlgmr.msrb.gmra.mxu3 %vm780_vm2, %v7468_v39 }
 0x14b   : > { %1021 = vmatpush.msrb.mxu3 %v771_v22 }
 0x1bd   : > { %v803_v40 = vpop.f32.mrf.mxu2 }
 0x1be   : > { %v890_v41 = vsel %vm780_vm2, %v803_v40, -inf }
 0x1bf   : > { %891 = vmax.xlane.f32.xlu2 %v890_v41 }
 0x1c5   : > { %v831_v42 = vpop.f32.mrf.mxu3  ;;  %v859_v43 = vpop.f32.mrf.mxu2 }
 0x1c6   : > { %v893_v44 = vsel %vm780_vm2, %v831_v42, -inf  ;;  %v896_v45 = vsel %vm780_vm2, %v859_v43, -inf }
 0x1c7   : > { %894 = vmax.xlane.f32.xlu2 %v893_v44  ;;  %897 = vmax.xlane.f32.xlu0 %v896_v45 }
 0x1cd   : > { %v887_v46 = vpop.f32.mrf.mxu3 }
 0x1ce   : > { %v899_v47 = vsel %vm780_vm2, %v887_v46, -inf }
 0x1cf   : > { %900 = vmax.xlane.f32.xlu1 %v899_v47 }
 0x1db   : > { %1056 = vrot.lane.b32.xlu0 %v7442_v30, %s7226_s19 }
 0x1df   : > { %1028 = vrot.lane.b32.xlu2 %v7436_v26, %s7226_s19 }
 0x1e3   : > { %1084 = vrot.lane.b32.xlu0 %v7438_v27, %s7226_s19 }
 0x1e7   : > { %1054 = vrot.lane.b32.xlu2 %v7457_v37, %s7227_s26 }
 0x1e8   : > { %1026 = vrot.lane.b32.xlu1 %v7450_v34, %s7227_s26 }
 0x1eb   : > { %1110 = vrot.lane.b32.xlu0 %v7468_v39, %s7227_s26 }
 0x1f0   : > { %1082 = vrot.lane.b32.xlu1 %v7460_v38, %s7227_s26 }
 0x1f3   : > { %6890 = vrot.lane.b32.xlu0 %v7509_v21, %s7227_s26 }
 0x232   : > { %v892_v60 = vpop.xlane.xlu2 %891 }
 0x233   : > { %v902_v61 = vsub.f32 %v803_v40, %v892_v60 }
 0x235   : > { %v906_v62 = vmul.f32 1.442695, %v902_v61 }
 0x237   : > { %7035 = vpow2.f32 %v906_v62 }
 0x23a   : > { %v895_v63 = vpop.xlane.xlu2 %894  ;;  %v898_v0 = vpop.xlane.xlu0 %897 }
 0x23b   : > { %v903_v1 = vsub.f32 %v831_v42, %v895_v63  ;;  %v904_v4 = vsub.f32 %v859_v43, %v898_v0 }
 0x23d   : > { %v7036_v2 = vpop.eup %7035  ;;  %v908_v3 = vmul.f32 1.442695, %v903_v1  ;;  %v910_v6 = vmul.f32 1.442695, %v904_v4 }
 0x23e   : > { %v914_v5 = vsel %vm780_vm2, %v7036_v2, 0.0 }
 0x23f   : > { %7037 = vpow2.f32 %v908_v3  ;;  %915 = vadd.xlane.f32.xlu2 %v914_v5 }
 0x240   : > { %7039 = vpow2.f32 %v910_v6 }
 0x242   : > { %v901_v7 = vpop.xlane.xlu1 %900  ;;  %v1029_v25 = vpop.permute.xlu2 %1028 }
 0x243   : > { %v905_v9 = vsub.f32 %v887_v46, %v901_v7 }
 0x245   : > { %v7038_v8 = vpop.eup %7037  ;;  %v912_v11 = vmul.f32 1.442695, %v905_v9 }
 0x246   : > { %v917_v10 = vsel %vm780_vm2, %v7038_v8, 0.0  ;;  %v7040_v12 = vpop.eup %7039 }
 0x247   : > { %918 = vadd.xlane.f32.xlu2 %v917_v10  ;;  %7041 = vpow2.f32 %v912_v11  ;;  %v920_v13 = vsel %vm780_vm2, %v7040_v12, 0.0 }
 0x24a   : > { %v1055_v29 = vpop.permute.xlu2 %1054 }
 0x24d   : > { %v7042_v14 = vpop.eup %7041  ;;  %v1057_v42 = vpop.permute.xlu0 %1056 }
 0x24e   : > { %v923_v15 = vsel %vm780_vm2, %v7042_v14, 0.0 }
 0x24f   : > { %921 = vadd.xlane.f32.xlu2 %v920_v13 }
 0x255   : > { %v1085_v48 = vpop.permute.xlu0 %1084 }
 0x257   : > { %924 = vadd.xlane.f32.xlu2 %v923_v15 }
 0x25a   : > { %v1027_v50 = vpop.permute.xlu1 %1026 }
 0x25d   : > { %v1111_v54 = vpop.permute.xlu0 %1110 }
 0x262   : > { %v1083_v53 = vpop.permute.xlu1 %1082 }
 0x265   : > { %v6891_v55 = vpop.permute.xlu0 %6890 }
 0x266   : > { %v6893_v56 = vunpack.i.h.bf16 %v6891_v55  ;;  %v6892_v57 = vunpack.i.l.bf16 %v6891_v55 }
 0x26f   : > { %1112 = vrot.lane.b32.xlu2 %v7444_v31, %s7226_s19 }
 0x277   : > { %6895 = vrot.lane.b32.xlu2 %v7513_v32, %s7227_s26 }
 0x2b2   : > { %v916_v33 = vpop.xlane.xlu2 %915 }
 0x2b3   : > { %7043 = vrcp.f32 %v916_v33 }
 0x2b9   : > { %v7044_v35 = vpop.eup %7043 }
 0x2ba   : > { %v930_v36 = vmul.f32 %v7044_v35, %v7036_v2  ;;  %v919_v40 = vpop.xlane.xlu2 %918 }
 0x2bb   : > { %7045 = vrcp.f32 %v919_v40 }
 0x2bc   : > { %5712 = vmatmul.msk.f32.vlgmr.msra.gmra.mxu2 %vm780_vm2, %v930_v36 }
 0x2bd   : > { %5716 = vmatpush.xpose.msk.msra.mxu2 %vm780_vm2, %v1029_v25 }
 0x2c1   : > { %v7046_v41 = vpop.eup %7045 }
 0x2c2   : > { %v931_v43 = vmul.f32 %v7046_v41, %v7038_v8  ;;  %v922_v44 = vpop.xlane.xlu2 %921 }
 0x2c3   : > { %7047 = vrcp.f32 %v922_v44 }
 0x2c4   : > { %5713 = vmatmul.msk.f32.vlgmr.msra.gmra.mxu3 %vm780_vm2, %v931_v43 }
 0x2c5   : > { %5718 = vmatpush.xpose.msk.msra.mxu3 %vm780_vm2, %v1057_v42 }
 0x2c9   : > { %v7048_v45 = vpop.eup %7047 }
 0x2ca   : > { %v932_v46 = vmul.f32 %v7048_v45, %v7040_v12  ;;  %v925_v47 = vpop.xlane.xlu2 %924 }
 0x2cb   : > { %7049 = vrcp.f32 %v925_v47 }
 0x2cc   : > { %5714 = vmatmul.msk.f32.vlgmr.msrb.gmra.mxu2 %vm780_vm2, %v932_v46 }
 0x2cd   : > { %5720 = vmatpush.xpose.msk.msrb.mxu2 %vm780_vm2, %v1085_v48 }
 0x2d1   : > { %v7050_v49 = vpop.eup %7049 }
 0x2d2   : > { %v933_v51 = vmul.f32 %v7050_v49, %v7042_v14  ;;  %v1113_v52 = vpop.permute.xlu2 %1112 }
 0x2d4   : > { %5715 = vmatmul.msk.f32.vlgmr.msrb.gmra.mxu3 %vm780_vm2, %v933_v51  ;;  %5717 = vmatmul.msk.f32.vlgmr.msra.gmra.mxu2 %vm780_vm2, %v1027_v50 }
 0x2d5   : > { %5722 = vmatpush.xpose.msk.msrb.mxu3 %vm780_vm2, %v1113_v52  ;;  %1204 = vmatpush.msra.mxu2 %v6892_v57 }
 0x2da   : > { %v6896_v58 = vpop.permute.xlu2 %6895 }
 0x2db   : > { %v6898_v59 = vunpack.i.h.bf16 %v6896_v58  ;;  %v6897_v60 = vunpack.i.l.bf16 %v6896_v58 }
 0x2dc   : > { %5719 = vmatmul.msk.f32.vlgmr.msra.gmra.mxu3 %vm780_vm2, %v1055_v29  ;;  %5721 = vmatmul.msk.f32.vlgmr.msrb.gmra.mxu2 %vm780_vm2, %v1083_v53 }
 0x2dd   : > { %1231 = vmatpush.msra.mxu3 %v6893_v56  ;;  %1258 = vmatpush.msrb.mxu2 %v6897_v60 }
 0x2e4   : > { %5723 = vmatmul.msk.f32.vlgmr.msrb.gmra.mxu3 %vm780_vm2, %v1111_v54 }
 0x2e5   : > { %1285 = vmatpush.msrb.mxu3 %v6898_v59 }
 0x33f   : > { %v7529_v61 = vpop.f32.mrf.mxu2 }
 0x347   : > { %v7531_v62 = vpop.f32.mrf.mxu3 }
 0x34f   : > { %v7533_v63 = vpop.f32.mrf.mxu2 }
 0x357   : > { %v7535_v0 = vpop.f32.mrf.mxu3  ;;  %v1051_v1 = vpop.f32.mrf.mxu2 }
 0x358   : > { %v1138_v2 = vsel %vm780_vm2, %v1051_v1, -inf }
 0x359   : > { %1139 = vmax.xlane.f32.xlu2 %v1138_v2 }
 0x35f   : > { %v1079_v3 = vpop.f32.mrf.mxu3  ;;  %v1107_v4 = vpop.f32.mrf.mxu2 }
 0x360   : > { %v1141_v5 = vsel %vm780_vm2, %v1079_v3, -inf  ;;  %v1144_v6 = vsel %vm780_vm2, %v1107_v4, -inf }
 0x361   : > { %1142 = vmax.xlane.f32.xlu1 %v1141_v5  ;;  %1145 = vmax.xlane.f32.xlu0 %v1144_v6 }
 0x367   : > { %v1135_v7 = vpop.f32.mrf.mxu3 }
 0x368   : > { %v1147_v8 = vsel %vm780_vm2, %v1135_v7, -inf }
 0x369   : > { %1148 = vmax.xlane.f32.xlu2 %v1147_v8 }
 0x375   : > { %1376 = vrot.lane.b32.xlu0 %v7444_v31, %s7228_s22 }
 0x37a   : > { %1348 = vrot.lane.b32.xlu1 %v7438_v27, %s7228_s22 }
 0x381   : > { %1346 = vrot.lane.b32.xlu2 %v7460_v38, %s7229_s23 }
 0x3cc   : > { %v1140_v9 = vpop.xlane.xlu2 %1139 }
 0x3cd   : > { %v1150_v10 = vsub.f32 %v1051_v1, %v1140_v9 }
 0x3cf   : > { %v1154_v11 = vmul.f32 1.442695, %v1150_v10 }
 0x3d1   : > { %7051 = vpow2.f32 %v1154_v11 }
 0x3d4   : > { %v1143_v12 = vpop.xlane.xlu1 %1142  ;;  %v1146_v13 = vpop.xlane.xlu0 %1145 }
 0x3d5   : > { %v1151_v14 = vsub.f32 %v1079_v3, %v1143_v12  ;;  %v1152_v15 = vsub.f32 %v1107_v4, %v1146_v13 }
 0x3d7   : > { %v7052_v16 = vpop.eup %7051  ;;  %v1156_v17 = vmul.f32 1.442695, %v1151_v14  ;;  %v1158_v18 = vmul.f32 1.442695, %v1152_v15 }
 0x3d8   : > { %v1162_v19 = vsel %vm780_vm2, %v7052_v16, 0.0 }
 0x3d9   : > { %7053 = vpow2.f32 %v1156_v17  ;;  %1163 = vadd.xlane.f32.xlu1 %v1162_v19 }
 0x3da   : > { %7055 = vpow2.f32 %v1158_v18 }
 0x3dc   : > { %v1149_v20 = vpop.xlane.xlu2 %1148 }
 0x3dd   : > { %v1153_v23 = vsub.f32 %v1135_v7, %v1149_v20 }
 0x3df   : > { %v7054_v24 = vpop.eup %7053  ;;  %v1160_v25 = vmul.f32 1.442695, %v1153_v23 }
 0x3e0   : > { %v7056_v28 = vpop.eup %7055  ;;  %v1165_v22 = vsel %vm780_vm2, %v7054_v24, 0.0 }
 0x3e1   : > { %7057 = vpow2.f32 %v1160_v25  ;;  %1166 = vadd.xlane.f32.xlu0 %v1165_v22  ;;  %v1168_v29 = vsel %vm780_vm2, %v7056_v28, 0.0 }
 0x3e2   : > { %1169 = vadd.xlane.f32.xlu2 %v1168_v29 }
 0x3e4   : > { %v1347_v42 = vpop.permute.xlu2 %1346 }
 0x3e7   : > { %v7058_v33 = vpop.eup %7057  ;;  %v1377_v40 = vpop.permute.xlu0 %1376 }
 0x3e8   : > { %v1171_v35 = vsel %vm780_vm2, %v7058_v33, 0.0 }
 0x3e9   : > { %1172 = vadd.xlane.f32.xlu1 %v1171_v35 }
 0x3ec   : > { %v1349_v36 = vpop.permute.xlu1 %1348 }
 0x3f5   : > { %1374 = vrot.lane.b32.xlu0 %v7468_v39, %s7229_s23 }
 0x3fa   : > { %1320 = vrot.lane.b32.xlu2 %v7442_v30, %s7228_s22 }
 0x3fd   : > { %1290 = vrot.lane.b32.xlu0 %v7450_v34, %s7229_s23 }
 0x402   : > { %1292 = vrot.lane.b32.xlu1 %v7436_v26, %s7228_s22 }
 0x40a   : > { %1318 = vrot.lane.b32.xlu1 %v7457_v37, %s7229_s23 }
 0x44c   : > { %v1164_v41 = vpop.xlane.xlu1 %1163 }
 0x44d   : > { %7059 = vrcp.f32 %v1164_v41 }
 0x453   : > { %v7060_v43 = vpop.eup %7059 }
 0x454   : > { %v1178_v44 = vmul.f32 %v7060_v43, %v7052_v16  ;;  %v1167_v45 = vpop.xlane.xlu0 %1166 }
 0x455   : > { %v1170_v46 = vpop.xlane.xlu2 %1169  ;;  %7061 = vrcp.f32 %v1167_v45 }
 0x456   : > { %7063 = vrcp.f32 %v1170_v46  ;;  %5724 = vmatmul.msk.f32.vlgmr.msra.gmra.mxu2 %vm780_vm2, %v1178_v44 }
 0x457   : > { %5732 = vmatpush.xpose.msk.msra.mxu2 %vm780_vm2, %v1349_v36 }
 0x45b   : > { %v7062_v47 = vpop.eup %7061 }
 0x45c   : > { %v7064_v48 = vpop.eup %7063  ;;  %v1179_v49 = vmul.f32 %v7062_v47, %v7054_v24  ;;  %v1173_v50 = vpop.xlane.xlu1 %1172 }
 0x45d   : > { %v1180_v51 = vmul.f32 %v7064_v48, %v7056_v28  ;;  %7065 = vrcp.f32 %v1173_v50  ;;  %v1321_v52 = vpop.permute.xlu2 %1320 }
 0x45e   : > { %5730 = vmatpush.xpose.msk.msra.mxu1 %vm780_vm2, %v1321_v52  ;;  %5725 = vmatmul.msk.f32.vlgmr.msra.gmra.mxu3 %vm780_vm2, %v1179_v49 }
 0x45f   : > { %5726 = vmatmul.msk.f32.vlgmr.msrb.gmra.mxu2 %vm780_vm2, %v1180_v51  ;;  %5734 = vmatpush.xpose.msk.msra.mxu3 %vm780_vm2, %v1377_v40 }
 0x463   : > { %v7066_v53 = vpop.eup %7065 }
 0x464   : > { %v1181_v54 = vmul.f32 %v7066_v53, %v7058_v33 }
 0x466   : > { %5727 = vmatmul.msk.f32.vlgmr.msrb.gmra.mxu3 %vm780_vm2, %v1181_v54 }
 0x467   : > { %5733 = vmatmul.msk.f32.vlgmr.msra.gmra.mxu2 %vm780_vm2, %v1347_v42  ;;  %v1375_v55 = vpop.permute.xlu0 %1374 }
 0x46e   : > { %5735 = vmatmul.msk.f32.vlgmr.msra.gmra.mxu3 %vm780_vm2, %v1375_v55 }
 0x46f   : > { %v1291_v57 = vpop.permute.xlu0 %1290 }
 0x474   : > { %v1293_v56 = vpop.permute.xlu1 %1292 }
 0x475   : > { %5728 = vmatpush.xpose.msk.msrb.mxu0 %vm780_vm2, %v1293_v56 }
 0x478   : > { %5729 = vmatmul.msk.f32.vlgmr.msrb.gmra.mxu0 %vm780_vm2, %v1291_v57 }
 0x47c   : > { %v1319_v58 = vpop.permute.xlu1 %1318 }
 0x47d   : > { %5731 = vmatmul.msk.f32.vlgmr.msra.gmra.mxu1 %vm780_vm2, %v1319_v58 }
 0x4d9   : > { %v7573_v59 = vpop.f32.mrf.mxu2 }
 0x4e1   : > { %v7575_v60 = vpop.f32.mrf.mxu3 }
 0x4e2   : > { %v6959_v1 = vpack.i.bf16 %v7575_v60, %v7573_v59  ;;  %v7579_v2 = vpop.f32.mrf.mxu2 }
 0x4e9   : > { %v7581_v3 = vpop.f32.mrf.mxu3 }
 0x4ea   : > { %v1371_v4 = vpop.f32.mrf.mxu2 }
 0x4eb   : > { %v1408_v5 = vsel %vm780_vm2, %v1371_v4, -inf }
 0x4ec   : > { %1409 = vmax.xlane.f32.xlu2 %v1408_v5 }
 0x4f1   : > { %v1399_v6 = vpop.f32.mrf.mxu3 }
 0x4f2   : > { %v1411_v7 = vsel %vm780_vm2, %v1399_v6, -inf }
 0x4f3   : > { %1412 = vmax.xlane.f32.xlu0 %v1411_v7 }
 0x4f5   : > { %v1315_v8 = vpop.f32.mrf.mxu0 }
 0x4f6   : > { %v1402_v9 = vsel %vm780_vm2, %v1315_v8, -inf }
 0x4f7   : > { %1403 = vmax.xlane.f32.xlu1 %v1402_v9 }
 0x4fa   : > { %v1343_v10 = vpop.f32.mrf.mxu1 }
 0x4fb   : > { %v1405_v11 = vsel %vm780_vm2, %v1343_v10, -inf }
 0x4fc   : > { %1406 = vmax.xlane.f32.xlu2 %v1405_v11 }
 0x507   : > { %1608 = vrot.lane.b32.xlu0 %v7438_v27, %s7230_s27 }
 0x514   : > { %6900 = vrot.lane.b32.xlu2 %v7513_v32, %s7229_s23 }
 0x51c   : > { %1634 = vrot.lane.b32.xlu2 %v7468_v39, %s7231_s1 }
 0x524   : > { %6905 = vrot.lane.b32.xlu2 %v7509_v21, %s7229_s23  ;;  %s8554_s23 = scalar_lea.vmem %s8517_s5, %s7345_s16 }
 0x52c   : > { %1552 = vrot.lane.b32.xlu2 %v7436_v26, %s7230_s27 }
 0x534   : > { %1580 = vrot.lane.b32.xlu2 %v7442_v30, %s7230_s27 }
 0x53c   : > { %1550 = vrot.lane.b32.xlu2 %v7450_v34, %s7231_s1 }
 0x544   : > { %1578 = vrot.lane.b32.xlu2 %v7457_v37, %s7231_s1 }
 0x55f   : > { %v1410_v12 = vpop.xlane.xlu2 %1409 }
 0x560   : > { %v1416_v13 = vsub.f32 %v1371_v4, %v1410_v12 }
 0x562   : > { %v1422_v14 = vmul.f32 1.442695, %v1416_v13 }
 0x564   : > { %7067 = vpow2.f32 %v1422_v14 }
 0x566   : > { %v1413_v15 = vpop.xlane.xlu0 %1412 }
 0x567   : > { %v1417_v16 = vsub.f32 %v1399_v6, %v1413_v15 }
 0x569   : > { %v1424_v17 = vmul.f32 1.442695, %v1417_v16 }
 0x56a   : > { %v7068_v18 = vpop.eup %7067  ;;  %v1404_v45 = vpop.xlane.xlu1 %1403 }
 0x56b   : > { %7069 = vpow2.f32 %v1424_v17  ;;  %v1432_v19 = vsel %vm780_vm2, %v7068_v18, 0.0  ;;  %v1414_v46 = vsub.f32 %v1315_v8, %v1404_v45 }
 0x56c   : > { %1433 = vadd.xlane.f32.xlu0 %v1432_v19 }
 0x56d   : > { %v1418_v48 = vmul.f32 1.442695, %v1414_v46 }
 0x56f   : > { %v1407_v20 = vpop.xlane.xlu2 %1406 }
 0x570   : > { %v1415_v43 = vsub.f32 %v1343_v10, %v1407_v20 }
 0x571   : > { %v7070_v23 = vpop.eup %7069 }
 0x572   : > { %v1435_v24 = vsel %vm780_vm2, %v7070_v23, 0.0  ;;  %v1420_v44 = vmul.f32 1.442695, %v1415_v43 }
 0x573   : > { %1436 = vadd.xlane.f32.xlu1 %v1435_v24 }
 0x574   : > { %7071 = vpow2.f32 %v1420_v44 }
 0x575   : > { %7073 = vpow2.f32 %v1418_v48 }
 0x577   : > { %v6901_v25 = vpop.permute.xlu2 %6900 }
 0x578   : > { %v6903_v28 = vunpack.i.h.bf16 %v6901_v25  ;;  %v6902_v22 = vunpack.i.l.bf16 %v6901_v25 }
 0x579   : > { %v1609_v29 = vpop.permute.xlu0 %1608 }
 0x57a   : > { %1519 = vmatpush.msrb.mxu2 %v6902_v22  ;;  %1545 = vmatpush.msrb.mxu3 %v6903_v28  ;;  %v7072_v47 = vpop.eup %7071 }
 0x57b   : > { %v1429_v49 = vsel %vm780_vm2, %v7072_v47, 0.0  ;;  %v7074_v50 = vpop.eup %7073 }
 0x57c   : > { %5744 = vmatpush.xpose.msk.msra.mxu2 %vm780_vm2, %v1609_v29  ;;  %v1426_v51 = vsel %vm780_vm2, %v7074_v50, 0.0 }
 0x57f   : > { %v1635_v33 = vpop.permute.xlu2 %1634 }
 0x580   : > { %1606 = vrot.lane.b32.xlu0 %v7460_v38, %s7231_s1 }
 0x587   : > { %v6906_v35 = vpop.permute.xlu2 %6905 }
 0x588   : > { %v6908_v36 = vunpack.i.h.bf16 %v6906_v35  ;;  %v6907_v40 = vunpack.i.l.bf16 %v6906_v35 }
 0x58a   : > { %1467 = vmatpush.msra.mxu0 %v6907_v40  ;;  %1493 = vmatpush.msrb.mxu1 %v6908_v36 }
 0x58c   : > { %1636 = vrot.lane.b32.xlu1 %v7444_v31, %s7230_s27 }
 0x58f   : > { %v1553_v41 = vpop.permute.xlu2 %1552 }
 0x590   : > { %5740 = vmatpush.xpose.msk.msrb.mxu0 %vm780_vm2, %v1553_v41 }
 0x597   : > { %v1581_v42 = vpop.permute.xlu2 %1580 }
 0x598   : > { %5742 = vmatpush.xpose.msk.msra.mxu1 %vm780_vm2, %v1581_v42 }
 0x59f   : > { %v1551_v7 = vpop.permute.xlu2 %1550 }
 0x5a7   : > { %v1579_v10 = vpop.permute.xlu2 %1578 }
 0x5aa   : > { %1430 = vadd.xlane.f32.xlu0 %v1429_v49 }
 0x5b6   : > { %1427 = vadd.xlane.f32.xlu1 %v1426_v51 }
 0x5df   : > { %v1434_v52 = vpop.xlane.xlu0 %1433 }
 0x5e0   : > { %7075 = vrcp.f32 %v1434_v52 }
 0x5e6   : > { %v7076_v53 = vpop.eup %7075  ;;  %v1437_v54 = vpop.xlane.xlu1 %1436 }
 0x5e7   : > { %v1444_v55 = vmul.f32 %v7076_v53, %v7068_v18  ;;  %7077 = vrcp.f32 %v1437_v54 }
 0x5e9   : > { %5738 = vmatmul.msk.f32.vlgmr.msrb.gmra.mxu2 %vm780_vm2, %v1444_v55 }
 0x5ed   : > { %v7078_v56 = vpop.eup %7077 }
 0x5ee   : > { %v1445_v57 = vmul.f32 %v7078_v56, %v7070_v23 }
 0x5f0   : > { %5739 = vmatmul.msk.f32.vlgmr.msrb.gmra.mxu3 %vm780_vm2, %v1445_v57 }
 0x5f2   : > { %v1607_v58 = vpop.permute.xlu0 %1606 }
 0x5f3   : > { %5745 = vmatmul.msk.f32.vlgmr.msra.gmra.mxu2 %vm780_vm2, %v1607_v58 }
 0x5fe   : > { %v1637_v4 = vpop.permute.xlu1 %1636 }
 0x5ff   : > { %5746 = vmatpush.xpose.msk.msra.mxu3 %vm780_vm2, %v1637_v4 }
 0x602   : > { %5747 = vmatmul.msk.f32.vlgmr.msra.gmra.mxu3 %vm780_vm2, %v1635_v33 }
 0x61d   : > { %v1431_v5 = vpop.xlane.xlu0 %1430 }
 0x61e   : > { %7079 = vrcp.f32 %v1431_v5 }
 0x624   : > { %v7080_v6 = vpop.eup %7079 }
 0x625   : > { %v1443_v8 = vmul.f32 %v7080_v6, %v7072_v47 }
 0x627   : > { %5737 = vmatmul.msk.f32.vlgmr.msrb.gmra.mxu1 %vm780_vm2, %v1443_v8 }
 0x629   : > { %v1428_v9 = vpop.xlane.xlu1 %1427 }
 0x62a   : > { %7081 = vrcp.f32 %v1428_v9 }
 0x62f   : > { %5743 = vmatmul.msk.f32.vlgmr.msra.gmra.mxu1 %vm780_vm2, %v1579_v10 }
 0x630   : > { %v7082_v11 = vpop.eup %7081 }
 0x631   : > { %v1442_v12 = vmul.f32 %v7082_v11, %v7074_v50 }
 0x633   : > { %5736 = vmatmul.msk.f32.vlgmr.msra.gmra.mxu0 %vm780_vm2, %v1442_v12 }
 0x63b   : > { %5741 = vmatmul.msk.f32.vlgmr.msrb.gmra.mxu0 %vm780_vm2, %v1551_v7 }
 0x66c   : > { %v7623_v13 = vpop.f32.mrf.mxu2 }
 0x673   : > { %v7650_v46 = vpop.f32.mrf.mxu3 }
 0x676   : > { %v1631_v14 = vpop.f32.mrf.mxu2 }
 0x677   : > { %v1668_v15 = vsel %vm780_vm2, %v1631_v14, -inf }
 0x678   : > { %1669 = vmax.xlane.f32.xlu2 %v1668_v15 }
 0x685   : > { %v1659_v51 = vpop.f32.mrf.mxu3 }
 0x686   : > { %v1671_v53 = vsel %vm780_vm2, %v1659_v51, -inf }
 0x690   : > { %1866 = vrot.lane.b32.xlu2 %v7460_v38, %s7232_s0 }
 0x698   : > { %1840 = vrot.lane.b32.xlu2 %v7442_v30, %s7233_s24 }
 0x6a4   : > { %v7630_v16 = vpop.f32.mrf.mxu1 }
 0x6ac   : > { %v1603_v17 = vpop.f32.mrf.mxu1 }
 0x6ad   : > { %v1665_v18 = vsel %vm780_vm2, %v1603_v17, -inf }
 0x6ae   : > { %1666 = vmax.xlane.f32.xlu1 %v1665_v18 }
 0x6b0   : > { %v7633_v19 = vpop.f32.mrf.mxu0 }
 0x6b8   : > { %v1575_v20 = vpop.f32.mrf.mxu0 }
 0x6b9   : > { %v1662_v23 = vsel %vm780_vm2, %v1575_v20, -inf }
 0x6ba   : > { %1663 = vmax.xlane.f32.xlu0 %v1662_v23 }
 0x6ce   : > { %6910 = vrot.lane.b32.xlu0 %v7513_v32, %s7231_s1 }
 0x6d6   : > { %1868 = vrot.lane.b32.xlu0 %v7438_v27, %s7233_s24 }
 0x6de   : > { %1894 = vrot.lane.b32.xlu0 %v7468_v39, %s7232_s0 }
 0x6e6   : > { %6915 = vrot.lane.b32.xlu0 %v7509_v21, %s7231_s1 }
 0x6eb   : > { %v1670_v24 = vpop.xlane.xlu2 %1669 }
 0x6ec   : > { %v1676_v25 = vsub.f32 %v1631_v14, %v1670_v24 }
 0x6ee   : > { %1812 = vrot.lane.b32.xlu0 %v7436_v26, %s7233_s24  ;;  %v1682_v28 = vmul.f32 1.442695, %v1676_v25 }
 0x6f0   : > { %7083 = vpow2.f32 %v1682_v28 }
 0x6f3   : > { %v1867_v55 = vpop.permute.xlu2 %1866 }
 0x6f6   : > { %v7084_v22 = vpop.eup %7083 }
 0x6f7   : > { %v1692_v29 = vsel %vm780_vm2, %v7084_v22, 0.0 }
 0x6fb   : > { %v1841_v4 = vpop.permute.xlu2 %1840 }
 0x718   : > { %1693 = vadd.xlane.f32.xlu0 %v1692_v29 }
 0x721   : > { %v1667_v33 = vpop.xlane.xlu1 %1666 }
 0x722   : > { %v1675_v40 = vsub.f32 %v1603_v17, %v1667_v33 }
 0x724   : > { %v1680_v42 = vmul.f32 1.442695, %v1675_v40 }
 0x72c   : > { %1838 = vrot.lane.b32.xlu0 %v7457_v37, %s7232_s0 }
 0x72d   : > { %v1664_v35 = vpop.xlane.xlu0 %1663 }
 0x72e   : > { %v1674_v36 = vsub.f32 %v1575_v20, %v1664_v35 }
 0x730   : > { %v1678_v41 = vmul.f32 1.442695, %v1674_v36 }
 0x732   : > { %7085 = vpow2.f32 %v1678_v41 }
 0x733   : > { %7087 = vpow2.f32 %v1680_v42 }
 0x738   : > { %v7086_v43 = vpop.eup %7085 }
 0x739   : > { %v1686_v44 = vsel %vm780_vm2, %v7086_v43, 0.0  ;;  %v7088_v45 = vpop.eup %7087 }
 0x73a   : > { %1687 = vadd.xlane.f32.xlu1 %v1686_v44  ;;  %v1689_v50 = vsel %vm780_vm2, %v7088_v45, 0.0 }
 0x740   : > { %v6911_v47 = vpop.permute.xlu0 %6910 }
 0x741   : > { %v6913_v48 = vunpack.i.h.bf16 %v6911_v47  ;;  %v6912_v49 = vunpack.i.l.bf16 %v6911_v47 }
 0x742   : > { %1690 = vadd.xlane.f32.xlu1 %v1689_v50 }
 0x743   : > { %1779 = vmatpush.msrb.mxu2 %v6912_v49  ;;  %1805 = vmatpush.msrb.mxu3 %v6913_v48 }
 0x748   : > { %v1869_v52 = vpop.permute.xlu0 %1868 }
 0x749   : > { %5756 = vmatpush.xpose.msk.msra.mxu2 %vm780_vm2, %v1869_v52 }
 0x74a   : > { %1672 = vmax.xlane.f32.xlu1 %v1671_v53 }
 0x750   : > { %v1895_v54 = vpop.permute.xlu0 %1894 }
 0x758   : > { %v6916_v56 = vpop.permute.xlu0 %6915 }
 0x759   : > { %v6918_v57 = vunpack.i.h.bf16 %v6916_v56  ;;  %v6917_v58 = vunpack.i.l.bf16 %v6916_v56 }
 0x75b   : > { %1727 = vmatpush.msra.mxu0 %v6917_v58  ;;  %1753 = vmatpush.msrb.mxu1 %v6918_v57 }
 0x75d   : > { %5754 = vmatpush.xpose.msk.msra.mxu1 %vm780_vm2, %v1841_v4 }
 0x760   : > { %v1813_v5 = vpop.permute.xlu0 %1812 }
 0x761   : > { %5752 = vmatpush.xpose.msk.msrb.mxu0 %vm780_vm2, %v1813_v5 }
 0x763   : > { %1896 = vrot.lane.b32.xlu1 %v7444_v31, %s7233_s24 }
 0x78b   : > { %v1694_v6 = vpop.xlane.xlu0 %1693 }
 0x78c   : > { %7089 = vrcp.f32 %v1694_v6 }
 0x792   : > { %v7090_v7 = vpop.eup %7089 }
 0x793   : > { %v1704_v8 = vmul.f32 %v7090_v7, %v7084_v22 }
 0x795   : > { %5750 = vmatmul.msk.f32.vlgmr.msrb.gmra.mxu2 %vm780_vm2, %v1704_v8 }
 0x79d   : > { %5757 = vmatmul.msk.f32.vlgmr.msra.gmra.mxu2 %vm780_vm2, %v1867_v55 }
 0x79e   : > { %v1839_v23 = vpop.permute.xlu0 %1838 }
 0x7ad   : > { %v1688_v9 = vpop.xlane.xlu1 %1687 }
 0x7ae   : > { %7091 = vrcp.f32 %v1688_v9 }
 0x7b4   : > { %v7092_v10 = vpop.eup %7091 }
 0x7b5   : > { %v1702_v11 = vmul.f32 %v7092_v10, %v7086_v43  ;;  %v1691_v12 = vpop.xlane.xlu1 %1690 }
 0x7b6   : > { %7093 = vrcp.f32 %v1691_v12 }
 0x7b7   : > { %5748 = vmatmul.msk.f32.vlgmr.msra.gmra.mxu0 %vm780_vm2, %v1702_v11 }
 0x7bc   : > { %v7094_v14 = vpop.eup %7093 }
 0x7bd   : > { %v1703_v15 = vmul.f32 %v7094_v14, %v7088_v45  ;;  %v1673_v17 = vpop.xlane.xlu1 %1672 }
 0x7be   : > { %v1677_v18 = vsub.f32 %v1659_v51, %v1673_v17 }
 0x7bf   : > { %5749 = vmatmul.msk.f32.vlgmr.msrb.gmra.mxu1 %vm780_vm2, %v1703_v15 }
 0x7c0   : > { %v1684_v20 = vmul.f32 1.442695, %v1677_v18 }
 0x7c2   : > { %7095 = vpow2.f32 %v1684_v20 }
 0x7c7   : > { %5755 = vmatmul.msk.f32.vlgmr.msra.gmra.mxu1 %vm780_vm2, %v1839_v23 }
 0x7c8   : > { %v7096_v24 = vpop.eup %7095 }
 0x7c9   : > { %v1695_v25 = vsel %vm780_vm2, %v7096_v24, 0.0 }
 0x7ca   : > { %1696 = vadd.xlane.f32.xlu1 %v1695_v25 }
 0x7d5   : > { %v1897_v28 = vpop.permute.xlu1 %1896 }
 0x7d6   : > { %5758 = vmatpush.xpose.msk.msra.mxu3 %vm780_vm2, %v1897_v28 }
 0x7e3   : > { %1810 = vrot.lane.b32.xlu1 %v7450_v34, %s7232_s0 }
 0x818   : > { %v7668_v22 = vpop.f32.mrf.mxu2 }
 0x820   : > { %v1891_v29 = vpop.f32.mrf.mxu2 }
 0x821   : > { %v1928_v33 = vsel %vm780_vm2, %v1891_v29, -inf }
 0x822   : > { %1929 = vmax.xlane.f32.xlu2 %v1928_v33 }
 0x834   : > { %v7678_v52 = vpop.f32.mrf.mxu0 }
 0x83c   : > { %v7671_v35 = vpop.f32.mrf.mxu1 }
 0x83d   : > { %v1697_v36 = vpop.xlane.xlu1 %1696 }
 0x83e   : > { %7097 = vrcp.f32 %v1697_v36 }
 0x844   : > { %v7098_v40 = vpop.eup %7097  ;;  %v1863_v41 = vpop.f32.mrf.mxu1 }
 0x845   : > { %v1705_v42 = vmul.f32 %v7098_v40, %v7096_v24  ;;  %v1925_v43 = vsel %vm780_vm2, %v1863_v41, -inf }
 0x846   : > { %1926 = vmax.xlane.f32.xlu2 %v1925_v43 }
 0x847   : > { %5751 = vmatmul.msk.f32.vlgmr.msrb.gmra.mxu3 %vm780_vm2, %v1705_v42 }
 0x84f   : > { %5759 = vmatmul.msk.f32.vlgmr.msra.gmra.mxu3 %vm780_vm2, %v1895_v54 }
 0x855   : > { %v1811_v44 = vpop.permute.xlu1 %1810 }
 0x856   : > { %5753 = vmatmul.msk.f32.vlgmr.msrb.gmra.mxu0 %vm780_vm2, %v1811_v44 }
 0x895   : > { %v1930_v45 = vpop.xlane.xlu2 %1929 }
 0x896   : > { %v1936_v58 = vsub.f32 %v1891_v29, %v1930_v45 }
 0x898   : > { %v1942_v4 = vmul.f32 1.442695, %v1936_v58 }
 0x8b9   : > { %v1927_v47 = vpop.xlane.xlu2 %1926 }
 0x8ba   : > { %v1935_v48 = vsub.f32 %v1863_v41, %v1927_v47 }
 0x8bc   : > { %v1940_v49 = vmul.f32 1.442695, %v1935_v48 }
 0x8be   : > { %7099 = vpow2.f32 %v1940_v49 }
 0x8bf   : > { %7101 = vpow2.f32 %v1942_v4 }
 0x8c4   : > { %v7100_v50 = vpop.eup %7099 }
 0x8c5   : > { %v1949_v51 = vsel %vm780_vm2, %v7100_v50, 0.0  ;;  %v7102_v5 = vpop.eup %7101 }
 0x8c6   : > { %1950 = vadd.xlane.f32.xlu1 %v1949_v51  ;;  %v1952_v9 = vsel %vm780_vm2, %v7102_v5, 0.0 }
 0x8ca   : > { %v7689_v54 = vpop.f32.mrf.mxu3 }
 0x8d2   : > { %v1919_v56 = vpop.f32.mrf.mxu3 }
 0x8d3   : > { %v1835_v53 = vpop.f32.mrf.mxu0  ;;  %v1931_v57 = vsel %vm780_vm2, %v1919_v56, -inf }
 0x8d4   : > { %v1922_v55 = vsel %vm780_vm2, %v1835_v53, -inf }
 0x8d5   : > { %1923 = vmax.xlane.f32.xlu0 %v1922_v55 }
 0x8df   : > { %2156 = vrot.lane.b32.xlu1 %v7444_v31, %s7234_s2 }
 0x8e9   : > { %6920 = vrot.lane.b32.xlu0 %v7513_v32, %s7232_s0 }
 0x8f1   : > { %6925 = vrot.lane.b32.xlu0 %v7509_v21, %s7232_s0  ;;  %s8557_s0 = scalar_lea.vmem %s8518_s6, %s7345_s16 }
 0x8f9   : > { %2154 = vrot.lane.b32.xlu0 %v7468_v39, %s7235_s18 }
 0x909   : > { %1932 = vmax.xlane.f32.xlu1 %v1931_v57 }
 0x922   : > { %2072 = vrot.lane.b32.xlu1 %v7436_v26, %s7234_s2 }
 0x939   : > { %v1951_v12 = vpop.xlane.xlu1 %1950 }
 0x948   : > { %v1924_v6 = vpop.xlane.xlu0 %1923 }
 0x949   : > { %v1934_v7 = vsub.f32 %v1835_v53, %v1924_v6 }
 0x94b   : > { %v1938_v8 = vmul.f32 1.442695, %v1934_v7 }
 0x94c   : > { %1953 = vadd.xlane.f32.xlu1 %v1952_v9 }
 0x94d   : > { %7103 = vpow2.f32 %v1938_v8 }
 0x94e   : > { %7105 = vrcp.f32 %v1951_v12 }
 0x951   : > { %v2157_v18 = vpop.permute.xlu1 %2156 }
 0x953   : > { %v7104_v10 = vpop.eup %7103 }
 0x954   : > { %v1946_v11 = vsel %vm780_vm2, %v7104_v10, 0.0  ;;  %v7106_v20 = vpop.eup %7105 }
 0x955   : > { %1947 = vadd.xlane.f32.xlu2 %v1946_v11  ;;  %v1963_v28 = vmul.f32 %v7106_v20, %v7100_v50 }
 0x95b   : > { %v6921_v14 = vpop.permute.xlu0 %6920 }
 0x95c   : > { %v6923_v15 = vunpack.i.h.bf16 %v6921_v14  ;;  %v6922_v17 = vunpack.i.l.bf16 %v6921_v14 }
 0x95e   : > { %2039 = vmatpush.msrb.mxu2 %v6922_v17  ;;  %2065 = vmatpush.msrb.mxu3 %v6923_v15 }
 0x960   : > { %5770 = vmatpush.xpose.msk.msra.mxu3 %vm780_vm2, %v2157_v18 }
 0x963   : > { %v6926_v23 = vpop.permute.xlu0 %6925 }
 0x964   : > { %v6928_v24 = vunpack.i.h.bf16 %v6926_v23  ;;  %v6927_v25 = vunpack.i.l.bf16 %v6926_v23 }
 0x965   : > { %2098 = vrot.lane.b32.xlu1 %v7457_v37, %s7235_s18 }
 0x966   : > { %1987 = vmatpush.msra.mxu0 %v6927_v25  ;;  %2013 = vmatpush.msrb.mxu1 %v6928_v24 }
 0x967   : > { %5761 = vmatmul.msk.f32.vlgmr.msrb.gmra.mxu1 %vm780_vm2, %v1963_v28 }
 0x96d   : > { %2128 = vrot.lane.b32.xlu2 %v7438_v27, %s7234_s2 }
 0x975   : > { %2126 = vrot.lane.b32.xlu2 %v7460_v38, %s7235_s18 }
 0x97c   : > { %v1933_v29 = vpop.xlane.xlu1 %1932 }
 0x97d   : > { %v1937_v33 = vsub.f32 %v1919_v56, %v1933_v29  ;;  %2100 = vrot.lane.b32.xlu2 %v7442_v30, %s7234_s2  ;;  %v2155_v56 = vpop.permute.xlu0 %2154 }
 0x97f   : > { %v1944_v36 = vmul.f32 1.442695, %v1937_v33 }
 0x981   : > { %7107 = vpow2.f32 %v1944_v36 }
 0x987   : > { %v7108_v40 = vpop.eup %7107 }
 0x988   : > { %v1955_v41 = vsel %vm780_vm2, %v7108_v40, 0.0 }
 0x989   : > { %1956 = vadd.xlane.f32.xlu0 %v1955_v41 }
 0x994   : > { %v2073_v42 = vpop.permute.xlu1 %2072 }
 0x995   : > { %5764 = vmatpush.xpose.msk.msrb.mxu0 %vm780_vm2, %v2073_v42 }
 0x99d   : > { %2070 = vrot.lane.b32.xlu0 %v7450_v34, %s7235_s18 }
 0x9bf   : > { %v1954_v43 = vpop.xlane.xlu1 %1953 }
 0x9c0   : > { %7109 = vrcp.f32 %v1954_v43 }
 0x9c6   : > { %v7110_v44 = vpop.eup %7109 }
 0x9c7   : > { %v1964_v45 = vmul.f32 %v7110_v44, %v7102_v5 }
 0x9c8   : > { %v1948_v47 = vpop.xlane.xlu2 %1947 }
 0x9c9   : > { %7111 = vrcp.f32 %v1948_v47  ;;  %5762 = vmatmul.msk.f32.vlgmr.msrb.gmra.mxu2 %vm780_vm2, %v1964_v45 }
 0x9cf   : > { %v7112_v48 = vpop.eup %7111 }
 0x9d0   : > { %v1962_v49 = vmul.f32 %v7112_v48, %v7104_v10  ;;  %v2129_v50 = vpop.permute.xlu2 %2128 }
 0x9d1   : > { %5768 = vmatpush.xpose.msk.msra.mxu2 %vm780_vm2, %v2129_v50 }
 0x9d2   : > { %5760 = vmatmul.msk.f32.vlgmr.msra.gmra.mxu0 %vm780_vm2, %v1962_v49 }
 0x9d7   : > { %v2099_v55 = vpop.permute.xlu1 %2098 }
 0x9d8   : > { %v2127_v51 = vpop.permute.xlu2 %2126 }
 0x9d9   : > { %5769 = vmatmul.msk.f32.vlgmr.msra.gmra.mxu2 %vm780_vm2, %v2127_v51 }
 0x9e0   : > { %v2101_v53 = vpop.permute.xlu2 %2100 }
 0x9e1   : > { %5766 = vmatpush.xpose.msk.msra.mxu1 %vm780_vm2, %v2101_v53 }
 0x9e4   : > { %5767 = vmatmul.msk.f32.vlgmr.msra.gmra.mxu1 %vm780_vm2, %v2099_v55  ;;  %v7721_v7 = vpop.f32.mrf.mxu1 }
 0x9fc   : > { %v1957_v57 = vpop.xlane.xlu0 %1956 }
 0x9fd   : > { %7113 = vrcp.f32 %v1957_v57 }
 0xa03   : > { %v7114_v58 = vpop.eup %7113 }
 0xa04   : > { %v1965_v4 = vmul.f32 %v7114_v58, %v7108_v40 }
 0xa06   : > { %5763 = vmatmul.msk.f32.vlgmr.msrb.gmra.mxu3 %vm780_vm2, %v1965_v4 }
 0xa0e   : > { %5771 = vmatmul.msk.f32.vlgmr.msra.gmra.mxu3 %vm780_vm2, %v2155_v56 }
 0xa0f   : > { %v2071_v5 = vpop.permute.xlu0 %2070 }
 0xa10   : > { %5765 = vmatmul.msk.f32.vlgmr.msrb.gmra.mxu0 %vm780_vm2, %v2071_v5 }
 0xa4c   : > { %v7719_v6 = vpop.f32.mrf.mxu2 }
 0xa4f   : > { %v7725_v12 = vpop.f32.mrf.mxu0 }
 0xa5c   : > { %v2151_v8 = vpop.f32.mrf.mxu2 }
 0xa5d   : > { %v2188_v9 = vsel %vm780_vm2, %v2151_v8, -inf }
 0xa5e   : > { %2189 = vmax.xlane.f32.xlu2 %v2188_v9 }
 0xa61   : > { %v2123_v10 = vpop.f32.mrf.mxu1 }
 0xa62   : > { %v2185_v11 = vsel %vm780_vm2, %v2123_v10, -inf }
 0xa66   : > { %2186 = vmax.xlane.f32.xlu2 %v2185_v11 }
 0xa89   : > { %v7738_v41 = vpop.f32.mrf.mxu3 }
 0xa8d   : > { %v2095_v14 = vpop.f32.mrf.mxu0 }
 0xa8e   : > { %v2182_v15 = vsel %vm780_vm2, %v2095_v14, -inf }
 0xa8f   : > { %2183 = vmax.xlane.f32.xlu1 %v2182_v15 }
 0xa91   : > { %v2179_v45 = vpop.f32.mrf.mxu3 }
 0xa92   : > { %v2191_v48 = vsel %vm780_vm2, %v2179_v45, -inf }
 0xaa8   : > { %6930 = vrot.lane.b32.xlu1 %v7513_v32, %s7235_s18 }
 0xab0   : > { %2416 = vrot.lane.b32.xlu1 %v7444_v31, %s7236_s25 }
 0xab8   : > { %2386 = vrot.lane.b32.xlu1 %v7460_v38, %s7237_s29 }
 0xad1   : > { %v2190_v17 = vpop.xlane.xlu2 %2189 }
 0xad2   : > { %v2196_v49 = vsub.f32 %v2151_v8, %v2190_v17 }
 0xad4   : > { %v2202_v50 = vmul.f32 1.442695, %v2196_v49 }
 0xad9   : > { %v2187_v18 = vpop.xlane.xlu2 %2186 }
 0xada   : > { %v2195_v20 = vsub.f32 %v2123_v10, %v2187_v18 }
 0xadc   : > { %v2200_v23 = vmul.f32 1.442695, %v2195_v20 }
 0xade   : > { %7115 = vpow2.f32 %v2200_v23 }
 0xae4   : > { %v7116_v24 = vpop.eup %7115 }
 0xae5   : > { %v2209_v25 = vsel %vm780_vm2, %v7116_v24, 0.0 }
 0xae6   : > { %2210 = vadd.xlane.f32.xlu0 %v2209_v25 }
 0xafa   : > { %2388 = vrot.lane.b32.xlu0 %v7438_v27, %s7236_s25 }
 0xb02   : > { %v2184_v28 = vpop.xlane.xlu1 %2183 }
 0xb03   : > { %v2194_v29 = vsub.f32 %v2095_v14, %v2184_v28 }
 0xb05   : > { %v2198_v33 = vmul.f32 1.442695, %v2194_v29 }
 0xb07   : > { %7117 = vpow2.f32 %v2198_v33 }
 0xb08   : > { %7119 = vpow2.f32 %v2202_v50 }
 0xb0d   : > { %v7118_v36 = vpop.eup %7117 }
 0xb0e   : > { %v2206_v40 = vsel %vm780_vm2, %v7118_v36, 0.0  ;;  %v7120_v51 = vpop.eup %7119 }
 0xb0f   : > { %2207 = vadd.xlane.f32.xlu2 %v2206_v40  ;;  %v2212_v53 = vsel %vm780_vm2, %v7120_v51, 0.0 }
 0xb1a   : > { %v6931_v42 = vpop.permute.xlu1 %6930 }
 0xb1b   : > { %v6933_v43 = vunpack.i.h.bf16 %v6931_v42  ;;  %v6932_v44 = vunpack.i.l.bf16 %v6931_v42 }
 0xb1d   : > { %2299 = vmatpush.msrb.mxu2 %v6932_v44  ;;  %2325 = vmatpush.msrb.mxu3 %v6933_v43 }
 0xb22   : > { %v2417_v47 = vpop.permute.xlu1 %2416 }
 0xb23   : > { %5782 = vmatpush.xpose.msk.msra.mxu3 %vm780_vm2, %v2417_v47 }
 0xb24   : > { %2192 = vmax.xlane.f32.xlu0 %v2191_v48 }
 0xb27   : > { %6935 = vrot.lane.b32.xlu2 %v7509_v21, %s7235_s18 }
 0xb2f   : > { %2360 = vrot.lane.b32.xlu2 %v7442_v30, %s7236_s25 }
 0xb37   : > { %2330 = vrot.lane.b32.xlu2 %v7450_v34, %s7237_s29 }
 0xb38   : > { %2332 = vrot.lane.b32.xlu0 %v7436_v26, %s7236_s25 }
 0xb59   : > { %v2211_v55 = vpop.xlane.xlu0 %2210 }
 0xb5a   : > { %7121 = vrcp.f32 %v2211_v55 }
 0xb60   : > { %v7122_v58 = vpop.eup %7121 }
 0xb61   : > { %v2223_v10 = vmul.f32 %v7122_v58, %v7116_v24 }
 0xb62   : > { %2213 = vadd.xlane.f32.xlu0 %v2212_v53 }
 0xb6c   : > { %v2389_v56 = vpop.permute.xlu0 %2388 }
 0xb6d   : > { %5780 = vmatpush.xpose.msk.msra.mxu2 %vm780_vm2, %v2389_v56 }
 0xb76   : > { %2414 = vrot.lane.b32.xlu0 %v7468_v39, %s7237_s29 }
 0xb82   : > { %v2208_v57 = vpop.xlane.xlu2 %2207 }
 0xb83   : > { %7123 = vrcp.f32 %v2208_v57 }
 0xb89   : > { %v7124_v4 = vpop.eup %7123 }
 0xb8a   : > { %v6936_v5 = vpop.permute.xlu2 %6935  ;;  %v2222_v11 = vmul.f32 %v7124_v4, %v7118_v36  ;;  %v2387_v36 = vpop.permute.xlu1 %2386 }
 0xb8b   : > { %v6938_v8 = vunpack.i.h.bf16 %v6936_v5  ;;  %v6937_v9 = vunpack.i.l.bf16 %v6936_v5 }
 0xb8d   : > { %2247 = vmatpush.msra.mxu0 %v6937_v9  ;;  %2273 = vmatpush.msrb.mxu1 %v6938_v8 }
 0xb8e   : > { %5772 = vmatmul.msk.f32.vlgmr.msra.gmra.mxu0 %vm780_vm2, %v2222_v11  ;;  %5773 = vmatmul.msk.f32.vlgmr.msrb.gmra.mxu1 %vm780_vm2, %v2223_v10 }
 0xb92   : > { %v2361_v14 = vpop.permute.xlu2 %2360 }
 0xb93   : > { %5778 = vmatpush.xpose.msk.msra.mxu1 %vm780_vm2, %v2361_v14 }
 0xb97   : > { %v2193_v15 = vpop.xlane.xlu0 %2192 }
 0xb98   : > { %v2197_v17 = vsub.f32 %v2179_v45, %v2193_v15 }
 0xb9a   : > { %v2204_v18 = vmul.f32 1.442695, %v2197_v17  ;;  %v2331_v24 = vpop.permute.xlu2 %2330 }
 0xb9c   : > { %7125 = vpow2.f32 %v2204_v18 }
 0xba2   : > { %v7126_v20 = vpop.eup %7125 }
 0xba3   : > { %v2215_v23 = vsel %vm780_vm2, %v7126_v20, 0.0 }
 0xba4   : > { %2216 = vadd.xlane.f32.xlu1 %v2215_v23 }
 0xbaa   : > { %v2333_v25 = vpop.permute.xlu0 %2332 }
 0xbab   : > { %5776 = vmatpush.xpose.msk.msrb.mxu0 %vm780_vm2, %v2333_v25 }
 0xbae   : > { %5777 = vmatmul.msk.f32.vlgmr.msrb.gmra.mxu0 %vm780_vm2, %v2331_v24 }
 0xbbd   : > { %2358 = vrot.lane.b32.xlu1 %v7457_v37, %s7237_s29 }
 0xbd5   : > { %v2214_v28 = vpop.xlane.xlu0 %2213 }
 0xbd6   : > { %7127 = vrcp.f32 %v2214_v28 }
 0xbdc   : > { %v7128_v29 = vpop.eup %7127 }
 0xbdd   : > { %v2224_v33 = vmul.f32 %v7128_v29, %v7120_v51 }
 0xbdf   : > { %5774 = vmatmul.msk.f32.vlgmr.msrb.gmra.mxu2 %vm780_vm2, %v2224_v33 }
 0xbe7   : > { %5781 = vmatmul.msk.f32.vlgmr.msra.gmra.mxu2 %vm780_vm2, %v2387_v36 }
 0xbe8   : > { %v2415_v45 = vpop.permute.xlu0 %2414 }
 0xc0b   : > { %v7765_v44 = vpop.f32.mrf.mxu0  ;;  %v7779_v57 = vpop.f32.mrf.mxu1 }
 0xc17   : > { %v2217_v40 = vpop.xlane.xlu1 %2216 }
 0xc18   : > { %7129 = vrcp.f32 %v2217_v40 }
 0xc1e   : > { %v7130_v42 = vpop.eup %7129 }
 0xc1f   : > { %v2225_v43 = vmul.f32 %v7130_v42, %v7126_v20 }
 0xc21   : > { %5775 = vmatmul.msk.f32.vlgmr.msrb.gmra.mxu3 %vm780_vm2, %v2225_v43 }
 0xc29   : > { %5783 = vmatmul.msk.f32.vlgmr.msra.gmra.mxu3 %vm780_vm2, %v2415_v45 }
 0xc2b   : > { %v2355_v47 = vpop.f32.mrf.mxu0 }
 0xc2c   : > { %v2442_v48 = vsel %vm780_vm2, %v2355_v47, -inf }
 0xc2d   : > { %2443 = vmax.xlane.f32.xlu0 %v2442_v48 }
 0xc2f   : > { %v2359_v49 = vpop.permute.xlu1 %2358 }
 0xc30   : > { %5779 = vmatmul.msk.f32.vlgmr.msra.gmra.mxu1 %vm780_vm2, %v2359_v49 }
 0xc41   : > { %6945 = vrot.lane.b32.xlu0 %v7513_v32, %s7237_s29 }
 0xc49   : > { %2620 = vrot.lane.b32.xlu0 %v7442_v30, %s7238_s20 }
 0xc62   : > { %v7774_v50 = vpop.f32.mrf.mxu2 }
 0xc6a   : > { %v2411_v51 = vpop.f32.mrf.mxu2 }
 0xc6b   : > { %v2448_v53 = vsel %vm780_vm2, %v2411_v51, -inf }
 0xc6c   : > { %2449 = vmax.xlane.f32.xlu1 %v2448_v53 }
 0xca0   : > { %v2444_v55 = vpop.xlane.xlu0 %2443 }
 0xca1   : > { %v2454_v58 = vsub.f32 %v2355_v47, %v2444_v55 }
 0xca3   : > { %v2458_v4 = vmul.f32 1.442695, %v2454_v58 }
 0xca4   : > { %v7777_v56 = vpop.f32.mrf.mxu3 }
 0xca5   : > { %7131 = vpow2.f32 %v2458_v4  ;;  %v7014_v59 = vpack.i.bf16 %v7777_v56, %v7774_v50 }
 0xcab   : > { %v7783_v10 = vpop.eup %7131 }
 0xcac   : > { %v2439_v5 = vpop.f32.mrf.mxu3  ;;  %v2466_v17 = vsel %vm780_vm2, %v7783_v10, 0.0 }
 0xcad   : > { %v2383_v8 = vpop.f32.mrf.mxu1  ;;  %v2451_v9 = vsel %vm780_vm2, %v2439_v5, -inf }
 0xcae   : > { %2452 = vmax.xlane.f32.xlu0 %v2451_v9  ;;  %v2445_v30 = vsel %vm780_vm2, %v2383_v8, -inf }
 0xcaf   : > { %2446 = vmax.xlane.f32.xlu2 %v2445_v30 }
 0xcb3   : > { %v6946_v11 = vpop.permute.xlu0 %6945 }
 0xcb4   : > { %v6948_v14 = vunpack.i.h.bf16 %v6946_v11  ;;  %v6947_v15 = vunpack.i.l.bf16 %v6946_v11 }
 0xcb6   : > { %2559 = vmatpush.msrb.mxu2 %v6947_v15  ;;  %2585 = vmatpush.msrb.mxu3 %v6948_v14 }
 0xcb7   : > { %2467 = vadd.xlane.f32.xlu2 %v2466_v17 }
 0xcbb   : > { %v2621_v28 = vpop.permute.xlu0 %2620 }
 0xcc2   : > { %2648 = vrot.lane.b32.xlu0 %v7438_v27, %s7238_s20 }
 0xccf   : > { %2592 = vrot.lane.b32.xlu2 %v7436_v26, %s7238_s20 }
 0xcd7   : > { %2618 = vrot.lane.b32.xlu2 %v7457_v37, %s7239_s3 }
 0xcdf   : > { %v2450_v18 = vpop.xlane.xlu1 %2449 }
 0xce0   : > { %v2456_v20 = vsub.f32 %v2411_v51, %v2450_v18 }
 0xce2   : > { %v2462_v23 = vmul.f32 1.442695, %v2456_v20 }
 0xce4   : > { %7133 = vpow2.f32 %v2462_v23 }
 0xcea   : > { %v7134_v25 = vpop.eup %7133 }
 0xceb   : > { %v2472_v24 = vsel %vm780_vm2, %v7134_v25, 0.0 }
 0xcec   : > { %2473 = vadd.xlane.f32.xlu0 %v2472_v24 }
 0xd00   : > { %2674 = vrot.lane.b32.xlu0 %v7468_v39, %s7239_s3 }
 0xd21   : > { %v2453_v27 = vpop.xlane.xlu0 %2452 }
 0xd22   : > { %v2457_v29 = vsub.f32 %v2439_v5, %v2453_v27  ;;  %v2447_v33 = vpop.xlane.xlu2 %2446 }
 0xd23   : > { %v2455_v26 = vsub.f32 %v2383_v8, %v2447_v33 }
 0xd24   : > { %v2464_v36 = vmul.f32 1.442695, %v2457_v29 }
 0xd25   : > { %v2460_v40 = vmul.f32 1.442695, %v2455_v26 }
 0xd26   : > { %7135 = vpow2.f32 %v2464_v36 }
 0xd27   : > { %7137 = vpow2.f32 %v2460_v40 }
 0xd2a   : > { %v2468_v51 = vpop.xlane.xlu2 %2467 }
 0xd2c   : > { %v7136_v37 = vpop.eup %7135 }
 0xd2d   : > { %v7138_v42 = vpop.eup %7137  ;;  %v2475_v43 = vsel %vm780_vm2, %v7136_v37, 0.0 }
 0xd2e   : > { %2476 = vadd.xlane.f32.xlu2 %v2475_v43  ;;  %v2469_v45 = vsel %vm780_vm2, %v7138_v42, 0.0  ;;  %v6979_v43 = vpack.i.bf16 %v7779_v57, %v7765_v44 }
 0xd2f   : > { %2470 = vadd.xlane.f32.xlu1 %v2469_v45  ;;  %v6994_v45 = vpack.i.bf16 %v7581_v3, %v7579_v2 }
 0xd32   : > { %v2593_v53 = vpop.permute.xlu2 %2592 }
 0xd34   : > { %v2649_v47 = vpop.permute.xlu0 %2648 }
 0xd35   : > { %5792 = vmatpush.xpose.msk.msra.mxu2 %vm780_vm2, %v2649_v47  ;;  %v7009_v47 = vpack.i.bf16 %v7738_v41, %v7719_v6 }
 0xd3a   : > { %v2619_v55 = vpop.permute.xlu2 %2618 }
 0xd46   : > { %2646 = vrot.lane.b32.xlu2 %v7460_v38, %s7239_s3 }
 0xd48   : > { %6940 = vrot.lane.b32.xlu1 %v7509_v21, %s7237_s29 }
 0xd50   : > { %2590 = vrot.lane.b32.xlu1 %v7450_v34, %s7239_s3 }
 0xd58   : > { %2676 = vrot.lane.b32.xlu1 %v7444_v31, %s7238_s20 }
 0xd5f   : > { %v2474_v39 = vpop.xlane.xlu0 %2473 }
 0xd60   : > { %7139 = vrcp.f32 %v2474_v39 }
 0xd66   : > { %v7140_v48 = vpop.eup %7139 }
 0xd67   : > { %v2484_v49 = vmul.f32 %v7140_v48, %v7134_v25 }
 0xd69   : > { %5786 = vmatmul.msk.f32.vlgmr.msrb.gmra.mxu2 %vm780_vm2, %v2484_v49 }
 0xda1   : > { %v2477_v58 = vpop.xlane.xlu2 %2476 }
 0xda2   : > { %7141 = vrcp.f32 %v2477_v58  ;;  %v2471_v34 = vpop.xlane.xlu1 %2470 }
 0xda3   : > { %7143 = vrcp.f32 %v2468_v51 }
 0xda4   : > { %7145 = vrcp.f32 %v2471_v34 }
 0xda8   : > { %v7142_v38 = vpop.eup %7141 }
 0xda9   : > { %v2485_v4 = vmul.f32 %v7142_v38, %v7136_v37  ;;  %v2647_v5 = vpop.permute.xlu2 %2646  ;;  %v7144_v31 = vpop.eup %7143 }
 0xdaa   : > { %5793 = vmatmul.msk.f32.vlgmr.msra.gmra.mxu2 %vm780_vm2, %v2647_v5  ;;  %v7146_v8 = vpop.eup %7145  ;;  %v2482_v14 = vmul.f32 %v7144_v31, %v7783_v10  ;;  %v2675_v10 = vpop.permute.xlu0 %2674 }
 0xdab   : > { %5787 = vmatmul.msk.f32.vlgmr.msrb.gmra.mxu3 %vm780_vm2, %v2485_v4  ;;  %v2483_v15 = vmul.f32 %v7146_v8, %v7138_v42  ;;  %v6964_v42 = vpack.i.bf16 %v7630_v16, %v7633_v19 }
 0xdba   : > { %v6941_v9 = vpop.permute.xlu1 %6940 }
 0xdbb   : > { %v6943_v30 = vunpack.i.h.bf16 %v6941_v9  ;;  %v6942_v11 = vunpack.i.l.bf16 %v6941_v9 }
 0xdbd   : > { %2507 = vmatpush.msra.mxu0 %v6942_v11  ;;  %2533 = vmatpush.msrb.mxu1 %v6943_v30  ;;  %v6969_v30 = vpack.i.bf16 %v7671_v35, %v7678_v52  ;;  %v6974_v11 = vpack.i.bf16 %v7721_v7, %v7725_v12 }
 0xdbe   : > { %5784 = vmatmul.msk.f32.vlgmr.msra.gmra.mxu0 %vm780_vm2, %v2482_v14  ;;  %5785 = vmatmul.msk.f32.vlgmr.msrb.gmra.mxu1 %vm780_vm2, %v2483_v15 }
 0xdbf   : > { %5788 = vmatpush.xpose.msk.msrb.mxu0 %vm780_vm2, %v2593_v53  ;;  %5790 = vmatpush.xpose.msk.msra.mxu1 %vm780_vm2, %v2621_v28 }
 0xdc2   : > { %v2591_v17 = vpop.permute.xlu1 %2590 }
 0xdc6   : > { %5789 = vmatmul.msk.f32.vlgmr.msrb.gmra.mxu0 %vm780_vm2, %v2591_v17  ;;  %5791 = vmatmul.msk.f32.vlgmr.msra.gmra.mxu1 %vm780_vm2, %v2619_v55 }
 0xdca   : > { %v2677_v18 = vpop.permute.xlu1 %2676 }
 0xdcb   : > { %5794 = vmatpush.xpose.msk.msra.mxu3 %vm780_vm2, %v2677_v18 }
 0xdce   : > { %5795 = vmatmul.msk.f32.vlgmr.msra.gmra.mxu3 %vm780_vm2, %v2675_v10 }
 0xdec   : > { %v7819_v20 = vpop.f32.mrf.mxu2 }
 0xe2d   : > { %v2671_v23 = vpop.f32.mrf.mxu2 }
 0xe2e   : > { %v2708_v25 = vsel %vm780_vm2, %v2671_v23, -inf  ;;  %v7824_v36 = vpop.f32.mrf.mxu3 }
 0xe2f   : > { %2709 = vmax.xlane.f32.xlu0 %v2708_v25  ;;  %v6636_v25 = vld [vmem:[%s7370_s17 + $0x18] sm:$0xff] }
 0xe3b   : > { %v2509_v24 = vpop.f32.mrf.mxu0  ;;  %v2535_v27 = vpop.f32.mrf.mxu1 }
 0xe3c   : > { %v6984_v14 = vpack.i.bf16 %v2535_v27, %v2509_v24  ;;  %v6635_v24 = vld [vmem:[%s7370_s17 + $0x10] sm:$0xff]  ;;  %v6634_v27 = vld [vmem:[%s7370_s17 + $0x8] sm:$0xff] }
 0xe43   : > { %v2615_v28 = vpop.f32.mrf.mxu0  ;;  %v2643_v29 = vpop.f32.mrf.mxu1 }
 0xe44   : > { %v2702_v33 = vsel %vm780_vm2, %v2615_v28, -inf  ;;  %v2705_v26 = vsel %vm780_vm2, %v2643_v29, -inf }
 0xe45   : > { %2703 = vmax.xlane.f32.xlu1 %v2702_v33  ;;  %2706 = vmax.xlane.f32.xlu2 %v2705_v26  ;;  %v7004_v26 = vpack.i.bf16 %v7689_v54, %v7668_v22 }
 0xe51   : > { %v2699_v40 = vpop.f32.mrf.mxu3 }
 0xe52   : > { %v2711_v37 = vsel %vm780_vm2, %v2699_v40, -inf }
 0xe53   : > { %2712 = vmax.xlane.f32.xlu1 %v2711_v37 }
 0xe6c   : > { %6950 = vrot.lane.b32.xlu1 %v7509_v21, %s7239_s3 }
 0xe74   : > { %6965 = vrot.lane.b32.xlu1 %v6964_v42, %s7236_s25 }
 0xe7c   : > { %6980 = vrot.lane.b32.xlu1 %v6979_v43, %s7230_s27 }
 0xe84   : > { %6995 = vrot.lane.b32.xlu1 %v6994_v45, %s7238_s20  ;;  %v6633_v45 = vld [vmem:[%s7370_s17] sm:$0xff] }
 0xe8c   : > { %7010 = vrot.lane.b32.xlu1 %v7009_v47, %s7233_s24 }
 0xea2   : > { %v2710_v21 = vpop.xlane.xlu0 %2709 }
 0xea3   : > { %v2716_v49 = vsub.f32 %v2671_v23, %v2710_v21 }
 0xea5   : > { %v2722_v57 = vmul.f32 1.442695, %v2716_v49 }
 0xeb8   : > { %v2704_v39 = vpop.xlane.xlu1 %2703  ;;  %v2707_v16 = vpop.xlane.xlu2 %2706 }
 0xeb9   : > { %v2714_v19 = vsub.f32 %v2615_v28, %v2704_v39  ;;  %v2715_v48 = vsub.f32 %v2643_v29, %v2707_v16 }
 0xebb   : > { %v2718_v51 = vmul.f32 1.442695, %v2714_v19  ;;  %v2720_v44 = vmul.f32 1.442695, %v2715_v48 }
 0xebd   : > { %7147 = vpow2.f32 %v2718_v51 }
 0xebe   : > { %7149 = vpow2.f32 %v2720_v44 }
 0xebf   : > { %7151 = vpow2.f32 %v2722_v57 }
 0xec3   : > { %v7148_v53 = vpop.eup %7147 }
 0xec4   : > { %v7150_v2 = vpop.eup %7149  ;;  %v2726_v3 = vsel %vm780_vm2, %v7148_v53, 0.0 }
 0xec5   : > { %2727 = vadd.xlane.f32.xlu2 %v2726_v3  ;;  %v2729_v6 = vsel %vm780_vm2, %v7150_v2, 0.0  ;;  %v7152_v58 = vpop.eup %7151 }
 0xec6   : > { %2730 = vadd.xlane.f32.xlu0 %v2729_v6  ;;  %v2713_v41 = vpop.xlane.xlu1 %2712  ;;  %v2732_v4 = vsel %vm780_vm2, %v7152_v58, 0.0 }
 0xec7   : > { %v2717_v55 = vsub.f32 %v2699_v40, %v2713_v41  ;;  %v7019_v40 = vpack.i.bf16 %v7824_v36, %v7819_v20 }
 0xec9   : > { %v2724_v38 = vmul.f32 1.442695, %v2717_v55 }
 0xecb   : > { %7153 = vpow2.f32 %v2724_v38 }
 0xecd   : > { %2733 = vadd.xlane.f32.xlu2 %v2732_v4 }
 0xed1   : > { %v7154_v5 = vpop.eup %7153 }
 0xed2   : > { %v2735_v34 = vsel %vm780_vm2, %v7154_v5, 0.0 }
 0xed3   : > { %2736 = vadd.xlane.f32.xlu0 %v2735_v34 }
 0xede   : > { %v6951_v31 = vpop.permute.xlu1 %6950 }
 0xedf   : > { %v6953_v8 = vunpack.i.h.bf16 %v6951_v31  ;;  %v6952_v9 = vunpack.i.l.bf16 %v6951_v31 }
 0xee1   : > { %2767 = vmatpush.msra.mxu0 %v6952_v9  ;;  %2793 = vmatpush.msrb.mxu1 %v6953_v8 }
 0xee3   : > { %3044 = vmatpush.bf16.msrb.mxu0 %v6636_v25 }
 0xee5   : > { %6955 = vrot.lane.b32.xlu2 %v7513_v32, %s7239_s3  ;;  %v6999_v32 = vpack.i.bf16 %v7650_v46, %v7623_v13 }
 0xee6   : > { %v6966_v21 = vpop.permute.xlu1 %6965 }
 0xee7   : > { %6960 = vrot.lane.b32.xlu0 %v6959_v1, %s7238_s20  ;;  %3045 = vmatpush.bf16.msrb.mxu0 %v6635_v24  ;;  %v6968_v36 = vunpack.i.h.bf16 %v6966_v21  ;;  %v6967_v48 = vunpack.i.l.bf16 %v6966_v21 }
 0xeeb   : > { %3046 = vmatpush.bf16.msrb.mxu0 %v6634_v27 }
 0xeed   : > { %6970 = vrot.lane.b32.xlu2 %v6969_v30, %s7234_s2 }
 0xeee   : > { %v6981_v49 = vpop.permute.xlu1 %6980 }
 0xeef   : > { %6975 = vrot.lane.b32.xlu0 %v6974_v11, %s7233_s24  ;;  %3047 = vmatpush.bf16.msrb.mxu0 %v6633_v45  ;;  %v6982_v38 = vunpack.i.l.bf16 %v6981_v49 }
 0xef5   : > { %6985 = vrot.lane.b32.xlu2 %v6984_v14, %s7228_s22 }
 0xef6   : > { %v6996_v9 = vpop.permute.xlu1 %6995 }
 0xefd   : > { %7000 = vrot.lane.b32.xlu2 %v6999_v32, %s7236_s25 }
 0xf05   : > { %7015 = vrot.lane.b32.xlu2 %v7014_v59, %s7230_s27 }
 0xf38   : > { %v2728_v60 = vpop.xlane.xlu2 %2727 }
 0xf39   : > { %7155 = vrcp.f32 %v2728_v60  ;;  %v2731_v1 = vpop.xlane.xlu0 %2730 }
 0xf3a   : > { %7157 = vrcp.f32 %v2731_v1 }
 0xf3f   : > { %v7156_v35 = vpop.eup %7155 }
 0xf40   : > { %v7158_v52 = vpop.eup %7157  ;;  %v2742_v7 = vmul.f32 %v7156_v35, %v7148_v53  ;;  %v2734_v12 = vpop.xlane.xlu2 %2733 }
 0xf41   : > { %v2743_v15 = vmul.f32 %v7158_v52, %v7150_v2  ;;  %7159 = vrcp.f32 %v2734_v12  ;;  %v6998_v52 = vunpack.i.h.bf16 %v6996_v9 }
 0xf42   : > { %5796 = vmatmul.msk.f32.vlgmr.msra.gmra.mxu0 %vm780_vm2, %v2742_v7  ;;  %v6997_v7 = vunpack.i.l.bf16 %v6996_v9  ;;  %v7240_v9 = vmov 64.0  }
 0xf43   : > { %5797 = vmatmul.msk.f32.vlgmr.msrb.gmra.mxu1 %vm780_vm2, %v2743_v15 }
 0xf46   : > { %v2737_v13 = vpop.xlane.xlu0 %2736 }
 0xf47   : > { %v7160_v46 = vpop.eup %7159  ;;  %7161 = vrcp.f32 %v2737_v13 }
 0xf48   : > { %v6956_v50 = vpop.permute.xlu2 %6955  ;;  %v2744_v18 = vmul.f32 %v7160_v46, %v7152_v58  ;;  %v6983_v58 = vunpack.i.h.bf16 %v6981_v49  ;;  %7163 = vrcp.f32 %v7240_v9 }
 0xf49   : > { %v6958_v56 = vunpack.i.h.bf16 %v6956_v50  ;;  %v6957_v17 = vunpack.i.l.bf16 %v6956_v50 }
 0xf4b   : > { %2819 = vmatpush.msrb.mxu2 %v6957_v17  ;;  %2845 = vmatpush.msrb.mxu3 %v6958_v56  ;;  %v7011_v56 = vpop.permute.xlu1 %7010  ;;  %v2965_v17 = vsel %vm780_vm2, %v7535_v0, %v6998_v52 }
 0xf4c   : > { %5798 = vmatmul.msk.f32.vlgmr.msrb.gmra.mxu2 %vm780_vm2, %v2744_v18  ;;  %v2964_v18 = vsel %vm780_vm2, %v7533_v63, %v6997_v7  ;;  %v7013_v27 = vunpack.i.h.bf16 %v7011_v56 }
 0xf4d   : > { %v7162_v10 = vpop.eup %7161 }
 0xf4e   : > { %v2745_v23 = vmul.f32 %v7162_v10, %v7154_v5 }
 0xf50   : > { %5799 = vmatmul.msk.f32.vlgmr.msrb.gmra.mxu3 %vm780_vm2, %v2745_v23  ;;  %v6971_v39 = vpop.permute.xlu2 %6970 }
 0xf51   : > { %v6973_v2 = vunpack.i.h.bf16 %v6971_v39  ;;  %v6972_v3 = vunpack.i.l.bf16 %v6971_v39 }
 0xf58   : > { %v6986_v6 = vpop.permute.xlu2 %6985 }
 0xf59   : > { %v6961_v47 = vpop.permute.xlu0 %6960  ;;  %v6988_v34 = vunpack.i.h.bf16 %v6986_v6  ;;  %v6987_v31 = vunpack.i.l.bf16 %v6986_v6 }
 0xf5a   : > { %v6963_v16 = vunpack.i.h.bf16 %v6961_v47  ;;  %v6962_v19 = vunpack.i.l.bf16 %v6961_v47 }
 0xf5c   : > { %v2963_v22 = vsel %vm780_vm2, %v7531_v62, %v6963_v16  ;;  %v2962_v54 = vsel %vm780_vm2, %v7529_v61, %v6962_v19 }
 0xf5d   : > { %v2968_v51 = vsel %vm2966_vm3, %v2963_v22, %v6968_v36  ;;  %v2967_v44 = vsel %vm2966_vm3, %v2962_v54, %v6967_v48 }
 0xf5e   : > { %v2972_v62 = vsel %vm2971_vm4, %v2967_v44, %v6972_v3  ;;  %v2973_v41 = vsel %vm2971_vm4, %v2968_v51, %v6973_v2  ;;  %v7181_v51 = vld [vmem:[#allocation2] sm:$0xff]  ;;  %v7182_v3 = vld [vmem:[#allocation2 + $0x8] sm:$0xff] }
 0xf60   : > { %v7001_v35 = vpop.permute.xlu2 %7000 }
 0xf61   : > { %v6976_v20 = vpop.permute.xlu0 %6975  ;;  %v7003_v15 = vunpack.i.h.bf16 %v7001_v35  ;;  %v7002_v13 = vunpack.i.l.bf16 %v7001_v35 }
 0xf62   : > { %v6978_v57 = vunpack.i.h.bf16 %v6976_v20  ;;  %v6977_v53 = vunpack.i.l.bf16 %v6976_v20 }
 0xf63   : > { %v2970_v10 = vsel %vm2966_vm3, %v2965_v17, %v7003_v15  ;;  %v2969_v23 = vsel %vm2966_vm3, %v2964_v18, %v7002_v13 }
 0xf64   : > { %v2977_v61 = vsel %vm2976_vm5, %v2972_v62, %v6977_v53  ;;  %v2978_v55 = vsel %vm2976_vm5, %v2973_v41, %v6978_v57 }
 0xf65   : > { %v2982_v4 = vsel %vm2981_vm6, %v2977_v61, %v6982_v38  ;;  %v2983_v5 = vsel %vm2981_vm6, %v2978_v55, %v6983_v58  ;;  %v7183_v55 = vld [vmem:[#allocation2 + $0x10] sm:$0xff] }
 0xf66   : > { %v2987_v14 = vsel %vm2986_vm7, %v2982_v4, %v6987_v31  ;;  %v2988_v32 = vsel %vm2986_vm7, %v2983_v5, %v6988_v34  ;;  %v7184_v34 = vld [vmem:[#allocation2 + $0x18] sm:$0xff] }
 0xfbf   : > { %v2769_v28 = vpop.f32.mrf.mxu0 }
 0xfc0   : > { %v2795_v29 = vpop.f32.mrf.mxu1 }
 0xfc1   : > { %v6989_v33 = vpack.i.bf16 %v2795_v29, %v2769_v28  ;;  %v7012_v28 = vunpack.i.l.bf16 %v7011_v56  ;;  %v7016_v29 = vpop.permute.xlu2 %7015 }
 0xfc2   : > { %v7018_v63 = vunpack.i.h.bf16 %v7016_v29 }
 0xfc3   : > { %6990 = vrot.lane.b32.xlu0 %v6989_v33, %s7226_s19 }
 0xfcb   : > { %7005 = vrot.lane.b32.xlu0 %v7004_v26, %s7234_s2 }
 0xfcf   : > { %v2821_v37 = vpop.f32.mrf.mxu2 }
 0xfd3   : > { %7020 = vrot.lane.b32.xlu0 %v7019_v40, %s7228_s22  ;;  %v2847_v42 = vpop.f32.mrf.mxu3 }
 0xfd4   : > { %v7024_v43 = vpack.i.bf16 %v2847_v42, %v2821_v37  ;;  %v7017_v42 = vunpack.i.l.bf16 %v7016_v29 }
 0xfd6   : > { %7025 = vrot.lane.b32.xlu1 %v7024_v43, %s7226_s19  ;;  %s8553_s19 = scalar_lea.vmem %s8516_s4, %s7345_s16  ;;  %s8560_s16 = sld [smem:[#allocation3_spill]] }
 0xfd7   : > { %v7029_v36 = vld [vmem:[%s8553_s19] ss:$0 sm:$0xff] }
 0xfdc   : > { %p6618_p8 = scmp.ne.s32.totalorder %s8560_s16, 5 }
0x1035   : > { %v6991_v8 = vpop.permute.xlu0 %6990 }
0x1036   : > { %v6993_v30 = vunpack.i.h.bf16 %v6991_v8  ;;  %v6992_v11 = vunpack.i.l.bf16 %v6991_v8 }
0x1038   : > { %v2992_v59 = vsel %vm2991_vm8, %v2987_v14, %v6992_v11  ;;  %v2993_v60 = vsel %vm2991_vm8, %v2988_v32, %v6993_v30  ;;  %v7164_v30 = vpop.eup %7163 }
0x1039   : > { %v2996_v1 = vpack.c.bf16 %v2993_v60, %v2992_v59  ;;  %v3078_v11 = vmul.f32 64.0, %v7164_v30  ;;  %vm3082_vm9 = vweird.f32 %v7164_v30 }
0x103b   : > { %5816 = vmatmul.msk.bf16.vlgmr.msrb.gmra.mxu0 %vm728_vm1, %v2996_v1  ;;  %v3079_v14 = vsub.f32 1.0, %v3078_v11  ;;  %v6645_v11 = vld [vmem:[%s7384_s28 + $0x3c] sm:$0xf0] }
0x103d   : > { %v7006_v12 = vpop.permute.xlu0 %7005  ;;  %v3080_v32 = vmul.f32 %v7164_v30, %v3079_v14  ;;  %v6637_v14 = vld [vmem:[%s7384_s28 + $0x4] sm:$0xf] }
0x103e   : > { %v7008_v46 = vunpack.i.h.bf16 %v7006_v12  ;;  %v7007_v50 = vunpack.i.l.bf16 %v7006_v12 }
0x103f   : > { %v3081_v59 = vadd.f32 %v7164_v30, %v3080_v32 }
0x1040   : > { %v2975_v25 = vsel %vm2971_vm4, %v2970_v10, %v7008_v46  ;;  %v2974_v24 = vsel %vm2971_vm4, %v2969_v23, %v7007_v50 }
0x1041   : > { %v2980_v26 = vsel %vm2976_vm5, %v2975_v25, %v7013_v27  ;;  %v2979_v40 = vsel %vm2976_vm5, %v2974_v24, %v7012_v28  ;;  %v7923_v60 = vsel %vm3082_vm9, %v7164_v30, %v3081_v59  ;;  %v5820_v30 = vld [vmem:[%s7384_s28] sm:$0xf]  ;;  %v5822_v59 = vld [vmem:[%s7384_s28 + $0x40] sm:$0xf0] }
0x1042   : > { %v2984_v45 = vsel %vm2981_vm6, %v2979_v40, %v7017_v42  ;;  %v2985_v47 = vsel %vm2981_vm6, %v2980_v26, %v7018_v63  ;;  %v6012_v26 = vld [vmem:[%s7384_s28 + $0x180] sm:$0xf]  ;;  %v6014_v63 = vld [vmem:[%s7384_s28 + $0x1c0] sm:$0xf0]  ;;  %v6020_v42 = vld [vmem:[%s7384_s28 + $0x188] sm:$0xf]  ;;  %v5821_v32 = vor.u32 %v6645_v11, %v5820_v30 }
0x1043   : > { %v6693_v40 = vld [vmem:[%s7384_s28 + $0x1bc] sm:$0xf0]  ;;  %v5902_v30 = vld [vmem:[%s7384_s28 + $0xd0] sm:$0xf0] }
0x1045   : > { %v7021_v33 = vpop.permute.xlu0 %7020 }
0x1046   : > { %v7023_v0 = vunpack.i.h.bf16 %v7021_v33  ;;  %v7022_v37 = vunpack.i.l.bf16 %v7021_v33 }
0x1048   : > { %v7026_v43 = vpop.permute.xlu1 %7025  ;;  %v2989_v16 = vsel %vm2986_vm7, %v2984_v45, %v7022_v37  ;;  %v2990_v19 = vsel %vm2986_vm7, %v2985_v47, %v7023_v0  ;;  %v6685_v0 = vld [vmem:[%s7384_s28 + $0x184] sm:$0xf]  ;;  %v6013_v37 = vor.u32 %v6693_v40, %v6012_v26 }
0x1049   : > { %v7028_v21 = vunpack.i.h.bf16 %v7026_v43  ;;  %v7027_v39 = vunpack.i.l.bf16 %v7026_v43  ;;  %v6694_v43 = vld [vmem:[%s7384_s28 + $0x1c4] sm:$0xf0]  ;;  %v6017_v45 = vor.u32 %v6685_v0, %v6014_v63 }
0x104a   : > { %v6021_v47 = vor.u32 %v6694_v43, %v6020_v42  ;;  %3606 = vmatpush.bf16.msra.mxu1 %v6013_v37 }
0x104b   : > { %v2994_v22 = vsel %vm2991_vm8, %v2989_v16, %v7027_v39  ;;  %v2995_v54 = vsel %vm2991_vm8, %v2990_v19, %v7028_v21  ;;  %v6686_v21 = vld [vmem:[%s7384_s28 + $0x18c] sm:$0xf]  ;;  %3625 = vmatpush.bf16.msra.mxu2 %v6017_v45  ;;  %v5948_v19 = vld [vmem:[%s7384_s28 + $0x100] sm:$0xf] }
0x104c   : > { %v2997_v20 = vpack.c.bf16 %v2995_v54, %v2994_v22  ;;  %v6022_v39 = vld [vmem:[%s7384_s28 + $0x1c8] sm:$0xf0]  ;;  %3644 = vmatpush.bf16.msra.mxu3 %v6021_v47  ;;  %v6677_v22 = vld [vmem:[%s7384_s28 + $0x13c] sm:$0xf0]  ;;  %v6669_v54 = vld [vmem:[%s7384_s28 + $0x104] sm:$0xf] }
0x104d   : > { %v6025_v16 = vor.u32 %v6686_v21, %v6022_v39  ;;  %v7991_v47 = vld [vmem:[%s8554_s23] ss:$0 sm:$0xff]  ;;  %v6687_v39 = vld [vmem:[%s7384_s28 + $0x194] sm:$0xf] }
0x104e   : > { %5817 = vmatmul.msk.bf16.gmra.mxu0 %vm728_vm1, %v2997_v20  ;;  %v5949_v20 = vor.u32 %v6677_v22, %v5948_v19 }
0x104f   : > { %3663 = vmatpush.bf16.msra.mxu0 %v6025_v16  ;;  %v6030_v16 = vld [vmem:[%s7384_s28 + $0x1d0] sm:$0xf0] }
0x1050   : > { %3607 = vmatpush.bf16.msra.mxu1 %v5949_v20  ;;  %v6033_v22 = vor.u32 %v6687_v39, %v6030_v16  ;;  %v6696_v20 = vld [vmem:[%s7384_s28 + $0x1d4] sm:$0xf0] }
0x10b8   : > { %v3049_v48 = vpop.f32.mrf.mxu0 }
0x10b9   : > { %v3050_v49 = vadd.f32 %v7029_v36, %v3049_v48  ;;  %v5956_v48 = vld [vmem:[%s7384_s28 + $0x108] sm:$0xf] }
0x10bb   : > { %v3059_v44 = vadd.f32 %v7181_v51, %v3050_v49  ;;  %v6678_v49 = vld [vmem:[%s7384_s28 + $0x144] sm:$0xf0] }
0x10bd   : > { %v3065_v57 = vsel %vm728_vm1, %v3059_v44, 0.0 }
0x10be   : > { %3066 = vadd.xlane.f32.xlu2 %v3065_v57  ;;  %v6670_v57 = vld [vmem:[%s7384_s28 + $0x10c] sm:$0xf] }
0x10c0   : > { %v3051_v53 = vpop.f32.mrf.mxu0 }
0x10c1   : > { %v3052_v2 = vadd.f32 %v7029_v36, %v3051_v53  ;;  %v5958_v53 = vld [vmem:[%s7384_s28 + $0x148] sm:$0xf0] }
0x10c3   : > { %v3060_v6 = vadd.f32 %v7182_v3, %v3052_v2  ;;  %v5961_v2 = vor.u32 %v6670_v57, %v5958_v53  ;;  %v5884_v3 = vld [vmem:[%s7384_s28 + $0x80] sm:$0xf]  ;;  %v6028_v57 = vld [vmem:[%s7384_s28 + $0x190] sm:$0xf] }
0x10c5   : > { %v3068_v62 = vsel %vm728_vm1, %v3060_v6, 0.0  ;;  %3664 = vmatpush.bf16.msra.mxu0 %v5961_v2  ;;  %v6695_v2 = vld [vmem:[%s7384_s28 + $0x1cc] sm:$0xf0] }
0x10c6   : > { %3069 = vadd.xlane.f32.xlu0 %v3068_v62  ;;  %v6653_v62 = vld [vmem:[%s7384_s28 + $0x84] sm:$0xf] }
0x10cb   : > { %v3054_v41 = vpop.f32.mrf.mxu0 }
0x10cc   : > { %v3055_v61 = vadd.f32 %v7029_v36, %v3054_v41 }
0x10ce   : > { %v3061_v58 = vadd.f32 %v7183_v55, %v3055_v61  ;;  %v5886_v61 = vld [vmem:[%s7384_s28 + $0xc0] sm:$0xf0]  ;;  %v5892_v55 = vld [vmem:[%s7384_s28 + $0x88] sm:$0xf] }
0x10d0   : > { %v3071_v38 = vsel %vm728_vm1, %v3061_v58, 0.0 }
0x10d1   : > { %3072 = vadd.xlane.f32.xlu1 %v3071_v38  ;;  %v5889_v38 = vor.u32 %v6653_v62, %v5886_v61  ;;  %v6029_v61 = vor.u32 %v6695_v2, %v6028_v57 }
0x10d3   : > { %v3056_v4 = vpop.f32.mrf.mxu0 }
0x10d4   : > { %v3057_v5 = vadd.f32 %v7029_v36, %v3056_v4  ;;  %v5950_v36 = vld [vmem:[%s7384_s28 + $0x140] sm:$0xf0] }
0x10d5   : > { %v5953_v51 = vor.u32 %v6669_v54, %v5950_v36  ;;  %v6036_v54 = vld [vmem:[%s7384_s28 + $0x198] sm:$0xf]  ;;  %v6671_v36 = vld [vmem:[%s7384_s28 + $0x114] sm:$0xf] }
0x10d6   : > { %v3062_v31 = vadd.f32 %v7184_v34, %v3057_v5  ;;  %v6654_v5 = vld [vmem:[%s7384_s28 + $0x8c] sm:$0xf] }
0x10d7   : > { %3626 = vmatpush.bf16.msra.mxu2 %v5953_v51  ;;  %v5894_v34 = vld [vmem:[%s7384_s28 + $0xc8] sm:$0xf0]  ;;  %v6037_v51 = vor.u32 %v6696_v20, %v6036_v54 }
0x10d8   : > { %v3074_v8 = vsel %vm728_vm1, %v3062_v31, 0.0 }
0x10d9   : > { %3075 = vadd.xlane.f32.xlu2 %v3074_v8  ;;  %v5897_v8 = vor.u32 %v6654_v5, %v5894_v34  ;;  %v8018_v5 = vld [vmem:[%s8557_s0] ss:$0 sm:$0xff] }
0x10db   : > { %3627 = vmatpush.bf16.msra.mxu2 %v5889_v38  ;;  %3665 = vmatpush.bf16.msra.mxu0 %v5897_v8  ;;  %v6038_v38 = vld [vmem:[%s7384_s28 + $0x1d8] sm:$0xf0]  ;;  %v6679_v8 = vld [vmem:[%s7384_s28 + $0x14c] sm:$0xf0] }
0x1131   : > { %v3067_v1 = vpop.xlane.xlu2 %3066 }
0x1132   : > { %v3084_v35 = vmul.f32 %v7923_v60, %v3067_v1  ;;  %v5828_v1 = vld [vmem:[%s7384_s28 + $0x8] sm:$0xf] }
0x1134   : > { %v7926_v52 = vsub.f32 %v3059_v44, %v3084_v35  ;;  %v5957_v44 = vor.u32 %v6678_v49, %v5956_v48  ;;  %v6646_v35 = vld [vmem:[%s7384_s28 + $0x44] sm:$0xf0]  ;;  %v5846_v49 = vld [vmem:[%s7384_s28 + $0x58] sm:$0xf0] }
0x1136   : > { %v3092_v7 = vmul.f32 %v7926_v52, %v7926_v52  ;;  %3645 = vmatpush.bf16.msra.mxu3 %v5957_v44  ;;  %v5966_v44 = vld [vmem:[%s7384_s28 + $0x150] sm:$0xf0] }
0x1138   : > { %v3096_v12 = vsel %vm728_vm1, %v3092_v7, 0.0 }
0x1139   : > { %v3070_v15 = vpop.xlane.xlu0 %3069  ;;  %3097 = vadd.xlane.f32.xlu0 %v3096_v12  ;;  %v5825_v12 = vor.u32 %v6637_v14, %v5822_v59 }
0x113a   : > { %v3085_v13 = vmul.f32 %v7923_v60, %v3070_v15  ;;  %v5829_v15 = vor.u32 %v6646_v35, %v5828_v1  ;;  %v6672_v35 = vld [vmem:[%s7384_s28 + $0x11c] sm:$0xf] }
0x113b   : > { %3628 = vmatpush.bf16.msra.mxu2 %v5825_v12 }
0x113c   : > { %v7932_v46 = vsub.f32 %v3060_v6, %v3085_v13  ;;  %v6661_v6 = vld [vmem:[%s7384_s28 + $0xbc] sm:$0xf0]  ;;  %v6638_v13 = vld [vmem:[%s7384_s28 + $0xc] sm:$0xf] }
0x113d   : > { %v5885_v41 = vor.u32 %v6661_v6, %v5884_v3  ;;  %v5972_v3 = vld [vmem:[%s7384_s28 + $0x118] sm:$0xf] }
0x113e   : > { %v3093_v50 = vmul.f32 %v7932_v46, %v7932_v46  ;;  %v6680_v6 = vld [vmem:[%s7384_s28 + $0x154] sm:$0xf0] }
0x113f   : > { %3608 = vmatpush.bf16.msra.mxu1 %v5885_v41  ;;  %3701 = vmatpush.bf16.msrb.mxu2 %v6033_v22 }
0x1140   : > { %v3099_v56 = vsel %vm728_vm1, %v3093_v50, 0.0  ;;  %v5830_v50 = vld [vmem:[%s7384_s28 + $0x48] sm:$0xf0] }
0x1141   : > { %3100 = vadd.xlane.f32.xlu1 %v3099_v56  ;;  %v5833_v56 = vor.u32 %v6638_v13, %v5830_v50  ;;  %v5908_v50 = vld [vmem:[%s7384_s28 + $0x98] sm:$0xf] }
0x1143   : > { %3609 = vmatpush.bf16.msra.mxu1 %v5821_v32  ;;  %3666 = vmatpush.bf16.msra.mxu0 %v5833_v56  ;;  %v6664_v56 = vld [vmem:[%s7384_s28 + $0xd4] sm:$0xf0] }
0x1144   : > { %v3073_v17 = vpop.xlane.xlu1 %3072 }
0x1145   : > { %v3086_v18 = vmul.f32 %v7923_v60, %v3073_v17 }
0x1147   : > { %v7938_v10 = vsub.f32 %v3061_v58, %v3086_v18  ;;  %v6662_v58 = vld [vmem:[%s7384_s28 + $0xc4] sm:$0xf0]  ;;  %3682 = vmatpush.bf16.msrb.mxu1 %v6029_v61 }
0x1148   : > { %v5893_v4 = vor.u32 %v6662_v58, %v5892_v55  ;;  %v5973_v55 = vor.u32 %v6680_v6, %v5972_v3  ;;  %v6688_v58 = vld [vmem:[%s7384_s28 + $0x19c] sm:$0xf]  ;;  %v6689_v6 = vld [vmem:[%s7384_s28 + $0x1a4] sm:$0xf]  ;;  %v6698_v61 = vld [vmem:[%s7384_s28 + $0x1e4] sm:$0xf0] }
0x1149   : > { %v3094_v23 = vmul.f32 %v7938_v10, %v7938_v10 }
0x114a   : > { %3646 = vmatpush.bf16.msra.mxu3 %v5893_v4  ;;  %v5964_v4 = vld [vmem:[%s7384_s28 + $0x110] sm:$0xf] }
0x114b   : > { %v3102_v25 = vsel %vm728_vm1, %v3094_v23, 0.0  ;;  %v5965_v59 = vor.u32 %v6679_v8, %v5964_v4  ;;  %v5982_v4 = vld [vmem:[%s7384_s28 + $0x160] sm:$0xf0] }
0x114c   : > { %3103 = vadd.xlane.f32.xlu2 %v3102_v25  ;;  %v3076_v24 = vpop.xlane.xlu2 %3075 }
0x114d   : > { %v3087_v27 = vmul.f32 %v7923_v60, %v3076_v24  ;;  %3683 = vmatpush.bf16.msrb.mxu1 %v5965_v59 }
0x114e   : > { %3647 = vmatpush.bf16.msra.mxu3 %v5829_v15 }
0x114f   : > { %v7944_v28 = vsub.f32 %v3062_v31, %v3087_v27 }
0x1151   : > { %v3095_v29 = vmul.f32 %v7944_v28, %v7944_v28 }
0x1152   : > { %3720 = vmatpush.bf16.msrb.mxu3 %v6037_v51 }
0x1153   : > { %v3105_v33 = vsel %vm728_vm1, %v3095_v29, 0.0 }
0x1154   : > { %3106 = vadd.xlane.f32.xlu0 %v3105_v33 }
0x1156   : > { %3721 = vmatpush.bf16.msrb.mxu3 %v5973_v55  ;;  %v6673_v55 = vld [vmem:[%s7384_s28 + $0x124] sm:$0xf] }
0x1157   : > { %v5985_v8 = vor.u32 %v6673_v55, %v5982_v4  ;;  %v6004_v4 = vld [vmem:[%s7384_s28 + $0x138] sm:$0xf] }
0x11ac   : > { %v3098_v31 = vpop.xlane.xlu0 %3097 }
0x11ad   : > { %v3108_v9 = vmul.f32 %v3098_v31, %v7923_v60  ;;  %v6041_v31 = vor.u32 %v6688_v58, %v6038_v38 }
0x11af   : > { %v3112_v7 = vadd.f32 1e-05, %v3108_v9  ;;  %v6655_v9 = vld [vmem:[%s7384_s28 + $0x94] sm:$0xf]  ;;  %3739 = vmatpush.bf16.msrb.mxu0 %v6041_v31 }
0x11b0   : > { %v5905_v1 = vor.u32 %v6655_v9, %v5902_v30  ;;  %v6697_v9 = vld [vmem:[%s7384_s28 + $0x1dc] sm:$0xf0]  ;;  %v5988_v30 = vld [vmem:[%s7384_s28 + $0x128] sm:$0xf] }
0x11b1   : > { %7165 = vrsqrt.f32 %v3112_v7  ;;  %vm3122_vm11 = vweird.f32 %v3112_v7 }
0x11b4   : > { %v3101_v17 = vpop.xlane.xlu1 %3100 }
0x11b5   : > { %v3109_v18 = vmul.f32 %v3101_v17, %v7923_v60  ;;  %v5900_v17 = vld [vmem:[%s7384_s28 + $0x90] sm:$0xf] }
0x11b7   : > { %v7166_v23 = vpop.eup %7165  ;;  %v3113_v25 = vadd.f32 1e-05, %v3109_v18  ;;  %v5909_v18 = vor.u32 %v6664_v56, %v5908_v50  ;;  %v5980_v50 = vld [vmem:[%s7384_s28 + $0x120] sm:$0xf] }
0x11b8   : > { %v3117_v24 = vmul.f32 %v7166_v23, %v3112_v7  ;;  %vm3123_vm10 = vweird.f32 %v7166_v23  ;;  %v5974_v7 = vld [vmem:[%s7384_s28 + $0x158] sm:$0xf0]  ;;  %v6681_v56 = vld [vmem:[%s7384_s28 + $0x15c] sm:$0xf0] }
0x11b9   : > { %7167 = vrsqrt.f32 %v3113_v25  ;;  %vm3124_vm12 = vmor %vm3122_vm11, %vm3123_vm10  ;;  %vm3132_vm14 = vweird.f32 %v3113_v25  ;;  %v5977_v13 = vor.u32 %v6672_v35, %v5974_v7  ;;  %3722 = vmatpush.bf16.msrb.mxu3 %v5909_v18  ;;  %v5981_v18 = vor.u32 %v6681_v56, %v5980_v50  ;;  %v5940_v50 = vld [vmem:[%s7384_s28 + $0xb8] sm:$0xf] }
0x11ba   : > { %v3118_v27 = vmul.f32 %v7166_v23, %v3117_v24  ;;  %v6656_v24 = vld [vmem:[%s7384_s28 + $0x9c] sm:$0xf]  ;;  %v6668_v56 = vld [vmem:[%s7384_s28 + $0xf4] sm:$0xf0] }
0x11bb   : > { %3740 = vmatpush.bf16.msrb.mxu0 %v5977_v13 }
0x11bc   : > { %v3119_v29 = vmul.f32 0.5, %v3118_v27  ;;  %v5910_v27 = vld [vmem:[%s7384_s28 + $0xd8] sm:$0xf0] }
0x11be   : > { %v3120_v33 = vsub.f32 1.5, %v3119_v29  ;;  %v5836_v29 = vld [vmem:[%s7384_s28 + $0x10] sm:$0xf] }
0x11bf   : > { %v7168_v26 = vpop.eup %7167  ;;  %v3104_v40 = vpop.xlane.xlu2 %3103 }
0x11c0   : > { %v3121_v0 = vmul.f32 %v7166_v23, %v3120_v33  ;;  %v3127_v37 = vmul.f32 %v7168_v26, %v3113_v25  ;;  %v3110_v63 = vmul.f32 %v3104_v40, %v7923_v60  ;;  %vm3133_vm13 = vweird.f32 %v7168_v26  ;;  %v6639_v40 = vld [vmem:[%s7384_s28 + $0x14] sm:$0xf] }
0x11c1   : > { %vm8000_vm15 = vmor %vm3132_vm14, %vm3133_vm13 }
0x11c2   : > { %v3125_v42 = vsel %vm3124_vm12, %v7166_v23, %v3121_v0  ;;  %v3128_v43 = vmul.f32 %v7168_v26, %v3127_v37  ;;  %v7984_v45 = vadd.f32 1e-05, %v3110_v63  ;;  %v6663_v23 = vld [vmem:[%s7384_s28 + $0xcc] sm:$0xf0]  ;;  %v5838_v0 = vld [vmem:[%s7384_s28 + $0x50] sm:$0xf0] }
0x11c3   : > { %v3156_v19 = vmul.f32 %v3125_v42, %v7926_v52  ;;  %v5969_v52 = vor.u32 %v6671_v36, %v5966_v44  ;;  %v5901_v33 = vor.u32 %v6663_v23, %v5900_v17  ;;  %v5841_v22 = vor.u32 %v6639_v40, %v5838_v0  ;;  %v6657_v17 = vld [vmem:[%s7384_s28 + $0xa4] sm:$0xf]  ;;  %v6665_v0 = vld [vmem:[%s7384_s28 + $0xdc] sm:$0xf0] }
0x11c4   : > { %v3129_v21 = vmul.f32 0.5, %v3128_v43  ;;  %7169 = vrsqrt.f32 %v7984_v45  ;;  %v5844_v43 = vld [vmem:[%s7384_s28 + $0x18] sm:$0xf]  ;;  %vm3142_vm2 = vweird.f32 %v7984_v45  ;;  %v5918_v23 = vld [vmem:[%s7384_s28 + $0xe0] sm:$0xf0] }
0x11c5   : > { %v3163_v34 = vmul.f32 %v7991_v47, %v3156_v19  ;;  %3702 = vmatpush.bf16.msrb.mxu2 %v5969_v52  ;;  %v5913_v19 = vor.u32 %v6656_v24, %v5910_v27  ;;  %3684 = vmatpush.bf16.msrb.mxu1 %v5901_v33  ;;  %v5921_v24 = vor.u32 %v6657_v17, %v5918_v23  ;;  %v6666_v33 = vld [vmem:[%s7384_s28 + $0xe4] sm:$0xf0]  ;;  %v5932_v17 = vld [vmem:[%s7384_s28 + $0xb0] sm:$0xf] }
0x11c6   : > { %v3130_v48 = vsub.f32 1.5, %v3129_v21  ;;  %v6648_v21 = vld [vmem:[%s7384_s28 + $0x54] sm:$0xf0]  ;;  %v6667_v23 = vld [vmem:[%s7384_s28 + $0xec] sm:$0xf0] }
0x11c7   : > { %v3107_v53 = vpop.xlane.xlu0 %3106  ;;  %v8049_v37 = vadd.f32 %v8018_v5, %v3163_v34  ;;  %v5845_v36 = vor.u32 %v6648_v21, %v5844_v43  ;;  %3741 = vmatpush.bf16.msrb.mxu0 %v5913_v19  ;;  %v6044_v34 = vld [vmem:[%s7384_s28 + $0x1a0] sm:$0xf]  ;;  %v5926_v43 = vld [vmem:[%s7384_s28 + $0xe8] sm:$0xf0] }
0x11c8   : > { %v3131_v62 = vmul.f32 %v7168_v26, %v3130_v48  ;;  %v3111_v41 = vmul.f32 %v3107_v53, %v7923_v60  ;;  %v6640_v48 = vld [vmem:[%s7384_s28 + $0x1c] sm:$0xf]  ;;  %v6045_v59 = vor.u32 %v6697_v9, %v6044_v34  ;;  %v6649_v19 = vld [vmem:[%s7384_s28 + $0x5c] sm:$0xf0] }
0x11c9   : > { %3703 = vmatpush.bf16.msrb.mxu2 %v5905_v1  ;;  %v5849_v53 = vor.u32 %v6640_v48, %v5846_v49  ;;  %3723 = vmatpush.bf16.msrb.mxu3 %v5845_v36  ;;  %v6650_v36 = vld [vmem:[%s7384_s28 + $0x64] sm:$0xf0] }
0x11ca   : > { %v8024_v11 = vpop.eup %7169  ;;  %v3135_v14 = vsel %vm8000_vm15, %v7168_v26, %v3131_v62  ;;  %v8028_v32 = vadd.f32 1e-05, %v3111_v41  ;;  %v6647_v26 = vld [vmem:[%s7384_s28 + $0x4c] sm:$0xf0]  ;;  %v6052_v41 = vld [vmem:[%s7384_s28 + $0x1a8] sm:$0xf] }
0x11cb   : > { %v3157_v12 = vmul.f32 %v3135_v14, %v7932_v46  ;;  %v3137_v15 = vmul.f32 %v8024_v11, %v7984_v45  ;;  %v5837_v20 = vor.u32 %v6647_v26, %v5836_v29  ;;  %vm3143_vm0 = vweird.f32 %v8024_v11  ;;  %v6046_v45 = vld [vmem:[%s7384_s28 + $0x1e0] sm:$0xf0]  ;;  %3742 = vmatpush.bf16.msrb.mxu0 %v5849_v53  ;;  %v5924_v29 = vld [vmem:[%s7384_s28 + $0xa8] sm:$0xf]  ;;  %v5916_v26 = vld [vmem:[%s7384_s28 + $0xa0] sm:$0xf] }
0x11cc   : > { %7171 = vrsqrt.f32 %v8028_v32  ;;  %vm8074_vm3 = vmor %vm3142_vm2, %vm3143_vm0  ;;  %v6049_v62 = vor.u32 %v6689_v6, %v6046_v45  ;;  %v6053_v38 = vor.u32 %v6698_v61, %v6052_v41  ;;  %vm3152_vm5 = vweird.f32 %v8028_v32  ;;  %v5862_v53 = vld [vmem:[%s7384_s28 + $0x68] sm:$0xf0]  ;;  %v6068_v6 = vld [vmem:[%s7384_s28 + $0x1b8] sm:$0xf] }
0x11cd   : > { %v3164_v46 = vmul.f32 %v7991_v47, %v3157_v12  ;;  %v3138_v25 = vmul.f32 %v8024_v11, %v3137_v15  ;;  %3704 = vmatpush.bf16.msrb.mxu2 %v5841_v22  ;;  %3685 = vmatpush.bf16.msrb.mxu1 %v5837_v20  ;;  %v5925_v40 = vor.u32 %v6666_v33, %v5924_v29  ;;  %v6641_v22 = vld [vmem:[%s7384_s28 + $0x24] sm:$0xf]  ;;  %v5860_v20 = vld [vmem:[%s7384_s28 + $0x28] sm:$0xf]  ;;  %v6675_v41 = vld [vmem:[%s7384_s28 + $0x134] sm:$0xf] }
0x11ce   : > { %v5917_v21 = vor.u32 %v6665_v0, %v5916_v26  ;;  %v5998_v61 = vld [vmem:[%s7384_s28 + $0x170] sm:$0xf0]  ;;  %v6651_v29 = vld [vmem:[%s7384_s28 + $0x6c] sm:$0xf0]  ;;  %v6652_v0 = vld [vmem:[%s7384_s28 + $0x74] sm:$0xf0] }
0x11cf   : > { %v8052_v63 = vadd.f32 %v8018_v5, %v3164_v46  ;;  %v3139_v42 = vmul.f32 0.5, %v3138_v25  ;;  %v6674_v46 = vld [vmem:[%s7384_s28 + $0x12c] sm:$0xf]  ;;  %v6001_v34 = vor.u32 %v6675_v41, %v5998_v61  ;;  %v6643_v33 = vld [vmem:[%s7384_s28 + $0x34] sm:$0xf]  ;;  %v6704_v41 = vld [vmem:[%s7396_s21 + $0x18] sm:$0xff] }
0x11d0   : > { %v5990_v25 = vld [vmem:[%s7384_s28 + $0x168] sm:$0xf0]  ;;  %v5870_v26 = vld [vmem:[%s7384_s28 + $0x70] sm:$0xf0]  ;;  %v6728_v61 = vld [vmem:[%s7396_s21 + $0xd8] sm:$0xff] }
0x11d1   : > { %v8058_v39 = vpack.c.bf16 %v8052_v63, %v8049_v37  ;;  %v3140_v16 = vsub.f32 1.5, %v3139_v42  ;;  %v5993_v27 = vor.u32 %v6674_v46, %v5990_v25  ;;  %v6658_v42 = vld [vmem:[%s7384_s28 + $0xac] sm:$0xf]  ;;  %v6660_v46 = vld [vmem:[%s7384_s28 + $0xbc] sm:$0xf] }
0x11d2   : > { %v7172_v54 = vpop.eup %7171  ;;  %v5929_v48 = vor.u32 %v6658_v42, %v5926_v43  ;;  %v5942_v25 = vld [vmem:[%s7384_s28 + $0xf8] sm:$0xf0]  ;;  %v5873_v43 = vor.u32 %v6643_v33, %v5870_v26  ;;  %v6754_v33 = vld [vmem:[%s7396_s21 + $0x1a8] sm:$0xff] }
0x11d3   : > { %v3141_v51 = vmul.f32 %v8024_v11, %v3140_v16  ;;  %v3147_v44 = vmul.f32 %v7172_v54, %v8028_v32  ;;  %6074 = vmatmul.msk.bf16.vlgmr.msra.gmra.mxu1 %vm728_vm1, %v8058_v39  ;;  %6076 = vmatmul.msk.bf16.vlgmr.msra.gmra.mxu2 %vm728_vm1, %v8058_v39  ;;  %vm3153_vm4 = vweird.f32 %v7172_v54  ;;  %v5852_v16 = vld [vmem:[%s7384_s28 + $0x20] sm:$0xf]  ;;  %v5945_v42 = vor.u32 %v6660_v46, %v5942_v25 }
0x11d4   : > { %6078 = vmatmul.msk.bf16.vlgmr.msra.gmra.mxu3 %vm728_vm1, %v8058_v39  ;;  %6080 = vmatmul.msk.bf16.vlgmr.msra.gmra.mxu0 %vm728_vm1, %v8058_v39  ;;  %vm3154_vm6 = vmor %vm3152_vm5, %vm3153_vm4  ;;  %v6761_v46 = vld [vmem:[%s7396_s21 + $0x1e0] sm:$0xff] }
0x11d5   : > { %v3148_v57 = vmul.f32 %v7172_v54, %v3147_v44  ;;  %v3145_v2 = vsel %vm8074_vm3, %v8024_v11, %v3141_v51  ;;  %3777 = vmatpush.bf16.msra.mxu2 %v6049_v62  ;;  %v6682_v11 = vld [vmem:[%s7384_s28 + $0x164] sm:$0xf0]  ;;  %3796 = vmatpush.bf16.msra.mxu3 %v6053_v38  ;;  %v5861_v51 = vor.u32 %v6650_v36, %v5860_v20  ;;  %v6700_v62 = vld [vmem:[%s7384_s28 + $0x1f4] sm:$0xf0]  ;;  %v6699_v38 = vld [vmem:[%s7384_s28 + $0x1ec] sm:$0xf0] }
0x11d6   : > { %v3158_v31 = vmul.f32 %v3145_v2, %v7938_v10  ;;  %v5989_v1 = vor.u32 %v6682_v11, %v5988_v30  ;;  %3758 = vmatpush.bf16.msra.mxu1 %v6045_v59  ;;  %v5853_v44 = vor.u32 %v6649_v19, %v5852_v16  ;;  %v6691_v2 = vld [vmem:[%s7384_s28 + $0x1b4] sm:$0xf]  ;;  %v6069_v55 = vor.u32 %v6700_v62, %v6068_v6  ;;  %v6692_v30 = vld [vmem:[%s7384_s28 + $0x1bc] sm:$0xf]  ;;  %v5996_v59 = vld [vmem:[%s7384_s28 + $0x130] sm:$0xf] }
0x11d7   : > { %v3149_v3 = vmul.f32 0.5, %v3148_v57  ;;  %v6642_v57 = vld [vmem:[%s7384_s28 + $0x2c] sm:$0xf]  ;;  %v6070_v11 = vld [vmem:[%s7384_s28 + $0x1f8] sm:$0xf0]  ;;  %v6729_v6 = vld [vmem:[%s7396_s21 + $0xe0] sm:$0xff] }
0x11d8   : > { %v3165_v10 = vmul.f32 %v7991_v47, %v3158_v31  ;;  %v5865_v52 = vor.u32 %v6642_v57, %v5862_v53  ;;  %v6644_v19 = vld [vmem:[%s7384_s28 + $0x3c] sm:$0xf]  ;;  %v6706_v57 = vld [vmem:[%s7396_s21 + $0x28] sm:$0xff]  ;;  %v8262_v25 = vld [vmem:[%s7390_s13] sm:$0xff] }
0x11d9   : > { %v3150_v58 = vsub.f32 1.5, %v3149_v3  ;;  %3778 = vmatpush.bf16.msra.mxu2 %v5985_v8  ;;  %3797 = vmatpush.bf16.msra.mxu3 %v5989_v1  ;;  %v6062_v3 = vld [vmem:[%s7384_s28 + $0x1f0] sm:$0xf0]  ;;  %v6684_v8 = vld [vmem:[%s7384_s28 + $0x174] sm:$0xf0]  ;;  %v6730_v53 = vld [vmem:[%s7396_s21 + $0xe8] sm:$0xff] }
0x11da   : > { %v8098_v12 = vadd.f32 %v8018_v5, %v3165_v10  ;;  %3759 = vmatpush.bf16.msra.mxu1 %v5981_v18  ;;  %v6065_v45 = vor.u32 %v6691_v2, %v6062_v3  ;;  %v6005_v9 = vor.u32 %v6684_v8, %v6004_v4  ;;  %v6683_v1 = vld [vmem:[%s7384_s28 + $0x16c] sm:$0xf0]  ;;  %v5941_v18 = vor.u32 %v6668_v56, %v5940_v50  ;;  %v6708_v20 = vld [vmem:[%s7396_s21 + $0x38] sm:$0xff]  ;;  %v6705_v3 = vld [vmem:[%s7396_s21 + $0x20] sm:$0xff] }
0x11db   : > { %v3151_v14 = vmul.f32 %v7172_v54, %v3150_v58  ;;  %v6060_v58 = vld [vmem:[%s7384_s28 + $0x1b0] sm:$0xf]  ;;  %v5997_v10 = vor.u32 %v6683_v1, %v5996_v59  ;;  %v6732_v36 = vld [vmem:[%s7396_s21 + $0xf8] sm:$0xff]  ;;  %v6722_v62 = vld [vmem:[%s7396_s21 + $0xa8] sm:$0xff]  ;;  %v8267_v26 = vperm.slane %v8262_v25, 0 }
0x11dc   : > { %v6061_v31 = vor.u32 %v6699_v38, %v6060_v58  ;;  %v6723_v2 = vld [vmem:[%s7396_s21 + $0xb0] sm:$0xff]  ;;  %v6721_v58 = vld [vmem:[%s7396_s21 + $0xa0] sm:$0xff]  ;;  %v6702_v8 = vld [vmem:[%s7396_s21 + $0x8] sm:$0xff] }
0x11dd   : > { %v3155_v35 = vsel %vm3154_vm6, %v7172_v54, %v3151_v14  ;;  %3779 = vmatpush.bf16.msra.mxu2 %v5921_v24  ;;  %3798 = vmatpush.bf16.msra.mxu3 %v5925_v40  ;;  %v5854_v54 = vld [vmem:[%s7384_s28 + $0x60] sm:$0xf0]  ;;  %v6073_v14 = vor.u32 %v6692_v30, %v6070_v11  ;;  %v5933_v24 = vor.u32 %v6667_v23, %v5932_v17  ;;  %v5876_v40 = vld [vmem:[%s7384_s28 + $0x38] sm:$0xf]  ;;  %v6703_v38 = vld [vmem:[%s7396_s21 + $0x10] sm:$0xff] }
0x11de   : > { %v3159_v7 = vmul.f32 %v3155_v35, %v7944_v28  ;;  %v6690_v28 = vld [vmem:[%s7384_s28 + $0x1ac] sm:$0xf]  ;;  %v5857_v49 = vor.u32 %v6641_v22, %v5854_v54  ;;  %3760 = vmatpush.bf16.msra.mxu1 %v5917_v21  ;;  %v6659_v35 = vld [vmem:[%s7384_s28 + $0xb4] sm:$0xf]  ;;  %v5877_v21 = vor.u32 %v6652_v0, %v5876_v40  ;;  %v5878_v22 = vld [vmem:[%s7384_s28 + $0x78] sm:$0xf0] }
0x11df   : > { %v5881_v54 = vor.u32 %v6644_v19, %v5878_v22  ;;  %v6727_v4 = vld [vmem:[%s7396_s21 + $0xd0] sm:$0xff]  ;;  %v6725_v59 = vld [vmem:[%s7396_s21 + $0xc0] sm:$0xff]  ;;  %v6718_v1 = vld [vmem:[%s7396_s21 + $0x88] sm:$0xff] }
0x11e0   : > { %v3166_v32 = vmul.f32 %v7991_v47, %v3159_v7  ;;  %v6054_v47 = vld [vmem:[%s7384_s28 + $0x1e8] sm:$0xf0]  ;;  %v5934_v7 = vld [vmem:[%s7384_s28 + $0xf0] sm:$0xf0]  ;;  %v6756_v50 = vld [vmem:[%s7396_s21 + $0x1b8] sm:$0xff] }
0x11e1   : > { %3780 = vmatpush.bf16.msra.mxu2 %v5857_v49  ;;  %3799 = vmatpush.bf16.msra.mxu3 %v5861_v51  ;;  %v6724_v49 = vld [vmem:[%s7396_s21 + $0xb8] sm:$0xff]  ;;  %v6707_v51 = vld [vmem:[%s7396_s21 + $0x30] sm:$0xff]  ;;  %v6738_v56 = vld [vmem:[%s7396_s21 + $0x128] sm:$0xff] }
0x11e2   : > { %v8101_v15 = vadd.f32 %v8018_v5, %v3166_v32  ;;  %v6057_v5 = vor.u32 %v6690_v28, %v6054_v47  ;;  %3761 = vmatpush.bf16.msra.mxu1 %v5853_v44  ;;  %v6676_v32 = vld [vmem:[%s7384_s28 + $0x13c] sm:$0xf]  ;;  %v5937_v47 = vor.u32 %v6659_v35, %v5934_v7  ;;  %v6731_v44 = vld [vmem:[%s7396_s21 + $0xf0] sm:$0xff]  ;;  %v6709_v35 = vld [vmem:[%s7396_s21 + $0x40] sm:$0xff] }
0x11e3   : > { %v6006_v28 = vld [vmem:[%s7384_s28 + $0x178] sm:$0xf0]  ;;  %v6711_v30 = vld [vmem:[%s7396_s21 + $0x50] sm:$0xff]  ;;  %v6762_v17 = vld [vmem:[%s7396_s21 + $0x1e8] sm:$0xff] }
0x11e4   : > { %v8105_v13 = vpack.c.bf16 %v8101_v15, %v8098_v12  ;;  %3815 = vmatpush.bf16.msra.mxu0 %v6057_v5  ;;  %v6009_v5 = vor.u32 %v6676_v32, %v6006_v28  ;;  %v6719_v11 = vld [vmem:[%s7396_s21 + $0x90] sm:$0xff]  ;;  %v6740_v7 = vld [vmem:[%s7396_s21 + $0x138] sm:$0xff]  ;;  %v6737_v23 = vld [vmem:[%s7396_s21 + $0x120] sm:$0xff] }
0x11e5   : > { %v6764_v32 = vld [vmem:[%s7396_s21 + $0x1f8] sm:$0xff]  ;;  %v6739_v28 = vld [vmem:[%s7396_s21 + $0x130] sm:$0xff] }
0x11e6   : > { %6075 = vmatmul.msk.bf16.gmra.mxu1 %vm728_vm1, %v8105_v13  ;;  %6077 = vmatmul.msk.bf16.gmra.mxu2 %vm728_vm1, %v8105_v13  ;;  %v6736_v40 = vld [vmem:[%s7396_s21 + $0x118] sm:$0xff] }
0x11e7   : > { %6079 = vmatmul.msk.bf16.gmra.mxu3 %vm728_vm1, %v8105_v13  ;;  %6081 = vmatmul.msk.bf16.gmra.mxu0 %vm728_vm1, %v8105_v13  ;;  %v6760_v0 = vld [vmem:[%s7396_s21 + $0x1d8] sm:$0xff] }
0x11e8   : > { %3816 = vmatpush.bf16.msra.mxu0 %v5993_v27  ;;  %v5868_v27 = vld [vmem:[%s7384_s28 + $0x30] sm:$0xf] }
0x11e9   : > { %v5869_v16 = vor.u32 %v6651_v29, %v5868_v27  ;;  %v6746_v29 = vld [vmem:[%s7396_s21 + $0x168] sm:$0xff] }
0x11ec   : > { %3817 = vmatpush.bf16.msra.mxu0 %v5929_v48  ;;  %v6716_v48 = vld [vmem:[%s7396_s21 + $0x78] sm:$0xff] }
0x11f0   : > { %3818 = vmatpush.bf16.msra.mxu0 %v5865_v52  ;;  %v6715_v52 = vld [vmem:[%s7396_s21 + $0x70] sm:$0xff] }
0x11f6   : > { %6082 = vmatmul.msk.bf16.vlgmr.msrb.gmra.mxu1 %vm728_vm1, %v8058_v39  ;;  %6084 = vmatmul.msk.bf16.vlgmr.msrb.gmra.mxu2 %vm728_vm1, %v8058_v39 }
0x11f7   : > { %6086 = vmatmul.msk.bf16.vlgmr.msrb.gmra.mxu3 %vm728_vm1, %v8058_v39  ;;  %6088 = vmatmul.msk.bf16.vlgmr.msrb.gmra.mxu0 %vm728_vm1, %v8058_v39 }
0x11f8   : > { %3853 = vmatpush.bf16.msrb.mxu2 %v6065_v45  ;;  %3872 = vmatpush.bf16.msrb.mxu3 %v6069_v55  ;;  %v6714_v45 = vld [vmem:[%s7396_s21 + $0x68] sm:$0xff]  ;;  %v6713_v55 = vld [vmem:[%s7396_s21 + $0x60] sm:$0xff] }
0x11f9   : > { %3834 = vmatpush.bf16.msrb.mxu1 %v6061_v31  ;;  %3891 = vmatpush.bf16.msrb.mxu0 %v6073_v14  ;;  %v6720_v31 = vld [vmem:[%s7396_s21 + $0x98] sm:$0xff]  ;;  %v6701_v14 = vld [vmem:[%s7396_s21] sm:$0xff] }
0x11fc   : > { %3854 = vmatpush.bf16.msrb.mxu2 %v6001_v34  ;;  %3873 = vmatpush.bf16.msrb.mxu3 %v6005_v9  ;;  %v6712_v34 = vld [vmem:[%s7396_s21 + $0x58] sm:$0xff]  ;;  %v6726_v9 = vld [vmem:[%s7396_s21 + $0xc8] sm:$0xff] }
0x11fd   : > { %3835 = vmatpush.bf16.msrb.mxu1 %v5997_v10  ;;  %3892 = vmatpush.bf16.msrb.mxu0 %v6009_v5  ;;  %v6717_v10 = vld [vmem:[%s7396_s21 + $0x80] sm:$0xff]  ;;  %v6748_v5 = vld [vmem:[%s7396_s21 + $0x178] sm:$0xff] }
0x1200   : > { %3855 = vmatpush.bf16.msrb.mxu2 %v5937_v47  ;;  %3874 = vmatpush.bf16.msrb.mxu3 %v5941_v18  ;;  %v6763_v47 = vld [vmem:[%s7396_s21 + $0x1f0] sm:$0xff] }
0x1201   : > { %3836 = vmatpush.bf16.msrb.mxu1 %v5933_v24  ;;  %3893 = vmatpush.bf16.msrb.mxu0 %v5945_v42  ;;  %v6747_v18 = vld [vmem:[%s7396_s21 + $0x170] sm:$0xff]  ;;  %v8272_v42 = vperm.slane %v8262_v25, 3 }
0x1204   : > { %3856 = vmatpush.bf16.msrb.mxu2 %v5873_v43  ;;  %3875 = vmatpush.bf16.msrb.mxu3 %v5877_v21  ;;  %v6745_v43 = vld [vmem:[%s7396_s21 + $0x160] sm:$0xff] }
0x1205   : > { %3837 = vmatpush.bf16.msrb.mxu1 %v5869_v16  ;;  %3894 = vmatpush.bf16.msrb.mxu0 %v5881_v54  ;;  %v6753_v21 = vld [vmem:[%s7396_s21 + $0x1a0] sm:$0xff]  ;;  %v6735_v54 = vld [vmem:[%s7396_s21 + $0x110] sm:$0xff] }
0x1206   : > { %6083 = vmatmul.msk.bf16.gmra.mxu1 %vm728_vm1, %v8105_v13  ;;  %6085 = vmatmul.msk.bf16.gmra.mxu2 %vm728_vm1, %v8105_v13 }
0x1207   : > { %6087 = vmatmul.msk.bf16.gmra.mxu3 %vm728_vm1, %v8105_v13  ;;  %6089 = vmatmul.msk.bf16.gmra.mxu0 %vm728_vm1, %v8105_v13 }
0x1216   : > { %6090 = vmatmul.msk.bf16.vlgmr.msra.gmra.mxu1 %vm728_vm1, %v8058_v39  ;;  %6092 = vmatmul.msk.bf16.vlgmr.msra.gmra.mxu2 %vm728_vm1, %v8058_v39 }
0x1217   : > { %6094 = vmatmul.msk.bf16.vlgmr.msra.gmra.mxu3 %vm728_vm1, %v8058_v39  ;;  %6096 = vmatmul.msk.bf16.vlgmr.msra.gmra.mxu0 %vm728_vm1, %v8058_v39 }
0x1218   : > { %5030 = vmatpush.bf16.msra.mxu1 %v6708_v20  ;;  %5087 = vmatpush.bf16.msra.mxu0 %v6732_v36  ;;  %v6759_v20 = vld [vmem:[%s7396_s21 + $0x1d0] sm:$0xff] }
0x1219   : > { %5049 = vmatpush.bf16.msra.mxu2 %v6716_v48  ;;  %5068 = vmatpush.bf16.msra.mxu3 %v6724_v49  ;;  %v8281_v49 = vperm.slane %v8262_v25, 1 }
0x121c   : > { %5031 = vmatpush.bf16.msra.mxu1 %v6707_v51  ;;  %5088 = vmatpush.bf16.msra.mxu0 %v6731_v44 }
0x121d   : > { %5050 = vmatpush.bf16.msra.mxu2 %v6715_v52  ;;  %5069 = vmatpush.bf16.msra.mxu3 %v6723_v2  ;;  %v8287_v52 = vperm.slane %v8262_v25, 2 }
0x1220   : > { %5032 = vmatpush.bf16.msra.mxu1 %v6706_v57  ;;  %5089 = vmatpush.bf16.msra.mxu0 %v6730_v53  ;;  %v6744_v57 = vld [vmem:[%s7396_s21 + $0x158] sm:$0xff] }
0x1221   : > { %5051 = vmatpush.bf16.msra.mxu2 %v6714_v45  ;;  %5070 = vmatpush.bf16.msra.mxu3 %v6722_v62  ;;  %v6752_v53 = vld [vmem:[%s7396_s21 + $0x198] sm:$0xff]  ;;  %v6734_v45 = vld [vmem:[%s7396_s21 + $0x108] sm:$0xff] }
0x1222   : > { %v6758_v62 = vld [vmem:[%s7396_s21 + $0x1c8] sm:$0xff] }
0x1224   : > { %5033 = vmatpush.bf16.msra.mxu1 %v6705_v3  ;;  %5090 = vmatpush.bf16.msra.mxu0 %v6729_v6 }
0x1225   : > { %5052 = vmatpush.bf16.msra.mxu2 %v6713_v55  ;;  %5071 = vmatpush.bf16.msra.mxu3 %v6721_v58 }
0x1226   : > { %6091 = vmatmul.msk.bf16.gmra.mxu1 %vm728_vm1, %v8105_v13  ;;  %6093 = vmatmul.msk.bf16.gmra.mxu2 %vm728_vm1, %v8105_v13 }
0x1227   : > { %6095 = vmatmul.msk.bf16.gmra.mxu3 %vm728_vm1, %v8105_v13  ;;  %6097 = vmatmul.msk.bf16.gmra.mxu0 %vm728_vm1, %v8105_v13 }
0x1228   : > { %5034 = vmatpush.bf16.msra.mxu1 %v6704_v41  ;;  %5091 = vmatpush.bf16.msra.mxu0 %v6728_v61 }
0x1229   : > { %5053 = vmatpush.bf16.msra.mxu2 %v6712_v34  ;;  %5072 = vmatpush.bf16.msra.mxu3 %v6720_v31 }
0x122c   : > { %5035 = vmatpush.bf16.msra.mxu1 %v6703_v38  ;;  %5092 = vmatpush.bf16.msra.mxu0 %v6727_v4  ;;  %v6743_v38 = vld [vmem:[%s7396_s21 + $0x150] sm:$0xff] }
0x122d   : > { %5054 = vmatpush.bf16.msra.mxu2 %v6711_v30  ;;  %5073 = vmatpush.bf16.msra.mxu3 %v6719_v11  ;;  %v6751_v4 = vld [vmem:[%s7396_s21 + $0x190] sm:$0xff]  ;;  %v6733_v11 = vld [vmem:[%s7396_s21 + $0x100] sm:$0xff] }
0x1230   : > { %5036 = vmatpush.bf16.msra.mxu1 %v6702_v8  ;;  %5093 = vmatpush.bf16.msra.mxu0 %v6726_v9 }
0x1231   : > { %5074 = vmatpush.bf16.msra.mxu3 %v6718_v1 }
0x1234   : > { %5037 = vmatpush.bf16.msra.mxu1 %v6701_v14  ;;  %5094 = vmatpush.bf16.msra.mxu0 %v6725_v59  ;;  %v6757_v14 = vld [vmem:[%s7396_s21 + $0x1c0] sm:$0xff] }
0x1235   : > { %5075 = vmatpush.bf16.msra.mxu3 %v6717_v10  ;;  %v6750_v10 = vld [vmem:[%s7396_s21 + $0x188] sm:$0xff] }
0x1236   : > { %6098 = vmatmul.msk.bf16.vlgmr.msrb.gmra.mxu1 %vm728_vm1, %v8058_v39  ;;  %6100 = vmatmul.msk.bf16.vlgmr.msrb.gmra.mxu2 %vm728_vm1, %v8058_v39 }
0x1237   : > { %6102 = vmatmul.msk.bf16.vlgmr.msrb.gmra.mxu3 %vm728_vm1, %v8058_v39  ;;  %6104 = vmatmul.msk.bf16.vlgmr.msrb.gmra.mxu0 %vm728_vm1, %v8058_v39  ;;  %v6710_v39 = vld [vmem:[%s7396_s21 + $0x48] sm:$0xff] }
0x1238   : > { %5055 = vmatpush.bf16.msra.mxu2 %v6710_v39  ;;  %5106 = vmatpush.bf16.msrb.mxu1 %v6740_v7 }
0x1239   : > { %5163 = vmatpush.bf16.msrb.mxu0 %v6764_v32  ;;  %5144 = vmatpush.bf16.msrb.mxu3 %v6756_v50  ;;  %v6796_v50 = vld [vmem:[%s7396_s21 + $0x2f8] sm:$0xff] }
0x123c   : > { %5056 = vmatpush.bf16.msra.mxu2 %v6709_v35  ;;  %5107 = vmatpush.bf16.msrb.mxu1 %v6739_v28  ;;  %v6742_v35 = vld [vmem:[%s7396_s21 + $0x148] sm:$0xff] }
0x123d   : > { %5164 = vmatpush.bf16.msrb.mxu0 %v6763_v47 }
0x1240   : > { %5125 = vmatpush.bf16.msrb.mxu2 %v6748_v5  ;;  %5108 = vmatpush.bf16.msrb.mxu1 %v6738_v56  ;;  %v6772_v5 = vld [vmem:[%s7396_s21 + $0x238] sm:$0xff] }
0x1241   : > { %5165 = vmatpush.bf16.msrb.mxu0 %v6762_v17 }
0x1244   : > { %5126 = vmatpush.bf16.msrb.mxu2 %v6747_v18  ;;  %5109 = vmatpush.bf16.msrb.mxu1 %v6737_v23  ;;  %v6741_v18 = vld [vmem:[%s7396_s21 + $0x140] sm:$0xff]  ;;  %v6771_v23 = vld [vmem:[%s7396_s21 + $0x230] sm:$0xff] }
0x1245   : > { %5166 = vmatpush.bf16.msrb.mxu0 %v6761_v46  ;;  %v6795_v46 = vld [vmem:[%s7396_s21 + $0x2f0] sm:$0xff] }
0x1246   : > { %6099 = vmatmul.msk.bf16.gmra.mxu1 %vm728_vm1, %v8105_v13  ;;  %6101 = vmatmul.msk.bf16.gmra.mxu2 %vm728_vm1, %v8105_v13 }
0x1247   : > { %6103 = vmatmul.msk.bf16.gmra.mxu3 %vm728_vm1, %v8105_v13  ;;  %6105 = vmatmul.msk.bf16.gmra.mxu0 %vm728_vm1, %v8105_v13  ;;  %v6755_v13 = vld [vmem:[%s7396_s21 + $0x1b0] sm:$0xff] }
0x1248   : > { %5145 = vmatpush.bf16.msrb.mxu3 %v6755_v13  ;;  %5127 = vmatpush.bf16.msrb.mxu2 %v6746_v29  ;;  %v6749_v13 = vld [vmem:[%s7396_s21 + $0x180] sm:$0xff]  ;;  %v6788_v29 = vld [vmem:[%s7396_s21 + $0x2b8] sm:$0xff] }
0x1249   : > { %5110 = vmatpush.bf16.msrb.mxu1 %v6736_v40  ;;  %5167 = vmatpush.bf16.msrb.mxu0 %v6760_v0 }
0x124c   : > { %5146 = vmatpush.bf16.msrb.mxu3 %v6754_v33  ;;  %5128 = vmatpush.bf16.msrb.mxu2 %v6745_v43 }
0x124d   : > { %5111 = vmatpush.bf16.msrb.mxu1 %v6735_v54  ;;  %5168 = vmatpush.bf16.msrb.mxu0 %v6759_v20  ;;  %v6779_v20 = vld [vmem:[%s7396_s21 + $0x270] sm:$0xff] }
0x1250   : > { %v3611_v24 = vpop.f32.mrf.mxu1  ;;  %5147 = vmatpush.bf16.msrb.mxu3 %v6753_v21  ;;  %5129 = vmatpush.bf16.msrb.mxu2 %v6744_v57  ;;  %v6770_v21 = vld [vmem:[%s7396_s21 + $0x228] sm:$0xff] }
0x1251   : > { %v3668_v27 = vpop.f32.mrf.mxu0  ;;  %v3612_v19 = vadd.f32 %v3611_v24, %v8267_v26  ;;  %5112 = vmatpush.bf16.msrb.mxu1 %v6734_v45  ;;  %5169 = vmatpush.bf16.msrb.mxu0 %v6758_v62  ;;  %v6778_v62 = vld [vmem:[%s7396_s21 + $0x268] sm:$0xff] }
0x1252   : > { %v3669_v36 = vadd.f32 %v3668_v27, %v8272_v42  ;;  %v6780_v27 = vld [vmem:[%s7396_s21 + $0x278] sm:$0xff] }
0x1253   : > { %v3906_v3 = vmax.f32 %v3612_v19, 0.0 }
0x1254   : > { %5148 = vmatpush.bf16.msrb.mxu3 %v6752_v53  ;;  %v3909_v41 = vmax.f32 %v3669_v36, 0.0  ;;  %5130 = vmatpush.bf16.msrb.mxu2 %v6743_v38  ;;  %v6787_v36 = vld [vmem:[%s7396_s21 + $0x2b0] sm:$0xff]  ;;  %v6769_v53 = vld [vmem:[%s7396_s21 + $0x220] sm:$0xff] }
0x1255   : > { %5113 = vmatpush.bf16.msrb.mxu1 %v6733_v11  ;;  %5170 = vmatpush.bf16.msrb.mxu0 %v6757_v14  ;;  %v6777_v11 = vld [vmem:[%s7396_s21 + $0x260] sm:$0xff] }
0x1256   : > { %v3630_v16 = vpop.f32.mrf.mxu2  ;;  %v6785_v14 = vld [vmem:[%s7396_s21 + $0x2a0] sm:$0xff] }
0x1257   : > { %v3649_v22 = vpop.f32.mrf.mxu3  ;;  %v3631_v55 = vadd.f32 %v3630_v16, %v8281_v49  ;;  %v6794_v16 = vld [vmem:[%s7396_s21 + $0x2e8] sm:$0xff] }
0x1258   : > { %v3613_v48 = vpop.f32.mrf.mxu1  ;;  %v3650_v34 = vadd.f32 %v3649_v22, %v8287_v52  ;;  %5149 = vmatpush.bf16.msrb.mxu3 %v6751_v4  ;;  %5131 = vmatpush.bf16.msrb.mxu2 %v6742_v35  ;;  %v6768_v4 = vld [vmem:[%s7396_s21 + $0x218] sm:$0xff]  ;;  %v6767_v35 = vld [vmem:[%s7396_s21 + $0x210] sm:$0xff] }
0x1259   : > { %v3614_v51 = vadd.f32 %v3613_v48, %v8267_v26  ;;  %v3670_v44 = vpop.f32.mrf.mxu0  ;;  %v3907_v39 = vmax.f32 %v3631_v55, 0.0 }
0x125a   : > { %v3671_v2 = vadd.f32 %v3670_v44, %v8272_v42  ;;  %v3908_v7 = vmax.f32 %v3650_v34, 0.0  ;;  %v6792_v34 = vld [vmem:[%s7396_s21 + $0x2d8] sm:$0xff] }
0x125b   : > { %v3922_v6 = vmax.f32 %v3614_v51, 0.0 }
0x125c   : > { %v3925_v61 = vmax.f32 %v3671_v2, 0.0  ;;  %5150 = vmatpush.bf16.msrb.mxu3 %v6750_v10  ;;  %5132 = vmatpush.bf16.msrb.mxu2 %v6741_v18  ;;  %v6793_v2 = vld [vmem:[%s7396_s21 + $0x2e0] sm:$0xff]  ;;  %v6791_v10 = vld [vmem:[%s7396_s21 + $0x2d0] sm:$0xff]  ;;  %v6790_v18 = vld [vmem:[%s7396_s21 + $0x2c8] sm:$0xff] }
0x125d   : > { %v3970_v58 = vpack.c.bf16 %v3922_v6, %v3906_v3 }
0x125e   : > { %v3973_v31 = vpack.c.bf16 %v3925_v61, %v3909_v41  ;;  %v3632_v8 = vpop.f32.mrf.mxu2  ;;  %v6786_v41 = vld [vmem:[%s7396_s21 + $0x2a8] sm:$0xff] }
0x125f   : > { %v3633_v9 = vadd.f32 %v3632_v8, %v8281_v49  ;;  %v3651_v30 = vpop.f32.mrf.mxu3  ;;  %5038 = vmatmul.bf16.vlgmr.msra.gmra.mxu1 %v3970_v58 }
0x1260   : > { %v3652_v59 = vadd.f32 %v3651_v30, %v8287_v52  ;;  %5095 = vmatmul.bf16.vlgmr.msra.gmra.mxu0 %v3973_v31  ;;  %5182 = vmatpush.bf16.msra.mxu1 %v6772_v5 }
0x1261   : > { %v3923_v1 = vmax.f32 %v3633_v9, 0.0  ;;  %5239 = vmatpush.bf16.msra.mxu0 %v6796_v50  ;;  %5151 = vmatpush.bf16.msrb.mxu3 %v6749_v13  ;;  %v8345_v13 = vperm.slane %v8262_v25, 5 }
0x1262   : > { %v3924_v32 = vmax.f32 %v3652_v59, 0.0 }
0x1263   : > { %v3971_v28 = vpack.c.bf16 %v3923_v1, %v3907_v39  ;;  %v3616_v47 = vpop.f32.mrf.mxu1  ;;  %v8334_v39 = vperm.slane %v8262_v25, 7 }
0x1264   : > { %v3972_v56 = vpack.c.bf16 %v3924_v32, %v3908_v7  ;;  %v3673_v17 = vpop.f32.mrf.mxu0  ;;  %5183 = vmatpush.bf16.msra.mxu1 %v6771_v23  ;;  %v3617_v33 = vadd.f32 %v3616_v47, %v8267_v26  ;;  %v6776_v32 = vld [vmem:[%s7396_s21 + $0x258] sm:$0xff] }
0x1265   : > { %5057 = vmatmul.bf16.vlgmr.msra.gmra.mxu2 %v3971_v28  ;;  %5240 = vmatpush.bf16.msra.mxu0 %v6795_v46  ;;  %v3674_v0 = vadd.f32 %v3673_v17, %v8272_v42  ;;  %v6784_v28 = vld [vmem:[%s7396_s21 + $0x298] sm:$0xff]  ;;  %v6766_v17 = vld [vmem:[%s7396_s21 + $0x208] sm:$0xff] }
0x1266   : > { %5076 = vmatmul.bf16.vlgmr.msra.gmra.mxu3 %v3972_v56  ;;  %5201 = vmatpush.bf16.msra.mxu2 %v6780_v27  ;;  %v3938_v48 = vmax.f32 %v3617_v33, 0.0  ;;  %v6783_v33 = vld [vmem:[%s7396_s21 + $0x290] sm:$0xff] }
0x1267   : > { %5220 = vmatpush.bf16.msra.mxu3 %v6788_v29  ;;  %v3941_v44 = vmax.f32 %v3674_v0, 0.0  ;;  %v6775_v29 = vld [vmem:[%s7396_s21 + $0x250] sm:$0xff] }
0x1268   : > { %5184 = vmatpush.bf16.msra.mxu1 %v6770_v21 }
0x1269   : > { %v3635_v24 = vpop.f32.mrf.mxu2  ;;  %5241 = vmatpush.bf16.msra.mxu0 %v6794_v16  ;;  %v6765_v16 = vld [vmem:[%s7396_s21 + $0x200] sm:$0xff] }
0x126a   : > { %v3654_v40 = vpop.f32.mrf.mxu3  ;;  %5202 = vmatpush.bf16.msra.mxu2 %v6779_v20  ;;  %v3636_v3 = vadd.f32 %v3635_v24, %v8281_v49  ;;  %v8349_v24 = vperm.slane %v8262_v25, 6 }
0x126b   : > { %v3618_v43 = vpop.f32.mrf.mxu1  ;;  %5221 = vmatpush.bf16.msra.mxu3 %v6787_v36 }
0x126c   : > { %v3619_v19 = vadd.f32 %v3618_v43, %v8267_v26  ;;  %v3675_v22 = vpop.f32.mrf.mxu0  ;;  %5185 = vmatpush.bf16.msra.mxu1 %v6769_v53  ;;  %v3939_v31 = vmax.f32 %v3636_v3, 0.0  ;;  %v6804_v3 = vld [vmem:[%s7396_s21 + $0x338] sm:$0xff] }
0x126d   : > { %v3676_v54 = vadd.f32 %v3675_v22, %v8272_v42  ;;  %v3655_v42 = vadd.f32 %v3654_v40, %v8287_v52  ;;  %5242 = vmatpush.bf16.msra.mxu0 %v6793_v2 }
0x126e   : > { %v3954_v51 = vmax.f32 %v3619_v19, 0.0  ;;  %5203 = vmatpush.bf16.msra.mxu2 %v6778_v62  ;;  %v6789_v19 = vld [vmem:[%s7396_s21 + $0x2c0] sm:$0xff] }
0x126f   : > { %v3957_v57 = vmax.f32 %v3676_v54, 0.0  ;;  %5222 = vmatpush.bf16.msra.mxu3 %v6786_v41  ;;  %v3940_v30 = vmax.f32 %v3655_v42, 0.0 }
0x1270   : > { %v3986_v26 = vpack.c.bf16 %v3954_v51, %v3938_v48  ;;  %5186 = vmatpush.bf16.msra.mxu1 %v6768_v4  ;;  %v6774_v48 = vld [vmem:[%s7396_s21 + $0x248] sm:$0xff]  ;;  %v6803_v4 = vld [vmem:[%s7396_s21 + $0x330] sm:$0xff] }
0x1271   : > { %v3637_v6 = vpop.f32.mrf.mxu2  ;;  %v3989_v45 = vpack.c.bf16 %v3957_v57, %v3941_v44  ;;  %5243 = vmatpush.bf16.msra.mxu0 %v6792_v34  ;;  %v6782_v51 = vld [vmem:[%s7396_s21 + $0x288] sm:$0xff]  ;;  %v6827_v34 = vld [vmem:[%s7396_s21 + $0x3f0] sm:$0xff] }
0x1272   : > { %v3638_v61 = vadd.f32 %v3637_v6, %v8281_v49  ;;  %v3656_v55 = vpop.f32.mrf.mxu3  ;;  %5043 = vmatmul.bf16.gmra.mxu1 %v3986_v26  ;;  %5204 = vmatpush.bf16.msra.mxu2 %v6777_v11  ;;  %v6828_v26 = vld [vmem:[%s7396_s21 + $0x3f8] sm:$0xff] }
0x1273   : > { %v3657_v58 = vadd.f32 %v3656_v55, %v8287_v52  ;;  %5100 = vmatmul.bf16.gmra.mxu0 %v3989_v45  ;;  %v3687_v38 = vpop.f32.mrf.mxu1  ;;  %v8331_v52 = vperm.slane %v8262_v25, 4  ;;  %5223 = vmatpush.bf16.msra.mxu3 %v6785_v14  ;;  %v6781_v55 = vld [vmem:[%s7396_s21 + $0x280] sm:$0xff] }
0x1274   : > { %v3955_v8 = vmax.f32 %v3638_v61, 0.0  ;;  %v3744_v9 = vpop.f32.mrf.mxu0  ;;  %5187 = vmatpush.bf16.msra.mxu1 %v6767_v35  ;;  %v6773_v61 = vld [vmem:[%s7396_s21 + $0x240] sm:$0xff] }
0x1275   : > { %v3956_v49 = vmax.f32 %v3657_v58, 0.0  ;;  %v3688_v47 = vadd.f32 %v3687_v38, %v8331_v52  ;;  %5244 = vmatpush.bf16.msra.mxu0 %v6791_v10  ;;  %v3745_v50 = vadd.f32 %v3744_v9, %v8334_v39  ;;  %v6820_v9 = vld [vmem:[%s7396_s21 + $0x3b8] sm:$0xff] }
0x1276   : > { %v3987_v59 = vpack.c.bf16 %v3955_v8, %v3939_v31  ;;  %5205 = vmatpush.bf16.msra.mxu2 %v6776_v32  ;;  %v6812_v8 = vld [vmem:[%s7396_s21 + $0x378] sm:$0xff]  ;;  %v6811_v32 = vld [vmem:[%s7396_s21 + $0x370] sm:$0xff] }
0x1277   : > { %v3988_v1 = vpack.c.bf16 %v3956_v49, %v3940_v30  ;;  %5224 = vmatpush.bf16.msra.mxu3 %v6784_v28  ;;  %v3910_v40 = vmax.f32 %v3688_v47, 0.0  ;;  %v3913_v43 = vmax.f32 %v3745_v50, 0.0  ;;  %v6819_v28 = vld [vmem:[%s7396_s21 + $0x3b0] sm:$0xff] }
0x1278   : > { %5062 = vmatmul.bf16.gmra.mxu2 %v3987_v59  ;;  %5188 = vmatpush.bf16.msra.mxu1 %v6766_v17  ;;  %v6802_v59 = vld [vmem:[%s7396_s21 + $0x328] sm:$0xff]  ;;  %v6801_v17 = vld [vmem:[%s7396_s21 + $0x320] sm:$0xff] }
0x1279   : > { %5081 = vmatmul.bf16.gmra.mxu3 %v3988_v1  ;;  %v3706_v7 = vpop.f32.mrf.mxu2  ;;  %5245 = vmatpush.bf16.msra.mxu0 %v6790_v18  ;;  %v6826_v1 = vld [vmem:[%s7396_s21 + $0x3e8] sm:$0xff]  ;;  %v6825_v18 = vld [vmem:[%s7396_s21 + $0x3e0] sm:$0xff] }
0x127a   : > { %v3725_v5 = vpop.f32.mrf.mxu3  ;;  %5206 = vmatpush.bf16.msra.mxu2 %v6775_v29  ;;  %v3707_v22 = vadd.f32 %v3706_v7, %v8345_v13  ;;  %v6810_v29 = vld [vmem:[%s7396_s21 + $0x368] sm:$0xff] }
0x127b   : > { %v3689_v56 = vpop.f32.mrf.mxu1  ;;  %5225 = vmatpush.bf16.msra.mxu3 %v6783_v33  ;;  %v3726_v25 = vadd.f32 %v3725_v5, %v8349_v24  ;;  %v6818_v33 = vld [vmem:[%s7396_s21 + $0x3a8] sm:$0xff] }
0x127c   : > { %v3690_v23 = vadd.f32 %v3689_v56, %v8331_v52  ;;  %v3746_v46 = vpop.f32.mrf.mxu0  ;;  %5189 = vmatpush.bf16.msra.mxu1 %v6765_v16  ;;  %v3911_v42 = vmax.f32 %v3707_v22, 0.0  ;;  %v6824_v22 = vld [vmem:[%s7396_s21 + $0x3d8] sm:$0xff] }
0x127d   : > { %v3747_v27 = vadd.f32 %v3746_v46, %v8334_v39  ;;  %5246 = vmatpush.bf16.msra.mxu0 %v6789_v19  ;;  %v3912_v62 = vmax.f32 %v3726_v25, 0.0  ;;  %v6800_v19 = vld [vmem:[%s7396_s21 + $0x318] sm:$0xff] }
0x127e   : > { %v3926_v0 = vmax.f32 %v3690_v23, 0.0  ;;  %5207 = vmatpush.bf16.msra.mxu2 %v6774_v48  ;;  %v6809_v48 = vld [vmem:[%s7396_s21 + $0x360] sm:$0xff] }
0x127f   : > { %v3929_v21 = vmax.f32 %v3747_v27, 0.0  ;;  %5226 = vmatpush.bf16.msra.mxu3 %v6782_v51 }
0x1280   : > { %v3974_v54 = vpack.c.bf16 %v3926_v0, %v3910_v40 }
0x1281   : > { %v3977_v20 = vpack.c.bf16 %v3929_v21, %v3913_v43  ;;  %v3708_v36 = vpop.f32.mrf.mxu2  ;;  %v8387_v21 = vld [vmem:[%s7390_s13 + $0x8] sm:$0xff] }
0x1282   : > { %v3709_v44 = vadd.f32 %v3708_v36, %v8345_v13  ;;  %v3727_v57 = vpop.f32.mrf.mxu3  ;;  %5114 = vmatmul.bf16.vlgmr.msrb.gmra.mxu1 %v3974_v54  ;;  %5208 = vmatpush.bf16.msra.mxu2 %v6773_v61  ;;  %v8394_v51 = vperm.slane %v8387_v21, 0 }
0x1283   : > { %v3728_v53 = vadd.f32 %v3727_v57, %v8349_v24  ;;  %5171 = vmatmul.bf16.vlgmr.msrb.gmra.mxu0 %v3977_v20  ;;  %v3692_v2 = vpop.f32.mrf.mxu1  ;;  %5258 = vmatpush.bf16.msrb.mxu1 %v6804_v3  ;;  %v8397_v57 = vperm.slane %v8387_v21, 3  ;;  %v6823_v3 = vld [vmem:[%s7396_s21 + $0x3d0] sm:$0xff] }
0x1284   : > { %v3927_v6 = vmax.f32 %v3709_v44, 0.0  ;;  %v3749_v45 = vpop.f32.mrf.mxu0  ;;  %5315 = vmatpush.bf16.msrb.mxu0 %v6828_v26  ;;  %5227 = vmatpush.bf16.msra.mxu3 %v6781_v55  ;;  %v3693_v30 = vadd.f32 %v3692_v2, %v8331_v52  ;;  %v6799_v2 = vld [vmem:[%s7396_s21 + $0x310] sm:$0xff]  ;;  %v6798_v55 = vld [vmem:[%s7396_s21 + $0x308] sm:$0xff] }
0x1285   : > { %v3928_v41 = vmax.f32 %v3728_v53, 0.0  ;;  %v3750_v11 = vadd.f32 %v3749_v45, %v8334_v39 }
0x1286   : > { %v3975_v58 = vpack.c.bf16 %v3927_v6, %v3911_v42  ;;  %v3942_v47 = vmax.f32 %v3693_v30, 0.0  ;;  %v6808_v42 = vld [vmem:[%s7396_s21 + $0x358] sm:$0xff]  ;;  %v6815_v30 = vld [vmem:[%s7396_s21 + $0x390] sm:$0xff] }
0x1287   : > { %v3976_v38 = vpack.c.bf16 %v3928_v41, %v3912_v62  ;;  %5259 = vmatpush.bf16.msrb.mxu1 %v6803_v4  ;;  %v3945_v50 = vmax.f32 %v3750_v11, 0.0  ;;  %v6816_v6 = vld [vmem:[%s7396_s21 + $0x398] sm:$0xff] }
0x1288   : > { %5133 = vmatmul.bf16.vlgmr.msrb.gmra.mxu2 %v3975_v58  ;;  %5316 = vmatpush.bf16.msrb.mxu0 %v6827_v34  ;;  %v6822_v58 = vld [vmem:[%s7396_s21 + $0x3c8] sm:$0xff] }
0x1289   : > { %5152 = vmatmul.bf16.vlgmr.msrb.gmra.mxu3 %v3976_v38  ;;  %v3711_v31 = vpop.f32.mrf.mxu2  ;;  %5277 = vmatpush.bf16.msrb.mxu2 %v6812_v8  ;;  %v8408_v38 = vperm.slane %v8387_v21, 1 }
0x128a   : > { %v3730_v49 = vpop.f32.mrf.mxu3  ;;  %5296 = vmatpush.bf16.msrb.mxu3 %v6820_v9  ;;  %v6807_v9 = vld [vmem:[%s7396_s21 + $0x350] sm:$0xff] }
0x128b   : > { %v3694_v14 = vpop.f32.mrf.mxu1  ;;  %5260 = vmatpush.bf16.msrb.mxu1 %v6802_v59 }
0x128c   : > { %v3695_v35 = vadd.f32 %v3694_v14, %v8331_v52  ;;  %v3751_v10 = vpop.f32.mrf.mxu0  ;;  %5317 = vmatpush.bf16.msrb.mxu0 %v6826_v1  ;;  %v3712_v52 = vadd.f32 %v3711_v31, %v8345_v13  ;;  %v8412_v31 = vperm.slane %v8387_v21, 2  ;;  %v6797_v1 = vld [vmem:[%s7396_s21 + $0x300] sm:$0xff] }
0x128d   : > { %v3752_v7 = vadd.f32 %v3751_v10, %v8334_v39  ;;  %5278 = vmatpush.bf16.msrb.mxu2 %v6811_v32  ;;  %v3731_v39 = vadd.f32 %v3730_v49, %v8349_v24 }
0x128e   : > { %v3958_v5 = vmax.f32 %v3695_v35, 0.0  ;;  %5297 = vmatpush.bf16.msrb.mxu3 %v6819_v28  ;;  %v3943_v54 = vmax.f32 %v3712_v52, 0.0  ;;  %v6821_v35 = vld [vmem:[%s7396_s21 + $0x3c0] sm:$0xff] }
0x128f   : > { %v3961_v56 = vmax.f32 %v3752_v7, 0.0  ;;  %5261 = vmatpush.bf16.msrb.mxu1 %v6801_v17 }
0x1290   : > { %v3990_v23 = vpack.c.bf16 %v3958_v5, %v3942_v47  ;;  %5318 = vmatpush.bf16.msrb.mxu0 %v6825_v18  ;;  %v6806_v5 = vld [vmem:[%s7396_s21 + $0x348] sm:$0xff] }
0x1291   : > { %v3713_v46 = vpop.f32.mrf.mxu2  ;;  %v3993_v27 = vpack.c.bf16 %v3961_v56, %v3945_v50  ;;  %5279 = vmatpush.bf16.msrb.mxu2 %v6810_v29  ;;  %v6814_v50 = vld [vmem:[%s7396_s21 + $0x388] sm:$0xff] }
0x1292   : > { %v3714_v40 = vadd.f32 %v3713_v46, %v8345_v13  ;;  %v3732_v0 = vpop.f32.mrf.mxu3  ;;  %5119 = vmatmul.bf16.gmra.mxu1 %v3990_v23  ;;  %5298 = vmatpush.bf16.msrb.mxu3 %v6818_v33  ;;  %v3944_v13 = vmax.f32 %v3731_v39, 0.0  ;;  %v6805_v33 = vld [vmem:[%s7396_s21 + $0x340] sm:$0xff] }
0x1293   : > { %v3733_v43 = vadd.f32 %v3732_v0, %v8349_v24  ;;  %5176 = vmatmul.bf16.gmra.mxu0 %v3993_v27  ;;  %v3763_v16 = vpop.f32.mrf.mxu1  ;;  %5262 = vmatpush.bf16.msrb.mxu1 %v6800_v19  ;;  %v6817_v24 = vld [vmem:[%s7396_s21 + $0x3a0] sm:$0xff] }
0x1294   : > { %v3959_v25 = vmax.f32 %v3714_v40, 0.0  ;;  %v3820_v20 = vpop.f32.mrf.mxu0  ;;  %5319 = vmatpush.bf16.msrb.mxu0 %v6824_v22  ;;  %v3764_v45 = vadd.f32 %v3763_v16, %v8394_v51  ;;  %v6813_v40 = vld [vmem:[%s7396_s21 + $0x380] sm:$0xff] }
0x1295   : > { %v3960_v36 = vmax.f32 %v3733_v43, 0.0  ;;  %5280 = vmatpush.bf16.msrb.mxu2 %v6809_v48  ;;  %v3821_v41 = vadd.f32 %v3820_v20, %v8397_v57 }
0x1296   : > { %v3991_v44 = vpack.c.bf16 %v3959_v25, %v3943_v54  ;;  %5299 = vmatpush.bf16.msrb.mxu3 %v6817_v24  ;;  %v3914_v49 = vmax.f32 %v3764_v45, 0.0 }
0x1297   : > { %v3992_v53 = vpack.c.bf16 %v3960_v36, %v3944_v13  ;;  %5263 = vmatpush.bf16.msrb.mxu1 %v6799_v2  ;;  %v3917_v14 = vmax.f32 %v3821_v41, 0.0 }
0x1298   : > { %5138 = vmatmul.bf16.gmra.mxu2 %v3991_v44  ;;  %5320 = vmatpush.bf16.msrb.mxu0 %v6823_v3 }
0x1299   : > { %5157 = vmatmul.bf16.gmra.mxu3 %v3992_v53  ;;  %v3782_v26 = vpop.f32.mrf.mxu2  ;;  %5281 = vmatpush.bf16.msrb.mxu2 %v6808_v42 }
0x129a   : > { %v3801_v62 = vpop.f32.mrf.mxu3  ;;  %5300 = vmatpush.bf16.msrb.mxu3 %v6816_v6  ;;  %v3783_v10 = vadd.f32 %v3782_v26, %v8408_v38 }
0x129b   : > { %v3765_v61 = vpop.f32.mrf.mxu1  ;;  %5264 = vmatpush.bf16.msrb.mxu1 %v6798_v55  ;;  %v3802_v32 = vadd.f32 %v3801_v62, %v8412_v31 }
0x129c   : > { %v3766_v4 = vadd.f32 %v3765_v61, %v8394_v51  ;;  %v3822_v34 = vpop.f32.mrf.mxu0  ;;  %5321 = vmatpush.bf16.msrb.mxu0 %v6822_v58  ;;  %v3915_v23 = vmax.f32 %v3783_v10, 0.0  ;;  %v3258_v10 = vperm.slane %v8387_v21, 6 }
0x129d   : > { %v3823_v8 = vadd.f32 %v3822_v34, %v8397_v57  ;;  %5282 = vmatpush.bf16.msrb.mxu2 %v6807_v9  ;;  %v3916_v27 = vmax.f32 %v3802_v32, 0.0 }
0x129e   : > { %v3930_v11 = vmax.f32 %v3766_v4, 0.0  ;;  %5301 = vmatpush.bf16.msrb.mxu3 %v6815_v30  ;;  %v3259_v30 = vperm.slane %v8387_v21, 7 }
0x129f   : > { %v3933_v59 = vmax.f32 %v3823_v8, 0.0  ;;  %5265 = vmatpush.bf16.msrb.mxu1 %v6797_v1  ;;  %v3256_v8 = vperm.slane %v8387_v21, 4 }
0x12a0   : > { %v3978_v7 = vpack.c.bf16 %v3930_v11, %v3914_v49  ;;  %5322 = vmatpush.bf16.msrb.mxu0 %v6821_v35 }
0x12a1   : > { %v3981_v28 = vpack.c.bf16 %v3933_v59, %v3917_v14  ;;  %v3784_v47 = vpop.f32.mrf.mxu2  ;;  %5283 = vmatpush.bf16.msrb.mxu2 %v6806_v5  ;;  %v3257_v59 = vperm.slane %v8387_v21, 5 }
0x12a2   : > { %v3785_v56 = vadd.f32 %v3784_v47, %v8408_v38  ;;  %v3803_v17 = vpop.f32.mrf.mxu3  ;;  %5190 = vmatmul.bf16.vlgmr.msra.gmra.mxu1 %v3978_v7  ;;  %5302 = vmatpush.bf16.msrb.mxu3 %v6814_v50 }
0x12a3   : > { %v3804_v18 = vadd.f32 %v3803_v17, %v8412_v31  ;;  %5247 = vmatmul.bf16.vlgmr.msra.gmra.mxu0 %v3981_v28  ;;  %v3768_v52 = vpop.f32.mrf.mxu1 }
0x12a4   : > { %v3931_v39 = vmax.f32 %v3785_v56, 0.0  ;;  %v3825_v46 = vpop.f32.mrf.mxu0  ;;  %v3769_v19 = vadd.f32 %v3768_v52, %v8394_v51 }
0x12a5   : > { %v3932_v29 = vmax.f32 %v3804_v18, 0.0  ;;  %5284 = vmatpush.bf16.msrb.mxu2 %v6805_v33  ;;  %v3826_v54 = vadd.f32 %v3825_v46, %v8397_v57 }
0x12a6   : > { %v3979_v0 = vpack.c.bf16 %v3931_v39, %v3915_v23  ;;  %5303 = vmatpush.bf16.msrb.mxu3 %v6813_v40  ;;  %v3946_v48 = vmax.f32 %v3769_v19, 0.0 }
0x12a7   : > { %v3980_v43 = vpack.c.bf16 %v3932_v29, %v3916_v27  ;;  %v3949_v44 = vmax.f32 %v3826_v54, 0.0 }
0x12a8   : > { %5209 = vmatmul.bf16.vlgmr.msra.gmra.mxu2 %v3979_v0 }
0x12a9   : > { %5228 = vmatmul.bf16.vlgmr.msra.gmra.mxu3 %v3980_v43  ;;  %v3787_v16 = vpop.f32.mrf.mxu2 }
0x12aa   : > { %v3806_v22 = vpop.f32.mrf.mxu3  ;;  %v3788_v2 = vadd.f32 %v3787_v16, %v8408_v38 }
0x12ab   : > { %v3770_v25 = vpop.f32.mrf.mxu1  ;;  %v3807_v26 = vadd.f32 %v3806_v22, %v8412_v31 }
0x12ac   : > { %v3771_v20 = vadd.f32 %v3770_v25, %v8394_v51  ;;  %v3827_v13 = vpop.f32.mrf.mxu0 }
0x12ad   : > { %v3828_v36 = vadd.f32 %v3827_v13, %v8397_v57  ;;  %v3947_v57 = vmax.f32 %v3788_v2, 0.0  ;;  %v3948_v58 = vmax.f32 %v3807_v26, 0.0 }
0x12ae   : > { %v3962_v24 = vmax.f32 %v3771_v20, 0.0 }
0x12af   : > { %v3965_v53 = vmax.f32 %v3828_v36, 0.0 }
0x12b0   : > { %v3994_v3 = vpack.c.bf16 %v3962_v24, %v3946_v48 }
0x12b1   : > { %v3997_v42 = vpack.c.bf16 %v3965_v53, %v3949_v44  ;;  %v3789_v6 = vpop.f32.mrf.mxu2 }
0x12b2   : > { %v3790_v45 = vadd.f32 %v3789_v6, %v8408_v38  ;;  %v3808_v62 = vpop.f32.mrf.mxu3  ;;  %5195 = vmatmul.bf16.gmra.mxu1 %v3994_v3 }
0x12b3   : > { %v3809_v51 = vadd.f32 %v3808_v62, %v8412_v31  ;;  %5252 = vmatmul.bf16.gmra.mxu0 %v3997_v42  ;;  %v3839_v41 = vpop.f32.mrf.mxu1 }
0x12b4   : > { %v3963_v61 = vmax.f32 %v3790_v45, 0.0  ;;  %v3896_v55 = vpop.f32.mrf.mxu0  ;;  %v3840_v49 = vadd.f32 %v3839_v41, %v3256_v8 }
0x12b5   : > { %v3964_v4 = vmax.f32 %v3809_v51, 0.0  ;;  %v3897_v14 = vadd.f32 %v3896_v55, %v3259_v30 }
0x12b6   : > { %v3995_v34 = vpack.c.bf16 %v3963_v61, %v3947_v57  ;;  %v3918_v32 = vmax.f32 %v3840_v49, 0.0 }
0x12b7   : > { %v3996_v9 = vpack.c.bf16 %v3964_v4, %v3948_v58  ;;  %v3921_v47 = vmax.f32 %v3897_v14, 0.0 }
0x12b8   : > { %5214 = vmatmul.bf16.gmra.mxu2 %v3995_v34 }
0x12b9   : > { %5233 = vmatmul.bf16.gmra.mxu3 %v3996_v9  ;;  %v3858_v38 = vpop.f32.mrf.mxu2 }
0x12ba   : > { %v3877_v11 = vpop.f32.mrf.mxu3  ;;  %v3859_v50 = vadd.f32 %v3858_v38, %v3257_v59 }
0x12bb   : > { %v3841_v31 = vpop.f32.mrf.mxu1  ;;  %v3878_v17 = vadd.f32 %v3877_v11, %v3258_v10 }
0x12bc   : > { %v3842_v1 = vadd.f32 %v3841_v31, %v3256_v8  ;;  %v3898_v35 = vpop.f32.mrf.mxu0  ;;  %v3919_v29 = vmax.f32 %v3859_v50, 0.0 }
0x12bd   : > { %v3899_v7 = vadd.f32 %v3898_v35, %v3259_v30  ;;  %v3920_v21 = vmax.f32 %v3878_v17, 0.0 }
0x12be   : > { %v3934_v28 = vmax.f32 %v3842_v1, 0.0 }
0x12bf   : > { %v3937_v5 = vmax.f32 %v3899_v7, 0.0 }
0x12c0   : > { %v3982_v56 = vpack.c.bf16 %v3934_v28, %v3918_v32 }
0x12c1   : > { %v3985_v18 = vpack.c.bf16 %v3937_v5, %v3921_v47  ;;  %v3860_v52 = vpop.f32.mrf.mxu2 }
0x12c2   : > { %v3861_v23 = vadd.f32 %v3860_v52, %v3257_v59  ;;  %v3879_v39 = vpop.f32.mrf.mxu3  ;;  %5266 = vmatmul.bf16.vlgmr.msrb.gmra.mxu1 %v3982_v56 }
0x12c3   : > { %v3880_v46 = vadd.f32 %v3879_v39, %v3258_v10  ;;  %5323 = vmatmul.bf16.vlgmr.msrb.gmra.mxu0 %v3985_v18  ;;  %v3844_v27 = vpop.f32.mrf.mxu1 }
0x12c4   : > { %v3935_v33 = vmax.f32 %v3861_v23, 0.0  ;;  %v3901_v40 = vpop.f32.mrf.mxu0  ;;  %v3845_v22 = vadd.f32 %v3844_v27, %v3256_v8 }
0x12c5   : > { %v3936_v0 = vmax.f32 %v3880_v46, 0.0  ;;  %v3902_v25 = vadd.f32 %v3901_v40, %v3259_v30 }
0x12c6   : > { %v3983_v43 = vpack.c.bf16 %v3935_v33, %v3919_v29  ;;  %v3950_v24 = vmax.f32 %v3845_v22, 0.0 }
0x12c7   : > { %v3984_v16 = vpack.c.bf16 %v3936_v0, %v3920_v21  ;;  %v3953_v53 = vmax.f32 %v3902_v25, 0.0 }
0x12c8   : > { %5285 = vmatmul.bf16.vlgmr.msrb.gmra.mxu2 %v3983_v43 }
0x12c9   : > { %5304 = vmatmul.bf16.vlgmr.msrb.gmra.mxu3 %v3984_v16  ;;  %v3863_v19 = vpop.f32.mrf.mxu2 }
0x12ca   : > { %v3882_v54 = vpop.f32.mrf.mxu3  ;;  %v3864_v3 = vadd.f32 %v3863_v19, %v3257_v59 }
0x12cb   : > { %v3846_v20 = vpop.f32.mrf.mxu1  ;;  %v3883_v42 = vadd.f32 %v3882_v54, %v3258_v10 }
0x12cc   : > { %v3847_v13 = vadd.f32 %v3846_v20, %v3256_v8  ;;  %v3903_v36 = vpop.f32.mrf.mxu0  ;;  %v3951_v57 = vmax.f32 %v3864_v3, 0.0 }
0x12cd   : > { %v3904_v48 = vadd.f32 %v3903_v36, %v3259_v30  ;;  %v3952_v55 = vmax.f32 %v3883_v42, 0.0  ;;  %v7032_v30 = vld [vmem:[%s641_s30] ss:$0 sm:$0xff] }
0x12ce   : > { %v3966_v44 = vmax.f32 %v3847_v13, 0.0 }
0x12cf   : > { %v3969_v2 = vmax.f32 %v3904_v48, 0.0 }
0x12d0   : > { %v3998_v26 = vpack.c.bf16 %v3966_v44, %v3950_v24 }
0x12d1   : > { %v4001_v6 = vpack.c.bf16 %v3969_v2, %v3953_v53  ;;  %v3865_v45 = vpop.f32.mrf.mxu2 }
0x12d2   : > { %v3866_v62 = vadd.f32 %v3865_v45, %v3257_v59  ;;  %v3884_v51 = vpop.f32.mrf.mxu3  ;;  %5271 = vmatmul.bf16.gmra.mxu1 %v3998_v26 }
0x12d3   : > { %v3885_v41 = vadd.f32 %v3884_v51, %v3258_v10  ;;  %5328 = vmatmul.bf16.gmra.mxu0 %v4001_v6 }
0x12d4   : > { %v3967_v61 = vmax.f32 %v3866_v62, 0.0 }
0x12d5   : > { %v3968_v58 = vmax.f32 %v3885_v41, 0.0 }
0x12d6   : > { %v3999_v4 = vpack.c.bf16 %v3967_v61, %v3951_v57 }
0x12d7   : > { %v4000_v34 = vpack.c.bf16 %v3968_v58, %v3952_v55 }
0x12d8   : > { %5290 = vmatmul.bf16.gmra.mxu2 %v3999_v4 }
0x12d9   : > { %5309 = vmatmul.bf16.gmra.mxu3 %v4000_v34 }
0x12dc   : > { %v5039_v8 = vpop.f32.mrf.mxu1 }
0x12dd   : > { %v5096_v9 = vpop.f32.mrf.mxu0  ;;  %v5040_v38 = vadd.f32 %v7032_v30, %v5039_v8 }
0x12e4   : > { %v5041_v49 = vpop.f32.mrf.mxu1 }
0x12e5   : > { %v5098_v11 = vpop.f32.mrf.mxu0  ;;  %v5042_v10 = vadd.f32 %v7032_v30, %v5041_v49 }
0x12e8   : > { %v5058_v14 = vpop.f32.mrf.mxu2 }
0x12e9   : > { %v5059_v31 = vadd.f32 %v5058_v14, %v5040_v38  ;;  %v5077_v59 = vpop.f32.mrf.mxu3 }
0x12eb   : > { %v5078_v1 = vadd.f32 %v5077_v59, %v5059_v31 }
0x12ed   : > { %v5097_v35 = vadd.f32 %v5096_v9, %v5078_v1 }
0x12ef   : > { %v5044_v7 = vpop.f32.mrf.mxu1 }
0x12f0   : > { %v5060_v32 = vpop.f32.mrf.mxu2  ;;  %v5101_v28 = vpop.f32.mrf.mxu0  ;;  %v5045_v52 = vadd.f32 %v7032_v30, %v5044_v7 }
0x12f1   : > { %v5061_v47 = vadd.f32 %v5060_v32, %v5042_v10  ;;  %v5079_v5 = vpop.f32.mrf.mxu3 }
0x12f3   : > { %v5080_v50 = vadd.f32 %v5079_v5, %v5061_v47 }
0x12f5   : > { %v5099_v56 = vadd.f32 %v5098_v11, %v5080_v50 }
0x12f7   : > { %v5046_v17 = vpop.f32.mrf.mxu1 }
0x12f8   : > { %v5103_v18 = vpop.f32.mrf.mxu0  ;;  %v5047_v21 = vadd.f32 %v7032_v30, %v5046_v17 }
0x12fb   : > { %v5063_v23 = vpop.f32.mrf.mxu2 }
0x12fc   : > { %v5064_v39 = vadd.f32 %v5063_v23, %v5045_v52  ;;  %v5082_v46 = vpop.f32.mrf.mxu3 }
0x12fe   : > { %v5083_v27 = vadd.f32 %v5082_v46, %v5064_v39 }
0x12ff   : > { %v5115_v29 = vpop.f32.mrf.mxu1 }
0x1300   : > { %v5172_v33 = vpop.f32.mrf.mxu0  ;;  %v5102_v40 = vadd.f32 %v5101_v28, %v5083_v27  ;;  %v5116_v58 = vadd.f32 %v5115_v29, %v5097_v35 }
0x1303   : > { %v5065_v0 = vpop.f32.mrf.mxu2 }
0x1304   : > { %v5066_v43 = vadd.f32 %v5065_v0, %v5047_v21  ;;  %v5084_v16 = vpop.f32.mrf.mxu3 }
0x1306   : > { %v5085_v19 = vadd.f32 %v5084_v16, %v5066_v43 }
0x1307   : > { %v5117_v22 = vpop.f32.mrf.mxu1 }
0x1308   : > { %v5174_v54 = vpop.f32.mrf.mxu0  ;;  %v5104_v25 = vadd.f32 %v5103_v18, %v5085_v19  ;;  %v5118_v49 = vadd.f32 %v5117_v22, %v5099_v56 }
0x130b   : > { %v5134_v20 = vpop.f32.mrf.mxu2 }
0x130c   : > { %v5153_v13 = vpop.f32.mrf.mxu3  ;;  %v5135_v34 = vadd.f32 %v5134_v20, %v5116_v58 }
0x130e   : > { %v5154_v38 = vadd.f32 %v5153_v13, %v5135_v34 }
0x130f   : > { %v5120_v36 = vpop.f32.mrf.mxu1 }
0x1310   : > { %v5177_v48 = vpop.f32.mrf.mxu0  ;;  %v5173_v31 = vadd.f32 %v5172_v33, %v5154_v38  ;;  %v5121_v47 = vadd.f32 %v5120_v36, %v5102_v40 }
0x1313   : > { %v5136_v24 = vpop.f32.mrf.mxu2 }
0x1314   : > { %v5155_v44 = vpop.f32.mrf.mxu3  ;;  %v5137_v14 = vadd.f32 %v5136_v24, %v5118_v49 }
0x1316   : > { %v5156_v7 = vadd.f32 %v5155_v44, %v5137_v14 }
0x1317   : > { %v5122_v53 = vpop.f32.mrf.mxu1 }
0x1318   : > { %v5179_v2 = vpop.f32.mrf.mxu0  ;;  %v5175_v35 = vadd.f32 %v5174_v54, %v5156_v7  ;;  %v5123_v27 = vadd.f32 %v5122_v53, %v5104_v25 }
0x131b   : > { %v5139_v3 = vpop.f32.mrf.mxu2 }
0x131c   : > { %v5158_v26 = vpop.f32.mrf.mxu3  ;;  %v5140_v50 = vadd.f32 %v5139_v3, %v5121_v47 }
0x131e   : > { %v5159_v23 = vadd.f32 %v5158_v26, %v5140_v50 }
0x131f   : > { %v5191_v42 = vpop.f32.mrf.mxu1 }
0x1320   : > { %v5248_v6 = vpop.f32.mrf.mxu0  ;;  %v5192_v1 = vadd.f32 %v5191_v42, %v5173_v31  ;;  %v5178_v43 = vadd.f32 %v5177_v48, %v5159_v23 }
0x1323   : > { %v5141_v45 = vpop.f32.mrf.mxu2 }
0x1324   : > { %v5160_v62 = vpop.f32.mrf.mxu3  ;;  %v5142_v0 = vadd.f32 %v5141_v45, %v5123_v27 }
0x1326   : > { %v5161_v13 = vadd.f32 %v5160_v62, %v5142_v0 }
0x1327   : > { %v5193_v51 = vpop.f32.mrf.mxu1 }
0x1328   : > { %v5250_v41 = vpop.f32.mrf.mxu0  ;;  %v5194_v52 = vadd.f32 %v5193_v51, %v5175_v35  ;;  %v5180_v25 = vadd.f32 %v5179_v2, %v5161_v13 }
0x132b   : > { %v5210_v57 = vpop.f32.mrf.mxu2 }
0x132c   : > { %v5229_v61 = vpop.f32.mrf.mxu3  ;;  %v5211_v32 = vadd.f32 %v5210_v57, %v5192_v1 }
0x132e   : > { %v5230_v17 = vadd.f32 %v5229_v61, %v5211_v32 }
0x132f   : > { %v5196_v55 = vpop.f32.mrf.mxu1 }
0x1330   : > { %v5253_v9 = vpop.f32.mrf.mxu0  ;;  %v5249_v46 = vadd.f32 %v5248_v6, %v5230_v17  ;;  %v5197_v40 = vadd.f32 %v5196_v55, %v5178_v43 }
0x1333   : > { %v5212_v4 = vpop.f32.mrf.mxu2 }
0x1334   : > { %v5231_v8 = vpop.f32.mrf.mxu3  ;;  %v5213_v39 = vadd.f32 %v5212_v4, %v5194_v52 }
0x1336   : > { %v5232_v16 = vadd.f32 %v5231_v8, %v5213_v39 }
0x1337   : > { %v5198_v30 = vpop.f32.mrf.mxu1 }
0x1338   : > { %v5255_v10 = vpop.f32.mrf.mxu0  ;;  %v5251_v36 = vadd.f32 %v5250_v41, %v5232_v16  ;;  %v5199_v57 = vadd.f32 %v5198_v30, %v5180_v25 }
0x133b   : > { %v5215_v11 = vpop.f32.mrf.mxu2 }
0x133c   : > { %v5234_v59 = vpop.f32.mrf.mxu3  ;;  %v5216_v54 = vadd.f32 %v5215_v11, %v5197_v40 }
0x133e   : > { %v5235_v53 = vadd.f32 %v5234_v59, %v5216_v54 }
0x133f   : > { %v5267_v28 = vpop.f32.mrf.mxu1 }
0x1340   : > { %v5324_v56 = vpop.f32.mrf.mxu0  ;;  %v5268_v29 = vadd.f32 %v5267_v28, %v5249_v46  ;;  %v5254_v62 = vadd.f32 %v5253_v9, %v5235_v53 }
0x1343   : > { %v5217_v5 = vpop.f32.mrf.mxu2 }
0x1344   : > { %v5236_v18 = vpop.f32.mrf.mxu3  ;;  %v5218_v55 = vadd.f32 %v5217_v5, %v5199_v57 }
0x1347   : > { %v5269_v33 = vpop.f32.mrf.mxu1 }
0x1348   : > { %v5270_v44 = vadd.f32 %v5269_v33, %v5251_v36  ;;  %v5326_v26 = vpop.f32.mrf.mxu0 }
0x134b   : > { %v5286_v21 = vpop.f32.mrf.mxu2 }
0x134c   : > { %v5287_v19 = vadd.f32 %v5286_v21, %v5268_v29  ;;  %v5305_v22 = vpop.f32.mrf.mxu3 }
0x134e   : > { %v5306_v20 = vadd.f32 %v5305_v22, %v5287_v19 }
0x134f   : > { %v5272_v45 = vpop.f32.mrf.mxu1 }
0x1350   : > { %v5325_v24 = vadd.f32 %v5324_v56, %v5306_v20  ;;  %v5273_v41 = vadd.f32 %v5272_v45, %v5254_v62  ;;  %v5329_v49 = vpop.f32.mrf.mxu0 }
0x1352   : > { %v5334_v3 = vadd.f32 %v5325_v24, %v8049_v37  ;;  %v5237_v37 = vadd.f32 %v5236_v18, %v5218_v55  ;;  %v7033_v55 = vld [vmem:[%s644_s14] ss:$0 sm:$0xff] }
0x1353   : > { %v5288_v42 = vpop.f32.mrf.mxu2 }
0x1354   : > { %v5289_v6 = vadd.f32 %v5288_v42, %v5270_v44  ;;  %v5307_v51 = vpop.f32.mrf.mxu3  ;;  %v5340_v48 = vsel %vm728_vm1, %v5334_v3, 0.0  ;;  %v5256_v31 = vadd.f32 %v5255_v10, %v5237_v37 }
0x1355   : > { %5341 = vadd.xlane.f32.xlu1 %v5340_v48 }
0x1356   : > { %v5308_v61 = vadd.f32 %v5307_v51, %v5289_v6 }
0x1357   : > { %v5274_v14 = vpop.f32.mrf.mxu1 }
0x1358   : > { %v5327_v58 = vadd.f32 %v5326_v26, %v5308_v61  ;;  %v5275_v30 = vadd.f32 %v5274_v14, %v5256_v31  ;;  %v5331_v47 = vpop.f32.mrf.mxu0 }
0x135a   : > { %v5335_v4 = vadd.f32 %v5327_v58, %v8052_v63 }
0x135b   : > { %v5291_v34 = vpop.f32.mrf.mxu2 }
0x135c   : > { %v5292_v8 = vadd.f32 %v5291_v34, %v5273_v41  ;;  %v5310_v38 = vpop.f32.mrf.mxu3  ;;  %v5343_v2 = vsel %vm728_vm1, %v5335_v4, 0.0  ;;  %v7034_v41 = vld [vmem:[%s647_s15] ss:$0 sm:$0xff] }
0x135d   : > { %5344 = vadd.xlane.f32.xlu2 %v5343_v2 }
0x135e   : > { %v5311_v11 = vadd.f32 %v5310_v38, %v5292_v8 }
0x1360   : > { %v5330_v59 = vadd.f32 %v5329_v49, %v5311_v11 }
0x1362   : > { %v5336_v1 = vadd.f32 %v5330_v59, %v8098_v12 }
0x1363   : > { %v5293_v9 = vpop.f32.mrf.mxu2 }
0x1364   : > { %v5294_v7 = vadd.f32 %v5293_v9, %v5275_v30  ;;  %v5346_v32 = vsel %vm728_vm1, %v5336_v1, 0.0  ;;  %v5312_v63 = vpop.f32.mrf.mxu3 }
0x1365   : > { %5347 = vadd.xlane.f32.xlu0 %v5346_v32 }
0x1366   : > { %v5313_v28 = vadd.f32 %v5312_v63, %v5294_v7 }
0x1368   : > { %v5332_v5 = vadd.f32 %v5331_v47, %v5313_v28 }
0x136a   : > { %v5337_v50 = vadd.f32 %v5332_v5, %v8101_v15 }
0x136c   : > { %v5349_v35 = vsel %vm728_vm1, %v5337_v50, 0.0 }
0x136d   : > { %5350 = vadd.xlane.f32.xlu1 %v5349_v35 }
0x13c8   : > { %v5342_v17 = vpop.xlane.xlu1 %5341 }
0x13c9   : > { %v5352_v10 = vmul.f32 %v5342_v17, %v7923_v60 }
0x13cb   : > { %v5356_v18 = vsub.f32 %v5334_v3, %v5352_v10 }
0x13cd   : > { %v5360_v52 = vmul.f32 %v5356_v18, %v5356_v18 }
0x13cf   : > { %v5364_v12 = vsel %vm728_vm1, %v5360_v52, 0.0 }
0x13d0   : > { %v5345_v23 = vpop.xlane.xlu2 %5344  ;;  %5365 = vadd.xlane.f32.xlu2 %v5364_v12 }
0x13d1   : > { %v5353_v39 = vmul.f32 %v5345_v23, %v7923_v60 }
0x13d3   : > { %v5357_v46 = vsub.f32 %v5335_v4, %v5353_v39 }
0x13d5   : > { %v5361_v56 = vmul.f32 %v5357_v46, %v5357_v46 }
0x13d7   : > { %v5367_v27 = vsel %vm728_vm1, %v5361_v56, 0.0 }
0x13d8   : > { %5368 = vadd.xlane.f32.xlu0 %v5367_v27  ;;  %v5348_v15 = vpop.xlane.xlu0 %5347 }
0x13d9   : > { %v5354_v29 = vmul.f32 %v5348_v15, %v7923_v60 }
0x13db   : > { %v8457_v33 = vsub.f32 %v5336_v1, %v5354_v29 }
0x13dd   : > { %v5362_v21 = vmul.f32 %v8457_v33, %v8457_v33 }
0x13df   : > { %v5370_v0 = vsel %vm728_vm1, %v5362_v21, 0.0 }
0x13e0   : > { %v5351_v43 = vpop.xlane.xlu1 %5350  ;;  %5371 = vadd.xlane.f32.xlu1 %v5370_v0 }
0x13e1   : > { %v5355_v16 = vmul.f32 %v5351_v43, %v7923_v60 }
0x13e3   : > { %v8463_v19 = vsub.f32 %v5337_v50, %v5355_v16 }
0x13e5   : > { %v5363_v22 = vmul.f32 %v8463_v19, %v8463_v19 }
0x13e7   : > { %v5373_v40 = vsel %vm728_vm1, %v5363_v22, 0.0 }
0x13e8   : > { %5374 = vadd.xlane.f32.xlu2 %v5373_v40 }
0x1443   : > { %v5366_v20 = vpop.xlane.xlu2 %5365 }
0x1444   : > { %v5376_v13 = vmul.f32 %v5366_v20, %v7923_v60 }
0x1446   : > { %v5380_v54 = vadd.f32 1e-05, %v5376_v13 }
0x1448   : > { %7173 = vrsqrt.f32 %v5380_v54  ;;  %vm5390_vm8 = vweird.f32 %v5380_v54 }
0x144b   : > { %v5369_v36 = vpop.xlane.xlu0 %5368 }
0x144c   : > { %v5377_v24 = vmul.f32 %v5369_v36, %v7923_v60 }
0x144e   : > { %v7174_v44 = vpop.eup %7173  ;;  %v5381_v3 = vadd.f32 1e-05, %v5377_v24 }
0x144f   : > { %v5385_v26 = vmul.f32 %v7174_v44, %v5380_v54  ;;  %vm5391_vm7 = vweird.f32 %v7174_v44 }
0x1450   : > { %7175 = vrsqrt.f32 %v5381_v3  ;;  %vm5392_vm9 = vmor %vm5390_vm8, %vm5391_vm7  ;;  %vm5400_vm11 = vweird.f32 %v5381_v3 }
0x1451   : > { %v5386_v42 = vmul.f32 %v7174_v44, %v5385_v26 }
0x1453   : > { %v5387_v25 = vmul.f32 0.5, %v5386_v42  ;;  %v5372_v53 = vpop.xlane.xlu1 %5371 }
0x1454   : > { %v5378_v6 = vmul.f32 %v5372_v53, %v7923_v60 }
0x1455   : > { %v5388_v51 = vsub.f32 1.5, %v5387_v25 }
0x1456   : > { %v7176_v48 = vpop.eup %7175  ;;  %v5382_v45 = vadd.f32 1e-05, %v5378_v6 }
0x1457   : > { %v5389_v57 = vmul.f32 %v7174_v44, %v5388_v51  ;;  %v5395_v61 = vmul.f32 %v7176_v48, %v5381_v3  ;;  %vm5401_vm10 = vweird.f32 %v7176_v48 }
0x1458   : > { %7177 = vrsqrt.f32 %v5382_v45  ;;  %vm5402_vm12 = vmor %vm5400_vm11, %vm5401_vm10  ;;  %vm5410_vm14 = vweird.f32 %v5382_v45 }
0x1459   : > { %v5393_v62 = vsel %vm5392_vm9, %v7174_v44, %v5389_v57  ;;  %v5396_v58 = vmul.f32 %v7176_v48, %v5395_v61 }
0x145a   : > { %v5424_v4 = vmul.f32 %v5393_v62, %v5356_v18 }
0x145b   : > { %v5397_v34 = vmul.f32 0.5, %v5396_v58  ;;  %v5375_v37 = vpop.xlane.xlu2 %5374 }
0x145c   : > { %v5431_v8 = vmul.f32 %v7033_v55, %v5424_v4  ;;  %v5379_v38 = vmul.f32 %v5375_v37, %v7923_v60 }
0x145d   : > { %v5398_v2 = vsub.f32 1.5, %v5397_v34 }
0x145e   : > { %v7178_v49 = vpop.eup %7177  ;;  %v5438_v11 = vadd.f32 %v7034_v41, %v5431_v8  ;;  %v5383_v14 = vadd.f32 1e-05, %v5379_v38 }
0x145f   : > { %v5399_v31 = vmul.f32 %v7176_v48, %v5398_v2  ;;  %v5405_v59 = vmul.f32 %v7178_v49, %v5382_v45  ;;  %vm5411_vm13 = vweird.f32 %v7178_v49 }
0x1460   : > { %5442 = vst.msk [vmem:[#allocation2] sm:$0xff] %vm728_vm1, %v5438_v11  ;;  %7179 = vrsqrt.f32 %v5383_v14  ;;  %vm5412_vm15 = vmor %vm5410_vm14, %vm5411_vm13  ;;  %vm5420_vm2 = vweird.f32 %v5383_v14 }
0x1461   : > { %v5403_v30 = vsel %vm5402_vm12, %v7176_v48, %v5399_v31  ;;  %v5406_v1 = vmul.f32 %v7178_v49, %v5405_v59 }
0x1462   : > { %v5425_v9 = vmul.f32 %v5403_v30, %v5357_v46 }
0x1463   : > { %v5407_v7 = vmul.f32 0.5, %v5406_v1 }
0x1464   : > { %v5432_v32 = vmul.f32 %v7033_v55, %v5425_v9 }
0x1465   : > { %v5408_v63 = vsub.f32 1.5, %v5407_v7 }
0x1466   : > { %v7180_v60 = vpop.eup %7179  ;;  %v5439_v28 = vadd.f32 %v7034_v41, %v5432_v32 }
0x1467   : > { %v5409_v47 = vmul.f32 %v7178_v49, %v5408_v63  ;;  %v5415_v5 = vmul.f32 %v7180_v60, %v5383_v14  ;;  %vm5421_vm0 = vweird.f32 %v7180_v60 }
0x1468   : > { %5443 = vst.msk [vmem:[#allocation2 + $0x8] sm:$0xff] %vm728_vm1, %v5439_v28  ;;  %vm5422_vm3 = vmor %vm5420_vm2, %vm5421_vm0 }
0x1469   : > { %v5413_v50 = vsel %vm5412_vm15, %v7178_v49, %v5409_v47  ;;  %v5416_v35 = vmul.f32 %v7180_v60, %v5415_v5 }
0x146a   : > { %v5426_v17 = vmul.f32 %v5413_v50, %v8457_v33 }
0x146b   : > { %v5417_v10 = vmul.f32 0.5, %v5416_v35 }
0x146c   : > { %v5433_v18 = vmul.f32 %v7033_v55, %v5426_v17 }
0x146d   : > { %v5418_v52 = vsub.f32 1.5, %v5417_v10 }
0x146e   : > { %v5440_v12 = vadd.f32 %v7034_v41, %v5433_v18 }
0x146f   : > { %v5419_v23 = vmul.f32 %v7180_v60, %v5418_v52 }
0x1470   : > { %5444 = vst.msk [vmem:[#allocation2 + $0x10] sm:$0xff] %vm728_vm1, %v5440_v12 }
0x1471   : > { %v5423_v39 = vsel %vm5422_vm3, %v7180_v60, %v5419_v23 }
0x1472   : > { %v5427_v46 = vmul.f32 %v5423_v39, %v8463_v19 }
0x1474   : > { %v5434_v56 = vmul.f32 %v7033_v55, %v5427_v46  ;;  %5449 = sbr.rel (%p6618_p8) target bundleno = 5245 (0x147d), region = 80 }
0x1476   : > { %v5441_v27 = vadd.f32 %v7034_v41, %v5434_v56 }
0x1478   : > { %5445 = vst.msk [vmem:[#allocation2 + $0x18] sm:$0xff] %vm728_vm1, %v5441_v27 }
0x1479   : > { %5450 = vst.msk [vmem:[%s7413_s8] sm:$0xff] %vm728_vm1, %v5438_v11 }
0x147a   : > { %5451 = vst.msk [vmem:[%s7413_s8 + $0x8] sm:$0xff] %vm728_vm1, %v5439_v28 }
0x147b   : > { %5452 = vst.msk [vmem:[%s7413_s8 + $0x10] sm:$0xff] %vm728_vm1, %v5440_v12 }
0x147c   : > { %5453 = vst.msk [vmem:[%s7413_s8 + $0x18] sm:$0xff] %vm728_vm1, %v5441_v27 }
0x147d PF: > { %s8561_s14 = sld [smem:[#allocation6_spill]] }
0x147e   : > { %s8562_s25 = sld [smem:[#allocation4_spill]] }
0x147f   : > { %s8563_s26 = sld [smem:[#allocation5_spill]] }
0x1480   : > { %s8564_s27 = sld [smem:[#allocation7_spill]] }
0x1481   : > { %s8565_s28 = sld [smem:[#allocation8_spill]] }
0x1483   : > { %s23_s29 = sadd.s32 1, %s8561_s14  }
0x1484   : > { %p20_p9 = scmp.ge.s32.totalorder %s23_s29, 14  }
0x1486   :  { %22 = sbr.rel (!%p20_p9) target bundleno = 8 (0x8), region = 146 }

</bundles_post_ra>
